<compile_context>
chip_gen: v5e
topology: v5e:2x2
jax: 0.10.0
libtpu: 0.0.40
codegen_flags: <defaults>
</compile_context>

<pallas_src>
import math

import jax
import jax.numpy as jnp
from jax import lax
from jax.experimental import pallas as pl
from jax.experimental.pallas import tpu as pltpu  # noqa: F401

# ----------------------------- config (small, consistent with the module) ----
STATE_DIM    = 11
ACTION_DIM   = 3
N_HEADS      = 2
N_BLOCKS     = 2
HIDDEN       = 32
HEAD_DIM     = HIDDEN // N_HEADS
CONTEXT_LEN  = 8            # T
SEQ          = 3 * CONTEXT_LEN
MAX_TIMESTEP = 64
REWARD_SCALE = 1000.0
DROP_AWARE   = True
LN_EPS       = 1e-5

# packed-parameter slab layout (per block)
WROWS = 7 * HIDDEN          # bf16 weight rows: qkv(32) + wo(32) + w1(32) + w2(128)
VROWS = 8                   # f32 rows: b_qkv, bo, ln1g, ln1b, b1, b2, ln2g, ln2b


# ----------------------------- shared math (in-kernel and packed reference) --
def _layernorm(x, g, b):
    mu = jnp.mean(x, axis=-1, keepdims=True)
    var = jnp.mean((x - mu) ** 2, axis=-1, keepdims=True)
    return (x - mu) * lax.rsqrt(var + LN_EPS) * g + b


def _forward_blocks(x, wslab, vslab, *, in_kernel=False):
    """embed_ln + N_BLOCKS TransformerBlocks on a flat (B*S, H) token slab.

    ``wslab`` / ``vslab`` may be jnp arrays OR Pallas Refs; they are sliced with
    static offsets only at their use sites, so inside the kernel each sub-matrix
    is loaded from VMEM lazily.
    """
    BS, H = x.shape
    S, D = SEQ, HEAD_DIM
    n_batch = BS // S
    bf16 = jnp.bfloat16

    # embed_ln
    xf = _layernorm(x, vslab[0:1, :H], vslab[1:2, :H])

    # block-diagonal causal mask over the flattened B*S tokens, built once.
    # Batch membership uses boolean compares instead of an integer divide.
    row = lax.broadcasted_iota(jnp.int32, (BS, BS), 0)
    col = lax.broadcasted_iota(jnp.int32, (BS, BS), 1)
    mask = row >= col
    for b in range(1, n_batch):
        ge_r = row >= b * S
        ge_c = col >= b * S
        mask = mask & ((ge_r & ge_c) | ((~ge_r) & (~ge_c)))

    for blk in range(N_BLOCKS):
        wbase = blk * WROWS
        vbase = 2 + blk * VROWS

        xbf = xf.astype(bf16)                               # hoisted cast, reused

        # ---- masked causal multi-head attention ----
        # fused QKV projection: (BS,H) @ (H,3H); 1/sqrt(D) is folded into Q.
        qkv = jnp.dot(xbf, wslab[wbase:wbase + H, :3 * H],
                      preferred_element_type=jnp.float32) + vslab[vbase:vbase + 1, :3 * H]

        att = jnp.zeros((BS, H), jnp.float32)
        for hh in range(N_HEADS):                           # static, tiny head loop
            q_h = qkv[:, hh * D:(hh + 1) * D]
            k_h = qkv[:, H + hh * D:H + (hh + 1) * D]
            v_h = qkv[:, 2 * H + hh * D:2 * H + (hh + 1) * D]

            # scores: (BS,D) x (BS,D)^T on the MXU (contract last dims)
            s = lax.dot_general(q_h.astype(bf16), k_h.astype(bf16),
                                (((1,), (1,)), ((), ())),
                                preferred_element_type=jnp.float32)
            s = jnp.where(mask, s, -1e30)                   # masked_fill(-inf)
            s = s - jnp.max(s, axis=-1, keepdims=True)
            p = jnp.exp(s)
            denom = jnp.sum(p, axis=-1, keepdims=True)
            if in_kernel:
                p = p * pl.reciprocal(denom, approx=True)   # divide on the EUP slot
            else:
                p = p / denom
            o_h = jnp.dot(p.astype(bf16), v_h.astype(bf16),
                          preferred_element_type=jnp.float32)
            # fold this head's rows of the output projection (avoids a concat)
            wo_h = wslab[wbase + H + hh * D:wbase + H + (hh + 1) * D, :H]
            att = att + jnp.dot(o_h.astype(bf16), wo_h,
                                preferred_element_type=jnp.float32)
        att = att + vslab[vbase + 1:vbase + 2, :H]
        # att_drop / proj_drop / mlp dropout are identity (inference)

        xf = _layernorm(xf + att, vslab[vbase + 2:vbase + 3, :H],
                        vslab[vbase + 3:vbase + 4, :H])     # x = ln1(x + attn(x))

        # ---- MLP: Linear -> GELU(tanh approx, EUP) -> Linear ----
        m = jnp.dot(xf.astype(bf16), wslab[wbase + 2 * H:wbase + 3 * H, :4 * H],
                    preferred_element_type=jnp.float32) + vslab[vbase + 4:vbase + 5, :4 * H]
        # TODO(synk): tanh-approximate GELU (documented numerics change vs torch's exact erf GELU).
        m = jax.nn.gelu(m, approximate=True)
        m = jnp.dot(m.astype(bf16), wslab[wbase + 3 * H:wbase + 7 * H, :H],
                    preferred_element_type=jnp.float32) + vslab[vbase + 5:vbase + 6, :H]

        xf = _layernorm(xf + m, vslab[vbase + 6:vbase + 7, :H],
                        vslab[vbase + 7:vbase + 8, :H])     # x = ln2(x + mlp(x))

    return xf


# ----------------------------- Pallas kernel ---------------------------------
def dt_blocks_kernel(h_ref, wslab_ref, vslab_ref, o_ref):
    o_ref[...] = _forward_blocks(h_ref[...], wslab_ref, vslab_ref, in_kernel=True)


def prepare_block_params(params):
    """Pack all block parameters into two lane-dense slabs (one-time transform).

    wslab (bf16, (nb*7H, 128)): per block rows [w_qkv(32) | wo(32) | w1(32) | w2(128)],
      with 1/sqrt(D) folded into the Q columns of w_qkv.
    vslab (f32, (2 + 8*nb, 128)): rows [eln_g, eln_b] then per block
      [b_qkv, bo, ln1g, ln1b, b1, b2, ln2g, ln2b], each padded to 128 lanes.
    """
    H, nb, D = HIDDEN, N_BLOCKS, HEAD_DIM
    inv_sqrt_d = 1.0 / math.sqrt(D)

    wslab = jnp.zeros((nb * WROWS, 128), jnp.float32)
    vslab = jnp.zeros((2 + nb * VROWS, 128), jnp.float32)

    vslab = vslab.at[0, :H].set(params["eln_g"].reshape(H))
    vslab = vslab.at[1, :H].set(params["eln_b"].reshape(H))

    for blk in range(nb):
        wbase = blk * WROWS
        vbase = 2 + blk * VROWS

        w_qkv = jnp.concatenate(
            [params["wq"][blk] * inv_sqrt_d, params["wk"][blk], params["wv"][blk]], axis=1)
        wslab = wslab.at[wbase:wbase + H, :3 * H].set(w_qkv)
        wslab = wslab.at[wbase + H:wbase + 2 * H, :H].set(params["wo"][blk])
        wslab = wslab.at[wbase + 2 * H:wbase + 3 * H, :4 * H].set(params["w1"][blk])
        wslab = wslab.at[wbase + 3 * H:wbase + 7 * H, :H].set(params["w2"][blk])

        b_qkv = jnp.concatenate(
            [params["bq"][blk].reshape(H) * inv_sqrt_d,
             params["bk"][blk].reshape(H), params["bv"][blk].reshape(H)])
        vslab = vslab.at[vbase + 0, :3 * H].set(b_qkv)
        vslab = vslab.at[vbase + 1, :H].set(params["bo"][blk].reshape(H))
        vslab = vslab.at[vbase + 2, :H].set(params["ln1g"][blk].reshape(H))
        vslab = vslab.at[vbase + 3, :H].set(params["ln1b"][blk].reshape(H))
        vslab = vslab.at[vbase + 4, :4 * H].set(params["b1"][blk].reshape(4 * H))
        vslab = vslab.at[vbase + 5, :H].set(params["b2"][blk].reshape(H))
        vslab = vslab.at[vbase + 6, :H].set(params["ln2g"][blk].reshape(H))
        vslab = vslab.at[vbase + 7, :H].set(params["ln2b"][blk].reshape(H))

    return wslab.astype(jnp.bfloat16), vslab


def run_blocks_pallas(h_flat, wslab, vslab):
    BS, H = h_flat.shape
    D = HEAD_DIM
    # advisory cost estimate so XLA schedules this tiny call sensibly
    flops = N_BLOCKS * (
        2 * BS * H * 3 * H                                        # fused QKV
        + N_HEADS * (2 * 2 * BS * BS * D + 2 * BS * D * H)        # scores + PV + out-proj
        + 2 * (2 * BS * H * 4 * H))                               # MLP
    transc = N_BLOCKS * (N_HEADS * BS * BS + BS * 4 * H + 8 * BS) + 2 * BS
    bytes_acc = (2 * int(h_flat.size) * h_flat.dtype.itemsize
                 + int(wslab.size) * wslab.dtype.itemsize
                 + int(vslab.size) * vslab.dtype.itemsize)

    return pl.pallas_call(
        dt_blocks_kernel,
        out_shape=jax.ShapeDtypeStruct((BS, H), jnp.float32),
        cost_estimate=pl.CostEstimate(flops=int(flops), transcendentals=int(transc),
                                      bytes_accessed=int(bytes_acc)),
    )(h_flat, wslab, vslab)


# ----------------------------- JAX glue (embeddings / heads) -----------------
def embed_tokens(params, states, actions, rewards_to_go, timesteps, dropsteps):
    B, T, _ = states.shape
    states_n = (states - params["state_mean"]) / params["state_std"]
    rtg_n = rewards_to_go / REWARD_SCALE

    time_emb = params["embed_timestep"][timesteps]                        # (B,T,H)
    state_emb = states_n @ params["w_es"] + params["b_es"] + time_emb
    action_emb = actions @ params["w_ea"] + params["b_ea"] + time_emb
    rtg_emb = rtg_n @ params["w_er"] + params["b_er"] + time_emb
    if DROP_AWARE:
        drop_emb = params["embed_dropstep"][dropsteps]
        state_emb = state_emb + drop_emb
        rtg_emb = rtg_emb + drop_emb

    # interleave (rtg, state, action) -> (B, 3T, H)
    h = jnp.stack((rtg_emb, state_emb, action_emb), axis=2).reshape(B, 3 * T, HIDDEN)
    return h


def decision_transformer_forward(params, wslab, vslab, states, actions, rewards_to_go,
                                 timesteps, dropsteps):
    B, T, _ = states.shape
    h = embed_tokens(params, states, actions, rewards_to_go, timesteps, dropsteps)
    h_flat = h.reshape(B * 3 * T, HIDDEN)                                  # wrapper-side reshape
    h_flat = run_blocks_pallas(h_flat, wslab, vslab)                       # Pallas hot path
    h = h_flat.reshape(B, T, 3, HIDDEN).transpose(0, 2, 1, 3)              # (B, 3, T, H)

    return_preds = h[:, 2] @ params["w_rtg"] + params["b_rtg"]             # from action tokens
    state_preds = h[:, 2] @ params["w_st"] + params["b_st"]
    action_preds = jnp.tanh(h[:, 1] @ params["w_ac"] + params["b_ac"])     # from state tokens
    low, high = params["act_low"], params["act_high"]
    action_preds = (action_preds + 1.0) * (high - low) / 2.0 + low         # _normalize_action
    return state_preds, action_preds, return_preds


# ----------------------------- pure-f32 reference (original module math) -----
def _reference_blocks_f32(params, h):
    B, S, H = h.shape
    N, D = N_HEADS, HEAD_DIM
    x = _layernorm(h, params["eln_g"], params["eln_b"])
    mask = jnp.tril(jnp.ones((S, S), bool))
    for blk in range(N_BLOCKS):
        q = (x @ params["wq"][blk] + params["bq"][blk]).reshape(B, S, N, D).transpose(0, 2, 1, 3)
        k = (x @ params["wk"][blk] + params["bk"][blk]).reshape(B, S, N, D).transpose(0, 2, 1, 3)
        v = (x @ params["wv"][blk] + params["bv"][blk]).reshape(B, S, N, D).transpose(0, 2, 1, 3)
        w = jnp.einsum("bnqd,bnkd->bnqk", q, k) / math.sqrt(D)
        w = jnp.where(mask, w, -jnp.inf)
        p = jax.nn.softmax(w, axis=-1)
        att = jnp.einsum("bnqk,bnkd->bnqd", p, v).transpose(0, 2, 1, 3).reshape(B, S, H)
        att = att @ params["wo"][blk] + params["bo"][blk]
        x = _layernorm(x + att, params["ln1g"][blk], params["ln1b"][blk])
        m = x @ params["w1"][blk] + params["b1"][blk]
        m = jax.nn.gelu(m, approximate=False)                   # torch nn.GELU() (exact erf)
        m = m @ params["w2"][blk] + params["b2"][blk]
        x = _layernorm(x + m, params["ln2g"][blk], params["ln2b"][blk])
    return x


# ----------------------------- deterministic parameter init ------------------
def init_params(key):
    keys = iter(jax.random.split(key, 40))

    def nrm(shape, scale=0.02):
        return jax.random.normal(next(keys), shape, jnp.float32) * scale

    nb, H = N_BLOCKS, HIDDEN
    p = {}
    p["embed_timestep"] = nrm((MAX_TIMESTEP, H))
    p["embed_dropstep"] = nrm((MAX_TIMESTEP, H))
    p["w_er"], p["b_er"] = nrm((1, H)), nrm((H,))
    p["w_es"], p["b_es"] = nrm((STATE_DIM, H)), nrm((H,))
    p["w_ea"], p["b_ea"] = nrm((ACTION_DIM, H)), nrm((H,))
    p["w_rtg"], p["b_rtg"] = nrm((H, 1)), nrm((1,))
    p["w_st"], p["b_st"] = nrm((H, STATE_DIM)), nrm((STATE_DIM,))
    p["w_ac"], p["b_ac"] = nrm((H, ACTION_DIM)), nrm((ACTION_DIM,))

    # stacked transformer-block weights (x @ W + b convention, kept >=2D)
    p["eln_g"] = jnp.ones((1, H), jnp.float32)
    p["eln_b"] = jnp.zeros((1, H), jnp.float32)
    p["wq"], p["bq"] = nrm((nb, H, H)), nrm((nb, 1, H))
    p["wk"], p["bk"] = nrm((nb, H, H)), nrm((nb, 1, H))
    p["wv"], p["bv"] = nrm((nb, H, H)), nrm((nb, 1, H))
    p["wo"], p["bo"] = nrm((nb, H, H)), nrm((nb, 1, H))
    p["ln1g"], p["ln1b"] = jnp.ones((nb, 1, H), jnp.float32), jnp.zeros((nb, 1, H), jnp.float32)
    p["w1"], p["b1"] = nrm((nb, H, 4 * H)), nrm((nb, 1, 4 * H))
    p["w2"], p["b2"] = nrm((nb, 4 * H, H)), nrm((nb, 1, H))
    p["ln2g"], p["ln2b"] = jnp.ones((nb, 1, H), jnp.float32), jnp.zeros((nb, 1, H), jnp.float32)

    p["state_mean"] = nrm((STATE_DIM,), 1.0)
    p["state_std"] = 0.5 + jnp.abs(nrm((STATE_DIM,), 1.0))
    p["act_low"] = -2.0 * jnp.ones((ACTION_DIM,), jnp.float32)
    p["act_high"] = 2.0 * jnp.ones((ACTION_DIM,), jnp.float32)
    return p


# ----------------------------- main -------------------------------------------
if __name__ == "__main__":
    key = jax.random.PRNGKey(0)
    pkey, dkey = jax.random.split(key)
    params = init_params(pkey)
    wslab, vslab = prepare_block_params(params)

    B, T = 2, CONTEXT_LEN
    ks = jax.random.split(dkey, 5)
    states = jax.random.normal(ks[0], (B, T, STATE_DIM), jnp.float32)
    actions = jax.random.normal(ks[1], (B, T, ACTION_DIM), jnp.float32)
    rewards_to_go = jax.random.uniform(ks[2], (B, T, 1), jnp.float32) * 100.0
    timesteps = jax.random.randint(ks[3], (B, T), 0, MAX_TIMESTEP)
    dropsteps = jax.random.randint(ks[4], (B, T), 0, MAX_TIMESTEP)

    state_preds, action_preds, return_preds = decision_transformer_forward(
        params, wslab, vslab, states, actions, rewards_to_go, timesteps, dropsteps)
    jax.block_until_ready((state_preds, action_preds, return_preds))

    # sanity 1: Pallas-computed stage vs. pure-JAX reference of the SAME packed math
    h_in = embed_tokens(params, states, actions, rewards_to_go, timesteps, dropsteps)
    h_flat = h_in.reshape(B * SEQ, HIDDEN)
    h_kernel = run_blocks_pallas(h_flat, wslab, vslab)
    h_packed_ref = _forward_blocks(h_flat, wslab, vslab, in_kernel=False)
    # sanity 2: loose check vs. the original-module f32 math (catches packing bugs)
    h_f32_ref = _reference_blocks_f32(params, h_in).reshape(B * SEQ, HIDDEN)
    jax.block_until_ready((h_kernel, h_packed_ref, h_f32_ref))

    assert h_kernel.shape == (B * SEQ, HIDDEN)
    assert jnp.allclose(h_kernel, h_packed_ref, atol=1e-2, rtol=1e-2), "pallas/packed-ref mismatch"
    assert jnp.allclose(h_kernel, h_f32_ref, atol=5e-2, rtol=5e-2), "pallas/f32-ref mismatch"
    assert state_preds.shape == (B, T, STATE_DIM)
    assert action_preds.shape == (B, T, ACTION_DIM)
    assert return_preds.shape == (B, T, 1)
    assert bool(jnp.all(jnp.isfinite(state_preds)))
    assert bool(jnp.all(jnp.isfinite(action_preds)))
    assert bool(jnp.all(jnp.isfinite(return_preds)))

    # TODO(synk): nn.Dropout layers are treated as identity (inference mode).
    print("KERNEL_OK")
</pallas_src>

<mosaic_0001>
module attributes {stable_mosaic.version = 11 : i64} {
  func.func @dt_blocks_kernel(%arg0: memref<48x32xf32, #tpu.memory_space<vmem>>, %arg1: memref<448x128xbf16, #tpu.memory_space<vmem>>, %arg2: memref<18x128xf32, #tpu.memory_space<vmem>>, %arg3: memref<48x32xf32, #tpu.memory_space<vmem>>) attributes {dimension_semantics = [], scalar_prefetch = 0 : i64, scratch_operands = 0 : i64, tpu.core_type = #tpu.core_type<tc>} {
    %c0 = arith.constant 0 : index
    %c0_0 = arith.constant 0 : index
    %0 = vector.load %arg0[%c0, %c0_0] : memref<48x32xf32, #tpu.memory_space<vmem>>, vector<48x32xf32>
    %c0_1 = arith.constant 0 : index
    %c0_2 = arith.constant 0 : index
    %1 = vector.load %arg2[%c0_1, %c0_2] : memref<18x128xf32, #tpu.memory_space<vmem>>, vector<1x32xf32>
    %c1 = arith.constant 1 : index
    %c0_3 = arith.constant 0 : index
    %2 = vector.load %arg2[%c1, %c0_3] : memref<18x128xf32, #tpu.memory_space<vmem>>, vector<1x32xf32>
    %cst = arith.constant dense<0.000000e+00> : vector<48xf32>
    %3 = vector.multi_reduction <add>, %0, %cst [1] : vector<48x32xf32> to vector<48xf32>
    %4 = vector.shape_cast %3 : vector<48xf32> to vector<48x1xf32>
    %cst_4 = arith.constant 3.200000e+01 : f32
    %5 = vector.broadcast %cst_4 : f32 to vector<48x1xf32>
    %6 = arith.divf %4, %5 : vector<48x1xf32>
    %7 = vector.broadcast %6 : vector<48x1xf32> to vector<48x32xf32>
    %8 = arith.subf %0, %7 : vector<48x32xf32>
    %9 = arith.mulf %8, %8 : vector<48x32xf32>
    %cst_5 = arith.constant dense<0.000000e+00> : vector<48xf32>
    %10 = vector.multi_reduction <add>, %9, %cst_5 [1] : vector<48x32xf32> to vector<48xf32>
    %11 = vector.shape_cast %10 : vector<48xf32> to vector<48x1xf32>
    %cst_6 = arith.constant 3.200000e+01 : f32
    %12 = vector.broadcast %cst_6 : f32 to vector<48x1xf32>
    %13 = arith.divf %11, %12 : vector<48x1xf32>
    %14 = vector.broadcast %6 : vector<48x1xf32> to vector<48x32xf32>
    %15 = arith.subf %0, %14 : vector<48x32xf32>
    %cst_7 = arith.constant 9.99999974E-6 : f32
    %16 = vector.broadcast %cst_7 : f32 to vector<48x1xf32>
    %17 = arith.addf %13, %16 : vector<48x1xf32>
    %18 = math.rsqrt %17 : vector<48x1xf32>
    %19 = vector.broadcast %18 : vector<48x1xf32> to vector<48x32xf32>
    %20 = arith.mulf %15, %19 : vector<48x32xf32>
    %21 = vector.broadcast %1 : vector<1x32xf32> to vector<48x32xf32>
    %22 = arith.mulf %20, %21 : vector<48x32xf32>
    %23 = vector.broadcast %2 : vector<1x32xf32> to vector<48x32xf32>
    %24 = arith.addf %22, %23 : vector<48x32xf32>
    %25 = tpu.iota {dimensions = array<i32: 0>} : vector<48x48xi32>
    %26 = tpu.iota {dimensions = array<i32: 1>} : vector<48x48xi32>
    %27 = arith.cmpi sge, %25, %26 : vector<48x48xi32>
    %c24_i32 = arith.constant 24 : i32
    %28 = vector.broadcast %c24_i32 : i32 to vector<48x48xi32>
    %29 = arith.cmpi sge, %25, %28 : vector<48x48xi32>
    %c24_i32_8 = arith.constant 24 : i32
    %30 = vector.broadcast %c24_i32_8 : i32 to vector<48x48xi32>
    %31 = arith.cmpi sge, %26, %30 : vector<48x48xi32>
    %32 = arith.andi %29, %31 : vector<48x48xi1>
    %cst_9 = arith.constant dense<true> : vector<48x48xi1>
    %33 = arith.xori %29, %cst_9 : vector<48x48xi1>
    %cst_10 = arith.constant dense<true> : vector<48x48xi1>
    %34 = arith.xori %31, %cst_10 : vector<48x48xi1>
    %35 = arith.andi %33, %34 : vector<48x48xi1>
    %36 = arith.ori %32, %35 : vector<48x48xi1>
    %37 = arith.andi %27, %36 : vector<48x48xi1>
    %38 = arith.truncf %24 : vector<48x32xf32> to vector<48x32xbf16>
    %c0_11 = arith.constant 0 : index
    %c0_12 = arith.constant 0 : index
    %39 = vector.load %arg1[%c0_11, %c0_12] : memref<448x128xbf16, #tpu.memory_space<vmem>>, vector<32x96xbf16>
    %cst_13 = arith.constant dense<0.000000e+00> : vector<48x96xf32>
    %40 = tpu.matmul %38, %39, %cst_13 {dimension_numbers = #tpu.dot_dimension_numbers<[1], [0], [0], [1], [0, 0, 1, 1], [], []>} : vector<48x32xbf16>, vector<32x96xbf16>, vector<48x96xf32> -> vector<48x96xf32>
    %c2 = arith.constant 2 : index
    %c0_14 = arith.constant 0 : index
    %41 = vector.load %arg2[%c2, %c0_14] : memref<18x128xf32, #tpu.memory_space<vmem>>, vector<1x96xf32>
    %42 = vector.broadcast %41 : vector<1x96xf32> to vector<48x96xf32>
    %43 = arith.addf %40, %42 : vector<48x96xf32>
    %cst_15 = arith.constant 0.000000e+00 : f32
    %44 = vector.broadcast %cst_15 : f32 to vector<48x32xf32>
    %45 = vector.extract_strided_slice %43 {offsets = [0, 0], sizes = [48, 16], strides = [1, 1]} : vector<48x96xf32> to vector<48x16xf32>
    %46 = vector.extract_strided_slice %43 {offsets = [0, 32], sizes = [48, 16], strides = [1, 1]} : vector<48x96xf32> to vector<48x16xf32>
    %47 = vector.extract_strided_slice %43 {offsets = [0, 64], sizes = [48, 16], strides = [1, 1]} : vector<48x96xf32> to vector<48x16xf32>
    %48 = arith.truncf %45 : vector<48x16xf32> to vector<48x16xbf16>
    %49 = arith.truncf %46 : vector<48x16xf32> to vector<48x16xbf16>
    %cst_16 = arith.constant dense<0.000000e+00> : vector<48x48xf32>
    %50 = tpu.matmul %48, %49, %cst_16 {dimension_numbers = #tpu.dot_dimension_numbers<[1], [1], [0], [0], [0, 0, 1, 0], [], []>} : vector<48x16xbf16>, vector<48x16xbf16>, vector<48x48xf32> -> vector<48x48xf32>
    %cst_17 = arith.constant -1.000000e+30 : f32
    %51 = vector.broadcast %cst_17 : f32 to vector<48x48xf32>
    %52 = arith.select %37, %50, %51 : vector<48x48xi1>, vector<48x48xf32>
    %cst_18 = arith.constant dense<0xFF800000> : vector<48xf32>
    %53 = vector.multi_reduction <maximumf>, %52, %cst_18 [1] : vector<48x48xf32> to vector<48xf32>
    %54 = vector.shape_cast %53 : vector<48xf32> to vector<48x1xf32>
    %55 = vector.broadcast %54 : vector<48x1xf32> to vector<48x48xf32>
    %56 = arith.subf %52, %55 : vector<48x48xf32>
    %57 = math.exp %56 : vector<48x48xf32>
    %cst_19 = arith.constant dense<0.000000e+00> : vector<48xf32>
    %58 = vector.multi_reduction <add>, %57, %cst_19 [1] : vector<48x48xf32> to vector<48xf32>
    %59 = vector.shape_cast %58 : vector<48xf32> to vector<48x1xf32>
    %60 = tpu.reciprocal %59 {approx = true} : vector<48x1xf32> -> vector<48x1xf32>
    %61 = vector.broadcast %60 : vector<48x1xf32> to vector<48x48xf32>
    %62 = arith.mulf %57, %61 : vector<48x48xf32>
    %63 = arith.truncf %62 : vector<48x48xf32> to vector<48x48xbf16>
    %64 = arith.truncf %47 : vector<48x16xf32> to vector<48x16xbf16>
    %cst_20 = arith.constant dense<0.000000e+00> : vector<48x16xf32>
    %65 = tpu.matmul %63, %64, %cst_20 {dimension_numbers = #tpu.dot_dimension_numbers<[1], [0], [0], [1], [0, 0, 1, 1], [], []>} : vector<48x48xbf16>, vector<48x16xbf16>, vector<48x16xf32> -> vector<48x16xf32>
    %c32 = arith.constant 32 : index
    %c0_21 = arith.constant 0 : index
    %66 = vector.load %arg1[%c32, %c0_21] : memref<448x128xbf16, #tpu.memory_space<vmem>>, vector<16x32xbf16>
    %67 = arith.truncf %65 : vector<48x16xf32> to vector<48x16xbf16>
    %cst_22 = arith.constant dense<0.000000e+00> : vector<48x32xf32>
    %68 = tpu.matmul %67, %66, %cst_22 {dimension_numbers = #tpu.dot_dimension_numbers<[1], [0], [0], [1], [0, 0, 1, 1], [], []>} : vector<48x16xbf16>, vector<16x32xbf16>, vector<48x32xf32> -> vector<48x32xf32>
    %69 = arith.addf %44, %68 : vector<48x32xf32>
    %70 = vector.extract_strided_slice %43 {offsets = [0, 16], sizes = [48, 16], strides = [1, 1]} : vector<48x96xf32> to vector<48x16xf32>
    %71 = vector.extract_strided_slice %43 {offsets = [0, 48], sizes = [48, 16], strides = [1, 1]} : vector<48x96xf32> to vector<48x16xf32>
    %72 = vector.extract_strided_slice %43 {offsets = [0, 80], sizes = [48, 16], strides = [1, 1]} : vector<48x96xf32> to vector<48x16xf32>
    %73 = arith.truncf %70 : vector<48x16xf32> to vector<48x16xbf16>
    %74 = arith.truncf %71 : vector<48x16xf32> to vector<48x16xbf16>
    %cst_23 = arith.constant dense<0.000000e+00> : vector<48x48xf32>
    %75 = tpu.matmul %73, %74, %cst_23 {dimension_numbers = #tpu.dot_dimension_numbers<[1], [1], [0], [0], [0, 0, 1, 0], [], []>} : vector<48x16xbf16>, vector<48x16xbf16>, vector<48x48xf32> -> vector<48x48xf32>
    %cst_24 = arith.constant -1.000000e+30 : f32
    %76 = vector.broadcast %cst_24 : f32 to vector<48x48xf32>
    %77 = arith.select %37, %75, %76 : vector<48x48xi1>, vector<48x48xf32>
    %cst_25 = arith.constant dense<0xFF800000> : vector<48xf32>
    %78 = vector.multi_reduction <maximumf>, %77, %cst_25 [1] : vector<48x48xf32> to vector<48xf32>
    %79 = vector.shape_cast %78 : vector<48xf32> to vector<48x1xf32>
    %80 = vector.broadcast %79 : vector<48x1xf32> to vector<48x48xf32>
    %81 = arith.subf %77, %80 : vector<48x48xf32>
    %82 = math.exp %81 : vector<48x48xf32>
    %cst_26 = arith.constant dense<0.000000e+00> : vector<48xf32>
    %83 = vector.multi_reduction <add>, %82, %cst_26 [1] : vector<48x48xf32> to vector<48xf32>
    %84 = vector.shape_cast %83 : vector<48xf32> to vector<48x1xf32>
    %85 = tpu.reciprocal %84 {approx = true} : vector<48x1xf32> -> vector<48x1xf32>
    %86 = vector.broadcast %85 : vector<48x1xf32> to vector<48x48xf32>
    %87 = arith.mulf %82, %86 : vector<48x48xf32>
    %88 = arith.truncf %87 : vector<48x48xf32> to vector<48x48xbf16>
    %89 = arith.truncf %72 : vector<48x16xf32> to vector<48x16xbf16>
    %cst_27 = arith.constant dense<0.000000e+00> : vector<48x16xf32>
    %90 = tpu.matmul %88, %89, %cst_27 {dimension_numbers = #tpu.dot_dimension_numbers<[1], [0], [0], [1], [0, 0, 1, 1], [], []>} : vector<48x48xbf16>, vector<48x16xbf16>, vector<48x16xf32> -> vector<48x16xf32>
    %c48 = arith.constant 48 : index
    %c0_28 = arith.constant 0 : index
    %91 = vector.load %arg1[%c48, %c0_28] : memref<448x128xbf16, #tpu.memory_space<vmem>>, vector<16x32xbf16>
    %92 = arith.truncf %90 : vector<48x16xf32> to vector<48x16xbf16>
    %cst_29 = arith.constant dense<0.000000e+00> : vector<48x32xf32>
    %93 = tpu.matmul %92, %91, %cst_29 {dimension_numbers = #tpu.dot_dimension_numbers<[1], [0], [0], [1], [0, 0, 1, 1], [], []>} : vector<48x16xbf16>, vector<16x32xbf16>, vector<48x32xf32> -> vector<48x32xf32>
    %94 = arith.addf %69, %93 : vector<48x32xf32>
    %c3 = arith.constant 3 : index
    %c0_30 = arith.constant 0 : index
    %95 = vector.load %arg2[%c3, %c0_30] : memref<18x128xf32, #tpu.memory_space<vmem>>, vector<1x32xf32>
    %96 = vector.broadcast %95 : vector<1x32xf32> to vector<48x32xf32>
    %97 = arith.addf %94, %96 : vector<48x32xf32>
    %98 = arith.addf %24, %97 : vector<48x32xf32>
    %c4 = arith.constant 4 : index
    %c0_31 = arith.constant 0 : index
    %99 = vector.load %arg2[%c4, %c0_31] : memref<18x128xf32, #tpu.memory_space<vmem>>, vector<1x32xf32>
    %c5 = arith.constant 5 : index
    %c0_32 = arith.constant 0 : index
    %100 = vector.load %arg2[%c5, %c0_32] : memref<18x128xf32, #tpu.memory_space<vmem>>, vector<1x32xf32>
    %cst_33 = arith.constant dense<0.000000e+00> : vector<48xf32>
    %101 = vector.multi_reduction <add>, %98, %cst_33 [1] : vector<48x32xf32> to vector<48xf32>
    %102 = vector.shape_cast %101 : vector<48xf32> to vector<48x1xf32>
    %cst_34 = arith.constant 3.200000e+01 : f32
    %103 = vector.broadcast %cst_34 : f32 to vector<48x1xf32>
    %104 = arith.divf %102, %103 : vector<48x1xf32>
    %105 = vector.broadcast %104 : vector<48x1xf32> to vector<48x32xf32>
    %106 = arith.subf %98, %105 : vector<48x32xf32>
    %107 = arith.mulf %106, %106 : vector<48x32xf32>
    %cst_35 = arith.constant dense<0.000000e+00> : vector<48xf32>
    %108 = vector.multi_reduction <add>, %107, %cst_35 [1] : vector<48x32xf32> to vector<48xf32>
    %109 = vector.shape_cast %108 : vector<48xf32> to vector<48x1xf32>
    %cst_36 = arith.constant 3.200000e+01 : f32
    %110 = vector.broadcast %cst_36 : f32 to vector<48x1xf32>
    %111 = arith.divf %109, %110 : vector<48x1xf32>
    %112 = vector.broadcast %104 : vector<48x1xf32> to vector<48x32xf32>
    %113 = arith.subf %98, %112 : vector<48x32xf32>
    %cst_37 = arith.constant 9.99999974E-6 : f32
    %114 = vector.broadcast %cst_37 : f32 to vector<48x1xf32>
    %115 = arith.addf %111, %114 : vector<48x1xf32>
    %116 = math.rsqrt %115 : vector<48x1xf32>
    %117 = vector.broadcast %116 : vector<48x1xf32> to vector<48x32xf32>
    %118 = arith.mulf %113, %117 : vector<48x32xf32>
    %119 = vector.broadcast %99 : vector<1x32xf32> to vector<48x32xf32>
    %120 = arith.mulf %118, %119 : vector<48x32xf32>
    %121 = vector.broadcast %100 : vector<1x32xf32> to vector<48x32xf32>
    %122 = arith.addf %120, %121 : vector<48x32xf32>
    %123 = arith.truncf %122 : vector<48x32xf32> to vector<48x32xbf16>
    %c64 = arith.constant 64 : index
    %c0_38 = arith.constant 0 : index
    %124 = vector.load %arg1[%c64, %c0_38] : memref<448x128xbf16, #tpu.memory_space<vmem>>, vector<32x128xbf16>
    %cst_39 = arith.constant dense<0.000000e+00> : vector<48x128xf32>
    %125 = tpu.matmul %123, %124, %cst_39 {dimension_numbers = #tpu.dot_dimension_numbers<[1], [0], [0], [1], [0, 0, 1, 1], [], []>} : vector<48x32xbf16>, vector<32x128xbf16>, vector<48x128xf32> -> vector<48x128xf32>
    %c6 = arith.constant 6 : index
    %c0_40 = arith.constant 0 : index
    %126 = vector.load %arg2[%c6, %c0_40] : memref<18x128xf32, #tpu.memory_space<vmem>>, vector<1x128xf32>
    %127 = vector.broadcast %126 : vector<1x128xf32> to vector<48x128xf32>
    %128 = arith.addf %125, %127 : vector<48x128xf32>
    %129 = arith.mulf %128, %128 : vector<48x128xf32>
    %130 = arith.mulf %128, %129 : vector<48x128xf32>
    %cst_41 = arith.constant 4.471500e-02 : f32
    %131 = vector.broadcast %cst_41 : f32 to vector<48x128xf32>
    %132 = arith.mulf %131, %130 : vector<48x128xf32>
    %133 = arith.addf %128, %132 : vector<48x128xf32>
    %cst_42 = arith.constant 0.797884583 : f32
    %134 = vector.broadcast %cst_42 : f32 to vector<48x128xf32>
    %135 = arith.mulf %134, %133 : vector<48x128xf32>
    %136 = math.tanh %135 : vector<48x128xf32>
    %cst_43 = arith.constant 1.000000e+00 : f32
    %137 = vector.broadcast %cst_43 : f32 to vector<48x128xf32>
    %138 = arith.addf %137, %136 : vector<48x128xf32>
    %cst_44 = arith.constant 5.000000e-01 : f32
    %139 = vector.broadcast %cst_44 : f32 to vector<48x128xf32>
    %140 = arith.mulf %139, %138 : vector<48x128xf32>
    %141 = arith.mulf %128, %140 : vector<48x128xf32>
    %142 = arith.truncf %141 : vector<48x128xf32> to vector<48x128xbf16>
    %c96 = arith.constant 96 : index
    %c0_45 = arith.constant 0 : index
    %143 = vector.load %arg1[%c96, %c0_45] : memref<448x128xbf16, #tpu.memory_space<vmem>>, vector<128x32xbf16>
    %cst_46 = arith.constant dense<0.000000e+00> : vector<48x32xf32>
    %144 = tpu.matmul %142, %143, %cst_46 {dimension_numbers = #tpu.dot_dimension_numbers<[1], [0], [0], [1], [0, 0, 1, 1], [], []>} : vector<48x128xbf16>, vector<128x32xbf16>, vector<48x32xf32> -> vector<48x32xf32>
    %c7 = arith.constant 7 : index
    %c0_47 = arith.constant 0 : index
    %145 = vector.load %arg2[%c7, %c0_47] : memref<18x128xf32, #tpu.memory_space<vmem>>, vector<1x32xf32>
    %146 = vector.broadcast %145 : vector<1x32xf32> to vector<48x32xf32>
    %147 = arith.addf %144, %146 : vector<48x32xf32>
    %148 = arith.addf %122, %147 : vector<48x32xf32>
    %c8 = arith.constant 8 : index
    %c0_48 = arith.constant 0 : index
    %149 = vector.load %arg2[%c8, %c0_48] : memref<18x128xf32, #tpu.memory_space<vmem>>, vector<1x32xf32>
    %c9 = arith.constant 9 : index
    %c0_49 = arith.constant 0 : index
    %150 = vector.load %arg2[%c9, %c0_49] : memref<18x128xf32, #tpu.memory_space<vmem>>, vector<1x32xf32>
    %cst_50 = arith.constant dense<0.000000e+00> : vector<48xf32>
    %151 = vector.multi_reduction <add>, %148, %cst_50 [1] : vector<48x32xf32> to vector<48xf32>
    %152 = vector.shape_cast %151 : vector<48xf32> to vector<48x1xf32>
    %cst_51 = arith.constant 3.200000e+01 : f32
    %153 = vector.broadcast %cst_51 : f32 to vector<48x1xf32>
    %154 = arith.divf %152, %153 : vector<48x1xf32>
    %155 = vector.broadcast %154 : vector<48x1xf32> to vector<48x32xf32>
    %156 = arith.subf %148, %155 : vector<48x32xf32>
    %157 = arith.mulf %156, %156 : vector<48x32xf32>
    %cst_52 = arith.constant dense<0.000000e+00> : vector<48xf32>
    %158 = vector.multi_reduction <add>, %157, %cst_52 [1] : vector<48x32xf32> to vector<48xf32>
    %159 = vector.shape_cast %158 : vector<48xf32> to vector<48x1xf32>
    %cst_53 = arith.constant 3.200000e+01 : f32
    %160 = vector.broadcast %cst_53 : f32 to vector<48x1xf32>
    %161 = arith.divf %159, %160 : vector<48x1xf32>
    %162 = vector.broadcast %154 : vector<48x1xf32> to vector<48x32xf32>
    %163 = arith.subf %148, %162 : vector<48x32xf32>
    %cst_54 = arith.constant 9.99999974E-6 : f32
    %164 = vector.broadcast %cst_54 : f32 to vector<48x1xf32>
    %165 = arith.addf %161, %164 : vector<48x1xf32>
    %166 = math.rsqrt %165 : vector<48x1xf32>
    %167 = vector.broadcast %166 : vector<48x1xf32> to vector<48x32xf32>
    %168 = arith.mulf %163, %167 : vector<48x32xf32>
    %169 = vector.broadcast %149 : vector<1x32xf32> to vector<48x32xf32>
    %170 = arith.mulf %168, %169 : vector<48x32xf32>
    %171 = vector.broadcast %150 : vector<1x32xf32> to vector<48x32xf32>
    %172 = arith.addf %170, %171 : vector<48x32xf32>
    %173 = arith.truncf %172 : vector<48x32xf32> to vector<48x32xbf16>
    %c224 = arith.constant 224 : index
    %c0_55 = arith.constant 0 : index
    %174 = vector.load %arg1[%c224, %c0_55] : memref<448x128xbf16, #tpu.memory_space<vmem>>, vector<32x96xbf16>
    %cst_56 = arith.constant dense<0.000000e+00> : vector<48x96xf32>
    %175 = tpu.matmul %173, %174, %cst_56 {dimension_numbers = #tpu.dot_dimension_numbers<[1], [0], [0], [1], [0, 0, 1, 1], [], []>} : vector<48x32xbf16>, vector<32x96xbf16>, vector<48x96xf32> -> vector<48x96xf32>
    %c10 = arith.constant 10 : index
    %c0_57 = arith.constant 0 : index
    %176 = vector.load %arg2[%c10, %c0_57] : memref<18x128xf32, #tpu.memory_space<vmem>>, vector<1x96xf32>
    %177 = vector.broadcast %176 : vector<1x96xf32> to vector<48x96xf32>
    %178 = arith.addf %175, %177 : vector<48x96xf32>
    %cst_58 = arith.constant 0.000000e+00 : f32
    %179 = vector.broadcast %cst_58 : f32 to vector<48x32xf32>
    %180 = vector.extract_strided_slice %178 {offsets = [0, 0], sizes = [48, 16], strides = [1, 1]} : vector<48x96xf32> to vector<48x16xf32>
    %181 = vector.extract_strided_slice %178 {offsets = [0, 32], sizes = [48, 16], strides = [1, 1]} : vector<48x96xf32> to vector<48x16xf32>
    %182 = vector.extract_strided_slice %178 {offsets = [0, 64], sizes = [48, 16], strides = [1, 1]} : vector<48x96xf32> to vector<48x16xf32>
    %183 = arith.truncf %180 : vector<48x16xf32> to vector<48x16xbf16>
    %184 = arith.truncf %181 : vector<48x16xf32> to vector<48x16xbf16>
    %cst_59 = arith.constant dense<0.000000e+00> : vector<48x48xf32>
    %185 = tpu.matmul %183, %184, %cst_59 {dimension_numbers = #tpu.dot_dimension_numbers<[1], [1], [0], [0], [0, 0, 1, 0], [], []>} : vector<48x16xbf16>, vector<48x16xbf16>, vector<48x48xf32> -> vector<48x48xf32>
    %cst_60 = arith.constant -1.000000e+30 : f32
    %186 = vector.broadcast %cst_60 : f32 to vector<48x48xf32>
    %187 = arith.select %37, %185, %186 : vector<48x48xi1>, vector<48x48xf32>
    %cst_61 = arith.constant dense<0xFF800000> : vector<48xf32>
    %188 = vector.multi_reduction <maximumf>, %187, %cst_61 [1] : vector<48x48xf32> to vector<48xf32>
    %189 = vector.shape_cast %188 : vector<48xf32> to vector<48x1xf32>
    %190 = vector.broadcast %189 : vector<48x1xf32> to vector<48x48xf32>
    %191 = arith.subf %187, %190 : vector<48x48xf32>
    %192 = math.exp %191 : vector<48x48xf32>
    %cst_62 = arith.constant dense<0.000000e+00> : vector<48xf32>
    %193 = vector.multi_reduction <add>, %192, %cst_62 [1] : vector<48x48xf32> to vector<48xf32>
    %194 = vector.shape_cast %193 : vector<48xf32> to vector<48x1xf32>
    %195 = tpu.reciprocal %194 {approx = true} : vector<48x1xf32> -> vector<48x1xf32>
    %196 = vector.broadcast %195 : vector<48x1xf32> to vector<48x48xf32>
    %197 = arith.mulf %192, %196 : vector<48x48xf32>
    %198 = arith.truncf %197 : vector<48x48xf32> to vector<48x48xbf16>
    %199 = arith.truncf %182 : vector<48x16xf32> to vector<48x16xbf16>
    %cst_63 = arith.constant dense<0.000000e+00> : vector<48x16xf32>
    %200 = tpu.matmul %198, %199, %cst_63 {dimension_numbers = #tpu.dot_dimension_numbers<[1], [0], [0], [1], [0, 0, 1, 1], [], []>} : vector<48x48xbf16>, vector<48x16xbf16>, vector<48x16xf32> -> vector<48x16xf32>
    %c256 = arith.constant 256 : index
    %c0_64 = arith.constant 0 : index
    %201 = vector.load %arg1[%c256, %c0_64] : memref<448x128xbf16, #tpu.memory_space<vmem>>, vector<16x32xbf16>
    %202 = arith.truncf %200 : vector<48x16xf32> to vector<48x16xbf16>
    %cst_65 = arith.constant dense<0.000000e+00> : vector<48x32xf32>
    %203 = tpu.matmul %202, %201, %cst_65 {dimension_numbers = #tpu.dot_dimension_numbers<[1], [0], [0], [1], [0, 0, 1, 1], [], []>} : vector<48x16xbf16>, vector<16x32xbf16>, vector<48x32xf32> -> vector<48x32xf32>
    %204 = arith.addf %179, %203 : vector<48x32xf32>
    %205 = vector.extract_strided_slice %178 {offsets = [0, 16], sizes = [48, 16], strides = [1, 1]} : vector<48x96xf32> to vector<48x16xf32>
    %206 = vector.extract_strided_slice %178 {offsets = [0, 48], sizes = [48, 16], strides = [1, 1]} : vector<48x96xf32> to vector<48x16xf32>
    %207 = vector.extract_strided_slice %178 {offsets = [0, 80], sizes = [48, 16], strides = [1, 1]} : vector<48x96xf32> to vector<48x16xf32>
    %208 = arith.truncf %205 : vector<48x16xf32> to vector<48x16xbf16>
    %209 = arith.truncf %206 : vector<48x16xf32> to vector<48x16xbf16>
    %cst_66 = arith.constant dense<0.000000e+00> : vector<48x48xf32>
    %210 = tpu.matmul %208, %209, %cst_66 {dimension_numbers = #tpu.dot_dimension_numbers<[1], [1], [0], [0], [0, 0, 1, 0], [], []>} : vector<48x16xbf16>, vector<48x16xbf16>, vector<48x48xf32> -> vector<48x48xf32>
    %cst_67 = arith.constant -1.000000e+30 : f32
    %211 = vector.broadcast %cst_67 : f32 to vector<48x48xf32>
    %212 = arith.select %37, %210, %211 : vector<48x48xi1>, vector<48x48xf32>
    %cst_68 = arith.constant dense<0xFF800000> : vector<48xf32>
    %213 = vector.multi_reduction <maximumf>, %212, %cst_68 [1] : vector<48x48xf32> to vector<48xf32>
    %214 = vector.shape_cast %213 : vector<48xf32> to vector<48x1xf32>
    %215 = vector.broadcast %214 : vector<48x1xf32> to vector<48x48xf32>
    %216 = arith.subf %212, %215 : vector<48x48xf32>
    %217 = math.exp %216 : vector<48x48xf32>
    %cst_69 = arith.constant dense<0.000000e+00> : vector<48xf32>
    %218 = vector.multi_reduction <add>, %217, %cst_69 [1] : vector<48x48xf32> to vector<48xf32>
    %219 = vector.shape_cast %218 : vector<48xf32> to vector<48x1xf32>
    %220 = tpu.reciprocal %219 {approx = true} : vector<48x1xf32> -> vector<48x1xf32>
    %221 = vector.broadcast %220 : vector<48x1xf32> to vector<48x48xf32>
    %222 = arith.mulf %217, %221 : vector<48x48xf32>
    %223 = arith.truncf %222 : vector<48x48xf32> to vector<48x48xbf16>
    %224 = arith.truncf %207 : vector<48x16xf32> to vector<48x16xbf16>
    %cst_70 = arith.constant dense<0.000000e+00> : vector<48x16xf32>
    %225 = tpu.matmul %223, %224, %cst_70 {dimension_numbers = #tpu.dot_dimension_numbers<[1], [0], [0], [1], [0, 0, 1, 1], [], []>} : vector<48x48xbf16>, vector<48x16xbf16>, vector<48x16xf32> -> vector<48x16xf32>
    %c272 = arith.constant 272 : index
    %c0_71 = arith.constant 0 : index
    %226 = vector.load %arg1[%c272, %c0_71] : memref<448x128xbf16, #tpu.memory_space<vmem>>, vector<16x32xbf16>
    %227 = arith.truncf %225 : vector<48x16xf32> to vector<48x16xbf16>
    %cst_72 = arith.constant dense<0.000000e+00> : vector<48x32xf32>
    %228 = tpu.matmul %227, %226, %cst_72 {dimension_numbers = #tpu.dot_dimension_numbers<[1], [0], [0], [1], [0, 0, 1, 1], [], []>} : vector<48x16xbf16>, vector<16x32xbf16>, vector<48x32xf32> -> vector<48x32xf32>
    %229 = arith.addf %204, %228 : vector<48x32xf32>
    %c11 = arith.constant 11 : index
    %c0_73 = arith.constant 0 : index
    %230 = vector.load %arg2[%c11, %c0_73] : memref<18x128xf32, #tpu.memory_space<vmem>>, vector<1x32xf32>
    %231 = vector.broadcast %230 : vector<1x32xf32> to vector<48x32xf32>
    %232 = arith.addf %229, %231 : vector<48x32xf32>
    %233 = arith.addf %172, %232 : vector<48x32xf32>
    %c12 = arith.constant 12 : index
    %c0_74 = arith.constant 0 : index
    %234 = vector.load %arg2[%c12, %c0_74] : memref<18x128xf32, #tpu.memory_space<vmem>>, vector<1x32xf32>
    %c13 = arith.constant 13 : index
    %c0_75 = arith.constant 0 : index
    %235 = vector.load %arg2[%c13, %c0_75] : memref<18x128xf32, #tpu.memory_space<vmem>>, vector<1x32xf32>
    %cst_76 = arith.constant dense<0.000000e+00> : vector<48xf32>
    %236 = vector.multi_reduction <add>, %233, %cst_76 [1] : vector<48x32xf32> to vector<48xf32>
    %237 = vector.shape_cast %236 : vector<48xf32> to vector<48x1xf32>
    %cst_77 = arith.constant 3.200000e+01 : f32
    %238 = vector.broadcast %cst_77 : f32 to vector<48x1xf32>
    %239 = arith.divf %237, %238 : vector<48x1xf32>
    %240 = vector.broadcast %239 : vector<48x1xf32> to vector<48x32xf32>
    %241 = arith.subf %233, %240 : vector<48x32xf32>
    %242 = arith.mulf %241, %241 : vector<48x32xf32>
    %cst_78 = arith.constant dense<0.000000e+00> : vector<48xf32>
    %243 = vector.multi_reduction <add>, %242, %cst_78 [1] : vector<48x32xf32> to vector<48xf32>
    %244 = vector.shape_cast %243 : vector<48xf32> to vector<48x1xf32>
    %cst_79 = arith.constant 3.200000e+01 : f32
    %245 = vector.broadcast %cst_79 : f32 to vector<48x1xf32>
    %246 = arith.divf %244, %245 : vector<48x1xf32>
    %247 = vector.broadcast %239 : vector<48x1xf32> to vector<48x32xf32>
    %248 = arith.subf %233, %247 : vector<48x32xf32>
    %cst_80 = arith.constant 9.99999974E-6 : f32
    %249 = vector.broadcast %cst_80 : f32 to vector<48x1xf32>
    %250 = arith.addf %246, %249 : vector<48x1xf32>
    %251 = math.rsqrt %250 : vector<48x1xf32>
    %252 = vector.broadcast %251 : vector<48x1xf32> to vector<48x32xf32>
    %253 = arith.mulf %248, %252 : vector<48x32xf32>
    %254 = vector.broadcast %234 : vector<1x32xf32> to vector<48x32xf32>
    %255 = arith.mulf %253, %254 : vector<48x32xf32>
    %256 = vector.broadcast %235 : vector<1x32xf32> to vector<48x32xf32>
    %257 = arith.addf %255, %256 : vector<48x32xf32>
    %258 = arith.truncf %257 : vector<48x32xf32> to vector<48x32xbf16>
    %c288 = arith.constant 288 : index
    %c0_81 = arith.constant 0 : index
    %259 = vector.load %arg1[%c288, %c0_81] : memref<448x128xbf16, #tpu.memory_space<vmem>>, vector<32x128xbf16>
    %cst_82 = arith.constant dense<0.000000e+00> : vector<48x128xf32>
    %260 = tpu.matmul %258, %259, %cst_82 {dimension_numbers = #tpu.dot_dimension_numbers<[1], [0], [0], [1], [0, 0, 1, 1], [], []>} : vector<48x32xbf16>, vector<32x128xbf16>, vector<48x128xf32> -> vector<48x128xf32>
    %c14 = arith.constant 14 : index
    %c0_83 = arith.constant 0 : index
    %261 = vector.load %arg2[%c14, %c0_83] : memref<18x128xf32, #tpu.memory_space<vmem>>, vector<1x128xf32>
    %262 = vector.broadcast %261 : vector<1x128xf32> to vector<48x128xf32>
    %263 = arith.addf %260, %262 : vector<48x128xf32>
    %264 = arith.mulf %263, %263 : vector<48x128xf32>
    %265 = arith.mulf %263, %264 : vector<48x128xf32>
    %cst_84 = arith.constant 4.471500e-02 : f32
    %266 = vector.broadcast %cst_84 : f32 to vector<48x128xf32>
    %267 = arith.mulf %266, %265 : vector<48x128xf32>
    %268 = arith.addf %263, %267 : vector<48x128xf32>
    %cst_85 = arith.constant 0.797884583 : f32
    %269 = vector.broadcast %cst_85 : f32 to vector<48x128xf32>
    %270 = arith.mulf %269, %268 : vector<48x128xf32>
    %271 = math.tanh %270 : vector<48x128xf32>
    %cst_86 = arith.constant 1.000000e+00 : f32
    %272 = vector.broadcast %cst_86 : f32 to vector<48x128xf32>
    %273 = arith.addf %272, %271 : vector<48x128xf32>
    %cst_87 = arith.constant 5.000000e-01 : f32
    %274 = vector.broadcast %cst_87 : f32 to vector<48x128xf32>
    %275 = arith.mulf %274, %273 : vector<48x128xf32>
    %276 = arith.mulf %263, %275 : vector<48x128xf32>
    %277 = arith.truncf %276 : vector<48x128xf32> to vector<48x128xbf16>
    %c320 = arith.constant 320 : index
    %c0_88 = arith.constant 0 : index
    %278 = vector.load %arg1[%c320, %c0_88] : memref<448x128xbf16, #tpu.memory_space<vmem>>, vector<128x32xbf16>
    %cst_89 = arith.constant dense<0.000000e+00> : vector<48x32xf32>
    %279 = tpu.matmul %277, %278, %cst_89 {dimension_numbers = #tpu.dot_dimension_numbers<[1], [0], [0], [1], [0, 0, 1, 1], [], []>} : vector<48x128xbf16>, vector<128x32xbf16>, vector<48x32xf32> -> vector<48x32xf32>
    %c15 = arith.constant 15 : index
    %c0_90 = arith.constant 0 : index
    %280 = vector.load %arg2[%c15, %c0_90] : memref<18x128xf32, #tpu.memory_space<vmem>>, vector<1x32xf32>
    %281 = vector.broadcast %280 : vector<1x32xf32> to vector<48x32xf32>
    %282 = arith.addf %279, %281 : vector<48x32xf32>
    %283 = arith.addf %257, %282 : vector<48x32xf32>
    %c16 = arith.constant 16 : index
    %c0_91 = arith.constant 0 : index
    %284 = vector.load %arg2[%c16, %c0_91] : memref<18x128xf32, #tpu.memory_space<vmem>>, vector<1x32xf32>
    %c17 = arith.constant 17 : index
    %c0_92 = arith.constant 0 : index
    %285 = vector.load %arg2[%c17, %c0_92] : memref<18x128xf32, #tpu.memory_space<vmem>>, vector<1x32xf32>
    %cst_93 = arith.constant dense<0.000000e+00> : vector<48xf32>
    %286 = vector.multi_reduction <add>, %283, %cst_93 [1] : vector<48x32xf32> to vector<48xf32>
    %287 = vector.shape_cast %286 : vector<48xf32> to vector<48x1xf32>
    %cst_94 = arith.constant 3.200000e+01 : f32
    %288 = vector.broadcast %cst_94 : f32 to vector<48x1xf32>
    %289 = arith.divf %287, %288 : vector<48x1xf32>
    %290 = vector.broadcast %289 : vector<48x1xf32> to vector<48x32xf32>
    %291 = arith.subf %283, %290 : vector<48x32xf32>
    %292 = arith.mulf %291, %291 : vector<48x32xf32>
    %cst_95 = arith.constant dense<0.000000e+00> : vector<48xf32>
    %293 = vector.multi_reduction <add>, %292, %cst_95 [1] : vector<48x32xf32> to vector<48xf32>
    %294 = vector.shape_cast %293 : vector<48xf32> to vector<48x1xf32>
    %cst_96 = arith.constant 3.200000e+01 : f32
    %295 = vector.broadcast %cst_96 : f32 to vector<48x1xf32>
    %296 = arith.divf %294, %295 : vector<48x1xf32>
    %297 = vector.broadcast %289 : vector<48x1xf32> to vector<48x32xf32>
    %298 = arith.subf %283, %297 : vector<48x32xf32>
    %cst_97 = arith.constant 9.99999974E-6 : f32
    %299 = vector.broadcast %cst_97 : f32 to vector<48x1xf32>
    %300 = arith.addf %296, %299 : vector<48x1xf32>
    %301 = math.rsqrt %300 : vector<48x1xf32>
    %302 = vector.broadcast %301 : vector<48x1xf32> to vector<48x32xf32>
    %303 = arith.mulf %298, %302 : vector<48x32xf32>
    %304 = vector.broadcast %284 : vector<1x32xf32> to vector<48x32xf32>
    %305 = arith.mulf %303, %304 : vector<48x32xf32>
    %306 = vector.broadcast %285 : vector<1x32xf32> to vector<48x32xf32>
    %307 = arith.addf %305, %306 : vector<48x32xf32>
    %c0_98 = arith.constant 0 : index
    %c0_99 = arith.constant 0 : index
    %308 = vector.load %arg3[%c0_98, %c0_99] : memref<48x32xf32, #tpu.memory_space<vmem>>, vector<48x32xf32>
    tpu.vector_store %arg3[%c0_98, %c0_99], %307 {strides = array<i32>} : memref<48x32xf32, #tpu.memory_space<vmem>>, vector<48x32xf32>,
    return
  }
}

</mosaic_0001>

<bundles_post_ra>
// kernel: tpu_custom_call.1
= control target key start
LH: loop header
LB: loop body
LE: loop exit
PB: predicated region body
PF: predicated region fallthrough
CT: control target
= control target key end

     0   :  { %8 = vsyncpa [#allocation3], 0  ;;  %s2692_s15 = smov [#allocation2]   ;;  %s2693_s17 = smov 64   ;;  %s3684_s0 = inlined_call_operand.vmem [shape: f32[48,32], index: 0, kind: input, shape index: {}]   ;;  %s3685_s1 = inlined_call_operand.hbm [shape: bf16[448,128], index: 1, kind: input, shape index: {}]   ;;  %s3686_s2 = inlined_call_operand.vmem [shape: f32[18,128], index: 2, kind: input, shape index: {}]   ;;  %s3687_s3 = inlined_call_operand.vmem [shape: f32[48,32], index: 3, kind: output, shape index: {}]  }
   0x1   :  { %s15_s14 = sshll.u32 %s3685_s1, 4  ;;  %s17_s16 = sshll.u32 %s2692_s15, 4  ;;  %s16_s14 = int_to_ptr.hbm [resolvable:$true] %s15_s14  ;;  %s18_s16 = int_to_ptr.vmem [resolvable:$true] %s17_s16 }
   0x2   :  { %s2694_s18 = smov 4  }
   0x3   :  { %23 = dma.hbm_to_vmem [thread:$0]  %s16_s14, 3584, %s18_s16, [#allocation3], %s2693_s17, %s2693_s17, %s2694_s18  }
   0x4   :  { %2690 = dma.done.wait [#allocation3], 3584  }
   0x5   :  { %2691 = vsyncadd [#allocation3], 4294963712  ;;  %vm39_vm0 = vcmask 261120   ;;  %v35_v0 = vld [vmem:[%s3684_s0 + $0x20] sm:$0xff]  ;;  %v33_v1 = vld [vmem:[%s3684_s0 + $0x10] sm:$0xff]  ;;  %v2695_v12 = vmov 32.0  }
   0x6   :  { %v31_v2 = vld [vmem:[%s3684_s0] sm:$0xff]  ;;  %v52_v3 = vsel %vm39_vm0, %v35_v0, 0.0  ;;  %v46_v4 = vsel %vm39_vm0, %v33_v1, 0.0  ;;  %v36_v6 = vld [vmem:[%s3684_s0 + $0x28] sm:$0xff]  ;;  %v34_v7 = vld [vmem:[%s3684_s0 + $0x18] sm:$0xff]  ;;  %2484 = vrcp.f32 %v2695_v12  ;;  %s2696_s8 = smov 96  }
   0x7   :  { %v40_v5 = vsel %vm39_vm0, %v31_v2, 0.0  ;;  %v32_v8 = vld [vmem:[%s3684_s0 + $0x8] sm:$0xff]  ;;  %53 = vadd.xlane.f32.xlu1 %v52_v3  ;;  %47 = vadd.xlane.f32.xlu0 %v46_v4  ;;  %v55_v9 = vsel %vm39_vm0, %v36_v6, 0.0  ;;  %v49_v10 = vsel %vm39_vm0, %v34_v7, 0.0  ;;  %v2421_v55 = vld [vmem:[#allocation2] sm:$0xff]  ;;  %s2697_s9 = smov 80  }
   0x8   :  { %41 = vadd.xlane.f32.xlu2 %v40_v5  ;;  %v43_v11 = vsel %vm39_vm0, %v32_v8, 0.0  ;;  %v2422_v51 = vld [vmem:[#allocation2 + $0x8] sm:$0xff]  ;;  %s2698_s10 = smov 112   ;;  %s2700_s11 = smov 48  }
   0x9   :  { %2449 = vmatpush.bf16.msra.mxu3 %v2422_v51  ;;  %282 = vmatpush.bf16.msra.mxu0 %v2422_v51 }
   0xc   :  { %v2485_v13 = vpop.eup %2484 }
   0xd   :  { %v59_v14 = vmul.f32 32.0, %v2485_v13  ;;  %vm63_vm1 = vweird.f32 %v2485_v13  ;;  %2450 = vmatpush.bf16.msra.mxu3 %v2421_v55  ;;  %283 = vmatpush.bf16.msra.mxu0 %v2421_v55 }
   0xf   :  { %56 = vadd.xlane.f32.xlu1 %v55_v9  ;;  %50 = vadd.xlane.f32.xlu0 %v49_v10  ;;  %v60_v15 = vsub.f32 1.0, %v59_v14 }
  0x10   :  { %44 = vadd.xlane.f32.xlu2 %v43_v11 }
  0x11   :  { %v61_v16 = vmul.f32 %v2485_v13, %v60_v15 }
  0x13   :  { %v62_v17 = vadd.f32 %v2485_v13, %v61_v16 }
  0x15   :  { %v2750_v18 = vsel %vm63_vm1, %v2485_v13, %v62_v17 }
  0x7a   :  { %v54_v19 = vpop.xlane.xlu1 %53  ;;  %v48_v20 = vpop.xlane.xlu0 %47 }
  0x7b   :  { %v69_v21 = vmul.f32 %v2750_v18, %v54_v19  ;;  %v67_v22 = vmul.f32 %v2750_v18, %v48_v20  ;;  %v42_v23 = vpop.xlane.xlu2 %41 }
  0x7c   :  { %v65_v32 = vmul.f32 %v2750_v18, %v42_v23 }
  0x7d   :  { %v2754_v24 = vsub.f32 %v35_v0, %v69_v21  ;;  %v2756_v25 = vsub.f32 %v33_v1, %v67_v22 }
  0x7e   :  { %v2774_v40 = vsub.f32 %v31_v2, %v65_v32 }
  0x7f   :  { %v79_v26 = vmul.f32 %v2756_v25, %v2756_v25  ;;  %v81_v27 = vmul.f32 %v2754_v24, %v2754_v24 }
  0x80   :  { %v77_v47 = vmul.f32 %v2774_v40, %v2774_v40 }
  0x81   :  { %v89_v28 = vsel %vm39_vm0, %v79_v26, 0.0  ;;  %v95_v29 = vsel %vm39_vm0, %v81_v27, 0.0 }
  0x82   :  { %v57_v30 = vpop.xlane.xlu1 %56  ;;  %90 = vadd.xlane.f32.xlu0 %v89_v28  ;;  %v51_v31 = vpop.xlane.xlu0 %50  ;;  %96 = vadd.xlane.f32.xlu2 %v95_v29  ;;  %v83_v48 = vsel %vm39_vm0, %v77_v47, 0.0 }
  0x83   :  { %v70_v33 = vmul.f32 %v2750_v18, %v57_v30  ;;  %v68_v34 = vmul.f32 %v2750_v18, %v51_v31  ;;  %v45_v35 = vpop.xlane.xlu2 %44 }
  0x84   :  { %v66_v36 = vmul.f32 %v2750_v18, %v45_v35 }
  0x85   :  { %v2768_v37 = vsub.f32 %v36_v6, %v70_v33  ;;  %v2770_v38 = vsub.f32 %v34_v7, %v68_v34  ;;  %v2466_v34 = vld [vmem:[%s3686_s2] ss:$0 sm:$0xff] }
  0x86   :  { %v2772_v39 = vsub.f32 %v32_v8, %v66_v36 }
  0x87   :  { %v82_v41 = vmul.f32 %v2768_v37, %v2768_v37  ;;  %v80_v42 = vmul.f32 %v2770_v38, %v2770_v38 }
  0x88   :  { %v78_v43 = vmul.f32 %v2772_v39, %v2772_v39 }
  0x89   :  { %v98_v44 = vsel %vm39_vm0, %v82_v41, 0.0  ;;  %v92_v45 = vsel %vm39_vm0, %v80_v42, 0.0 }
  0x8a   :  { %99 = vadd.xlane.f32.xlu0 %v98_v44  ;;  %93 = vadd.xlane.f32.xlu1 %v92_v45  ;;  %v86_v46 = vsel %vm39_vm0, %v78_v43, 0.0 }
  0x8b   :  { %87 = vadd.xlane.f32.xlu2 %v86_v46 }
  0x92   :  { %84 = vadd.xlane.f32.xlu1 %v83_v48 }
  0xf5   :  { %v91_v49 = vpop.xlane.xlu0 %90  ;;  %v97_v50 = vpop.xlane.xlu2 %96 }
  0xf6   :  { %v103_v52 = vmul.f32 %v91_v49, %v2750_v18  ;;  %v105_v53 = vmul.f32 %v97_v50, %v2750_v18  ;;  %v2467_v49 = vld [vmem:[%s3686_s2 + $0x1] ss:$0 sm:$0xff] }
  0xf8   :  { %v109_v54 = vadd.f32 1e-05, %v103_v52  ;;  %v2790_v56 = vadd.f32 1e-05, %v105_v53 }
  0xfa   :  { %2486 = vrsqrt.f32 %v109_v54  ;;  %vm139_vm3 = vweird.f32 %v109_v54  ;;  %vm159_vm15 = vweird.f32 %v2790_v56 }
  0xfb   :  { %2488 = vrsqrt.f32 %v2790_v56 }
  0xfd   :  { %v94_v57 = vpop.xlane.xlu1 %93  ;;  %v100_v58 = vpop.xlane.xlu0 %99 }
  0xfe   :  { %v104_v59 = vmul.f32 %v94_v57, %v2750_v18  ;;  %v106_v60 = vmul.f32 %v100_v58, %v2750_v18  ;;  %v88_v61 = vpop.xlane.xlu2 %87 }
  0xff   :  { %v102_v62 = vmul.f32 %v88_v61, %v2750_v18 }
 0x100   :  { %v2487_v63 = vpop.eup %2486  ;;  %v110_v0 = vadd.f32 1e-05, %v104_v59  ;;  %v2796_v1 = vadd.f32 1e-05, %v106_v60 }
 0x101   :  { %v134_v2 = vmul.f32 %v2487_v63, %v109_v54  ;;  %v108_v3 = vadd.f32 1e-05, %v102_v62  ;;  %v2799_v5 = vpop.eup %2488  ;;  %vm140_vm2 = vweird.f32 %v2487_v63 }
 0x102   :  { %2490 = vrsqrt.f32 %v110_v0  ;;  %v154_v11 = vmul.f32 %v2799_v5, %v2790_v56  ;;  %vm141_vm4 = vmor %vm139_vm3, %vm140_vm2  ;;  %vm149_vm8 = vweird.f32 %v110_v0  ;;  %vm169_vm10 = vweird.f32 %v2796_v1 }
 0x103   :  { %v135_v4 = vmul.f32 %v2487_v63, %v134_v2  ;;  %2492 = vrsqrt.f32 %v2796_v1  ;;  %vm129_vm6 = vweird.f32 %v108_v3  ;;  %vm160_vm1 = vweird.f32 %v2799_v5 }
 0x104   :  { %2494 = vrsqrt.f32 %v108_v3  ;;  %v155_v21 = vmul.f32 %v2799_v5, %v154_v11  ;;  %v2468_v11 = vld [vmem:[%s3686_s2 + $0x2] ss:$0 sm:$0xff] }
 0x105   :  { %v136_v6 = vmul.f32 0.5, %v135_v4  ;;  %v85_v7 = vpop.xlane.xlu1 %84 }
 0x106   :  { %v101_v8 = vmul.f32 %v85_v7, %v2750_v18  ;;  %v156_v33 = vmul.f32 0.5, %v155_v21 }
 0x107   :  { %v137_v9 = vsub.f32 1.5, %v136_v6 }
 0x108   :  { %v2491_v10 = vpop.eup %2490  ;;  %v107_v12 = vadd.f32 1e-05, %v101_v8  ;;  %v157_v46 = vsub.f32 1.5, %v156_v33 }
 0x109   :  { %v2804_v13 = vpop.eup %2492  ;;  %v138_v14 = vmul.f32 %v2487_v63, %v137_v9  ;;  %v144_v15 = vmul.f32 %v2491_v10, %v110_v0  ;;  %vm150_vm5 = vweird.f32 %v2491_v10 }
 0x10a   :  { %v2495_v16 = vpop.eup %2494  ;;  %v164_v17 = vmul.f32 %v2804_v13, %v2796_v1  ;;  %2496 = vrsqrt.f32 %v107_v12  ;;  %vm151_vm9 = vmor %vm149_vm8, %vm150_vm5  ;;  %vm170_vm12 = vweird.f32 %v2804_v13  ;;  %vm119_vm13 = vweird.f32 %v107_v12 }
 0x10b   :  { %v145_v19 = vmul.f32 %v2491_v10, %v144_v15  ;;  %v124_v20 = vmul.f32 %v2495_v16, %v108_v3  ;;  %v142_v23 = vsel %vm141_vm4, %v2487_v63, %v138_v14  ;;  %vm130_vm7 = vweird.f32 %v2495_v16  ;;  %vm2832_vm2 = vmor %vm169_vm10, %vm170_vm12 }
 0x10c   :  { %v165_v22 = vmul.f32 %v2804_v13, %v164_v17  ;;  %v175_v32 = vmul.f32 %v142_v23, %v2756_v25  ;;  %vm2816_vm11 = vmor %vm129_vm6, %vm130_vm7  ;;  %v158_v56 = vmul.f32 %v2799_v5, %v157_v46  ;;  %vm312_vm5 = vcmask 130048  }
 0x10d   :  { %v146_v26 = vmul.f32 0.5, %v145_v19  ;;  %v125_v27 = vmul.f32 %v2495_v16, %v124_v20  ;;  %vm161_vm4 = vmor %vm159_vm15, %vm160_vm1  ;;  %v193_v46 = vlaneseq  ;;  %vm2699_vm8 = vmmov 1  }
 0x10e   :  { %v166_v29 = vmul.f32 0.5, %v165_v22  ;;  %v182_v48 = vmul.f32 %v2466_v34, %v175_v32  ;;  %v162_v0 = vsel %vm161_vm4, %v2799_v5, %v158_v56 }
 0x10f   :  { %v147_v28 = vsub.f32 1.5, %v146_v26  ;;  %v126_v30 = vmul.f32 0.5, %v125_v27  ;;  %v177_v3 = vmul.f32 %v162_v0, %v2754_v24 }
 0x110   :  { %v2497_v31 = vpop.eup %2496  ;;  %v167_v44 = vsub.f32 1.5, %v166_v29  ;;  %v2837_v57 = vadd.f32 %v2467_v49, %v182_v48  ;;  %v194_v48 = vshrl.u32 %v193_v46, 7 }
 0x111   :  { %v148_v35 = vmul.f32 %v2491_v10, %v147_v28  ;;  %v127_v36 = vsub.f32 1.5, %v126_v30  ;;  %v114_v41 = vmul.f32 %v2497_v31, %v107_v12  ;;  %vm120_vm14 = vweird.f32 %v2497_v31 }
 0x112   :  { %vm121_vm3 = vmor %vm119_vm13, %vm120_vm14 }
 0x113   :  { %v152_v43 = vsel %vm151_vm9, %v2491_v10, %v148_v35  ;;  %v128_v25 = vmul.f32 %v2495_v16, %v127_v36  ;;  %v115_v45 = vmul.f32 %v2497_v31, %v114_v41 }
 0x114   :  { %v176_v47 = vmul.f32 %v152_v43, %v2770_v38  ;;  %v168_v38 = vmul.f32 %v2804_v13, %v167_v44 }
 0x115   :  { %v132_v50 = vsel %vm2816_vm11, %v2495_v16, %v128_v25  ;;  %v116_v51 = vmul.f32 0.5, %v115_v45  ;;  %vm361_vm11 = vcmask 392192  }
 0x116   :  { %v183_v52 = vmul.f32 %v2466_v34, %v176_v47  ;;  %v174_v55 = vmul.f32 %v132_v50, %v2772_v39  ;;  %v172_v61 = vsel %vm2832_vm2, %v2804_v13, %v168_v38  ;;  %v201_v47 = vand.u32 127, %v193_v46 }
 0x117   :  { %v117_v54 = vsub.f32 1.5, %v116_v51  ;;  %v178_v1 = vmul.f32 %v172_v61, %v2768_v37  ;;  %v195_v51 = vadd.s32 8, %v194_v48 }
 0x118   :  { %v2839_v58 = vadd.f32 %v2467_v49, %v183_v52  ;;  %v181_v39 = vmul.f32 %v2466_v34, %v174_v55  ;;  %vm214_vm6 = vcmp.ge.s32.totalorder %v201_v47, 24  ;;  %vm202_vm7 = vcmp.ge.s32.totalorder %v194_v48, %v201_v47 }
 0x119   :  { %v118_v59 = vmul.f32 %v2497_v31, %v117_v54  ;;  %v185_v8 = vmul.f32 %v2466_v34, %v178_v1  ;;  %vm2909_vm9 = vmxor %vm214_vm6, %vm2699_vm8  ;;  %vm203_vm12 = vcmp.ge.s32.totalorder %v195_v51, %v201_v47 }
 0x11a   :  { %v247_v60 = vpack.c.bf16 %v2839_v58, %v2837_v57  ;;  %v2854_v6 = vadd.f32 %v2467_v49, %v181_v39  ;;  %vm2915_vm10 = vmand %vm202_vm7, %vm2909_vm9 }
 0x11b   :  { %v122_v62 = vsel %vm121_vm3, %v2497_v31, %v118_v59  ;;  %v2859_v9 = vadd.f32 %v2467_v49, %v185_v8  ;;  %vm2930_vm13 = vmand %vm203_vm12, %vm2909_vm9 }
 0x11c   :  { %v173_v63 = vmul.f32 %v122_v62, %v2774_v40  ;;  %2270 = vmatmul.msk.bf16.vlgmr.msra.gmra.mxu3 %vm39_vm0, %v247_v60  ;;  %v184_v40 = vmul.f32 %v2466_v34, %v177_v3  ;;  %v196_v60 = vadd.s32 16, %v194_v48  ;;  %v197_v3 = vadd.s32 24, %v194_v48 }
 0x11e   :  { %v180_v2 = vmul.f32 %v2466_v34, %v173_v63  ;;  %v2861_v10 = vadd.f32 %v2467_v49, %v184_v40  ;;  %vm204_vm14 = vcmp.ge.s32.totalorder %v196_v60, %v201_v47  ;;  %vm205_vm1 = vcmp.ge.s32.totalorder %v197_v3, %v201_v47 }
 0x11f   :  { %vm2942_vm15 = vmand %vm204_vm14, %vm2909_vm9 }
 0x120   :  { %v2852_v4 = vadd.f32 %v2467_v49, %v180_v2  ;;  %v248_v37 = vpack.c.bf16 %v2859_v9, %v2861_v10  ;;  %vm2956_vm2 = vmand %vm205_vm1, %vm214_vm6 }
 0x122   :  { %v246_v7 = vpack.c.bf16 %v2854_v6, %v2852_v4 }
 0x124   :  { %2269 = vmatmul.msk.bf16.vlgmr.msra.gmra.mxu0 %vm39_vm0, %v246_v7 }
 0x12c   :  { %2271 = vmatmul.msk.bf16.gmra.mxu3 %vm39_vm0, %v248_v37 }
 0x19f   :  { %v290_v24 = vpop.f32.mrf.mxu3 }
 0x1a0   :  { %v291_v13 = vadd.f32 %v2468_v11, %v290_v24 }
 0x1a1   :  { %v285_v5 = vpop.f32.mrf.mxu0 }
 0x1a2   :  { %v286_v20 = vadd.f32 %v2468_v11, %v285_v5 }
 0x1a7   :  { %v292_v12 = vpop.f32.mrf.mxu3 }
 0x1a8   :  { %v293_v14 = vadd.f32 %v2468_v11, %v292_v12  ;;  %v198_v12 = vadd.s32 32, %v194_v48 }
 0x1a9   :  { %v287_v16 = vpop.f32.mrf.mxu0 }
 0x1aa   :  { %v2869_v15 = vpack.c.bf16 %v293_v14, %v291_v13  ;;  %v288_v17 = vadd.f32 %v2468_v11, %v287_v16  ;;  %vm206_vm3 = vcmp.ge.s32.totalorder %v198_v12, %v201_v47 }
 0x1ab   :  { %vm2973_vm4 = vmand %vm206_vm3, %vm214_vm6 }
 0x1ac   :  { %308 = vrot.lane.b32.xlu1 %v2869_v15, %s2696_s8  ;;  %v2873_v21 = vpack.c.bf16 %v288_v17, %v286_v20 }
 0x1af   :  { %v295_v19 = vpop.f32.mrf.mxu3 }
 0x1b0   :  { %v296_v23 = vadd.f32 %v2468_v11, %v295_v19 }
 0x1b4   :  { %484 = vrot.lane.b32.xlu1 %v2873_v21, %s2697_s9 }
 0x1b7   :  { %v297_v22 = vpop.f32.mrf.mxu3 }
 0x1b8   :  { %v298_v26 = vadd.f32 %v2468_v11, %v297_v22 }
 0x1ba   :  { %v2877_v27 = vpack.c.bf16 %v298_v26, %v296_v23  ;;  %v199_v23 = vadd.s32 40, %v194_v48 }
 0x1bc   :  { %488 = vrot.lane.b32.xlu2 %v2877_v27, %s2697_s9  ;;  %310 = vrot.lane.b32.xlu0 %v2877_v27, %s2696_s8  ;;  %vm207_vm7 = vcmp.ge.s32.totalorder %v199_v23, %v201_v47 }
 0x1bd   :  { %482 = vrot.lane.b32.xlu1 %v2877_v27, %s2698_s10  ;;  %vm2984_vm8 = vmand %vm207_vm7, %vm214_vm6 }
 0x1c4   :  { %486 = vrot.lane.b32.xlu2 %v2869_v15, %s2697_s9  ;;  %306 = vrot.lane.b32.xlu0 %v2873_v21, %s2696_s8 }
 0x1cc   :  { %480 = vrot.lane.b32.xlu2 %v2869_v15, %s2698_s10  ;;  %478 = vrot.lane.b32.xlu0 %v2873_v21, %s2698_s10 }
 0x216   :  { %v489_v28 = vpop.permute.xlu2 %488 }
 0x217   :  { %v506_v29 = vsel %vm312_vm5, %v489_v28, 0 }
 0x218   :  { %513 = vmatpush.bf16.xpose.msrb.mxu3 %v506_v29 }
 0x21e   :  { %v309_v30 = vpop.permute.xlu1 %308  ;;  %v487_v31 = vpop.permute.xlu2 %486 }
 0x21f   :  { %v503_v32 = vsel %vm312_vm5, %v487_v31, 0  ;;  %v326_v42 = vsel %vm312_vm5, %v309_v30, 0 }
 0x220   :  { %514 = vmatpush.bf16.xpose.msrb.mxu3 %v503_v32 }
 0x226   :  { %v485_v33 = vpop.permute.xlu1 %484  ;;  %v481_v25 = vpop.permute.xlu2 %480 }
 0x227   :  { %v500_v34 = vsel %vm312_vm5, %v485_v33, 0 }
 0x228   :  { %515 = vmatpush.bf16.xpose.msrb.mxu3 %v500_v34 }
 0x22e   :  { %v311_v35 = vpop.permute.xlu0 %310 }
 0x22f   :  { %v329_v36 = vsel %vm312_vm5, %v311_v35, 0  ;;  %v483_v45 = vpop.permute.xlu1 %482 }
 0x230   :  { %336 = vmatpush.bf16.xpose.msra.mxu1 %v329_v36 }
 0x236   :  { %v307_v41 = vpop.permute.xlu0 %306 }
 0x237   :  { %v323_v44 = vsel %vm312_vm5, %v307_v41, 0 }
 0x238   :  { %337 = vmatpush.bf16.xpose.msra.mxu1 %v326_v42 }
 0x23e   :  { %v479_v43 = vpop.permute.xlu0 %478 }
 0x23f   :  { %2278 = vmatmul.msk.bf16.vlgmr.msrb.gmra.mxu3 %vm312_vm5, %v479_v43 }
 0x240   :  { %338 = vmatpush.bf16.xpose.msra.mxu1 %v323_v44 }
 0x247   :  { %2272 = vmatmul.msk.bf16.vlgmr.msra.gmra.mxu1 %vm312_vm5, %v2873_v21 }
 0x24f   :  { %2279 = vmatmul.msk.bf16.gmra.mxu3 %vm312_vm5, %v481_v25 }
 0x257   :  { %2273 = vmatmul.msk.bf16.gmra.mxu1 %vm312_vm5, %v2869_v15 }
 0x25f   :  { %2280 = vmatmul.msk.bf16.gmra.mxu3 %vm312_vm5, %v483_v45 }
 0x267   :  { %2274 = vmatmul.msk.bf16.gmra.mxu1 %vm312_vm5, %v2877_v27 }
 0x2c2   :  { %v517_v52 = vpop.f32.mrf.mxu3 }
 0x2c3   :  { %v2921_v38 = vsel %vm2915_vm10, %v517_v52, -1e+30 }
 0x2c4   :  { %v340_v53 = vpop.f32.mrf.mxu1  ;;  %v538_v54 = vsel %vm361_vm11, %v2921_v38, -inf }
 0x2c5   :  { %v355_v55 = vsel %vm2915_vm10, %v340_v53, -1e+30  ;;  %539 = vmax.xlane.f32.xlu1 %v538_v54 }
 0x2c6   :  { %v362_v56 = vsel %vm361_vm11, %v355_v55, -inf }
 0x2c7   :  { %363 = vmax.xlane.f32.xlu0 %v362_v56 }
 0x2ca   :  { %v519_v61 = vpop.f32.mrf.mxu3 }
 0x2cb   :  { %v533_v62 = vsel %vm2930_vm13, %v519_v61, -1e+30 }
 0x2cc   :  { %v342_v63 = vpop.f32.mrf.mxu1  ;;  %v541_v1 = vsel %vm361_vm11, %v533_v62, -inf }
 0x2cd   :  { %v356_v39 = vsel %vm2930_vm13, %v342_v63, -1e+30 }
 0x2ce   :  { %v365_v0 = vsel %vm361_vm11, %v356_v39, -inf }
 0x2cf   :  { %366 = vmax.xlane.f32.xlu2 %v365_v0  ;;  %542 = vmax.xlane.f32.xlu0 %v541_v1 }
 0x2d2   :  { %v522_v7 = vpop.f32.mrf.mxu3 }
 0x2d3   :  { %v2948_v8 = vsel %vm2942_vm15, %v522_v7, -1e+30 }
 0x2d4   :  { %v345_v40 = vpop.f32.mrf.mxu1  ;;  %v544_v5 = vsel %vm361_vm11, %v2948_v8, -inf }
 0x2d5   :  { %v357_v37 = vsel %vm2942_vm15, %v345_v40, -1e+30 }
 0x2d6   :  { %v368_v24 = vsel %vm361_vm11, %v357_v37, -inf }
 0x2d7   :  { %369 = vmax.xlane.f32.xlu0 %v368_v24  ;;  %545 = vmax.xlane.f32.xlu2 %v544_v5 }
 0x2da   :  { %v524_v13 = vpop.f32.mrf.mxu3 }
 0x2db   :  { %v2962_v14 = vsel %vm2956_vm2, %v524_v13, -1e+30 }
 0x2dc   :  { %v347_v16 = vpop.f32.mrf.mxu1  ;;  %v547_v17 = vsel %vm361_vm11, %v2962_v14, -inf }
 0x2dd   :  { %v2968_v19 = vsel %vm2956_vm2, %v347_v16, -1e+30  ;;  %548 = vmax.xlane.f32.xlu1 %v547_v17 }
 0x2de   :  { %v371_v20 = vsel %vm361_vm11, %v2968_v19, -inf }
 0x2df   :  { %372 = vmax.xlane.f32.xlu2 %v371_v20 }
 0x2e2   :  { %v527_v26 = vpop.f32.mrf.mxu3 }
 0x2e3   :  { %v536_v28 = vsel %vm2973_vm4, %v527_v26, -1e+30 }
 0x2e4   :  { %v350_v29 = vpop.f32.mrf.mxu1  ;;  %v550_v32 = vsel %vm361_vm11, %v536_v28, -inf }
 0x2e5   :  { %v359_v30 = vsel %vm2973_vm4, %v350_v29, -1e+30 }
 0x2e6   :  { %v374_v31 = vsel %vm361_vm11, %v359_v30, -inf }
 0x2e7   :  { %375 = vmax.xlane.f32.xlu1 %v374_v31  ;;  %551 = vmax.xlane.f32.xlu2 %v550_v32 }
 0x2ea   :  { %v529_v34 = vpop.f32.mrf.mxu3 }
 0x2eb   :  { %v2990_v35 = vsel %vm2984_vm8, %v529_v34, -1e+30 }
 0x2ec   :  { %v352_v36 = vpop.f32.mrf.mxu1  ;;  %v553_v43 = vsel %vm361_vm11, %v2990_v35, -inf }
 0x2ed   :  { %v2994_v41 = vsel %vm2984_vm8, %v352_v36, -1e+30 }
 0x2ee   :  { %v377_v42 = vsel %vm361_vm11, %v2994_v41, -inf }
 0x2ef   :  { %378 = vmax.xlane.f32.xlu0 %v377_v42  ;;  %554 = vmax.xlane.f32.xlu1 %v553_v43 }
 0x2ff   :  { %431 = vrot.lane.b32.xlu2 %v2873_v21, %s2693_s17 }
 0x308   :  { %435 = vrot.lane.b32.xlu1 %v2877_v27, %s2693_s17 }
 0x338   :  { %v540_v56 = vpop.xlane.xlu1 %539 }
 0x33a   :  { %v364_v44 = vpop.xlane.xlu0 %363 }
 0x33b   :  { %v380_v25 = vsub.f32 %v355_v55, %v364_v44 }
 0x33d   :  { %v386_v45 = vmul.f32 1.442695, %v380_v25 }
 0x33f   :  { %2498 = vpow2.f32 %v386_v45 }
 0x342   :  { %v543_v46 = vpop.xlane.xlu0 %542  ;;  %v367_v47 = vpop.xlane.xlu2 %366 }
 0x343   :  { %v557_v48 = vsub.f32 %v533_v62, %v543_v46  ;;  %v381_v49 = vsub.f32 %v356_v39, %v367_v47 }
 0x345   :  { %v3004_v51 = vpop.eup %2498  ;;  %v564_v52 = vmul.f32 1.442695, %v557_v48  ;;  %v388_v53 = vmul.f32 1.442695, %v381_v49 }
 0x346   :  { %v398_v54 = vsel %vm361_vm11, %v3004_v51, 0.0 }
 0x347   :  { %2500 = vpow2.f32 %v564_v52  ;;  %399 = vadd.xlane.f32.xlu0 %v398_v54 }
 0x348   :  { %2502 = vpow2.f32 %v388_v53 }
 0x34a   :  { %v370_v60 = vpop.xlane.xlu0 %369  ;;  %v546_v61 = vpop.xlane.xlu2 %545 }
 0x34b   :  { %v382_v55 = vsub.f32 %v357_v37, %v370_v60  ;;  %v558_v25 = vsub.f32 %v2948_v8, %v546_v61 }
 0x34d   :  { %v3008_v63 = vpop.eup %2500  ;;  %v390_v0 = vmul.f32 1.442695, %v382_v55  ;;  %v566_v46 = vmul.f32 1.442695, %v558_v25 }
 0x34e   :  { %v3010_v1 = vpop.eup %2502  ;;  %v577_v62 = vsel %vm361_vm11, %v3008_v63, 0.0 }
 0x34f   :  { %2504 = vpow2.f32 %v390_v0  ;;  %578 = vadd.xlane.f32.xlu1 %v577_v62  ;;  %v401_v39 = vsel %vm361_vm11, %v3010_v1, 0.0 }
 0x350   :  { %402 = vadd.xlane.f32.xlu2 %v401_v39  ;;  %v549_v3 = vpop.xlane.xlu1 %548 }
 0x351   :  { %v559_v42 = vsub.f32 %v2962_v14, %v549_v3 }
 0x352   :  { %v373_v7 = vpop.xlane.xlu2 %372 }
 0x355   :  { %v3016_v40 = vpop.eup %2504 }
 0x356   :  { %v404_v37 = vsel %vm361_vm11, %v3016_v40, 0.0 }
 0x357   :  { %405 = vadd.xlane.f32.xlu1 %v404_v37 }
 0x35a   :  { %v376_v24 = vpop.xlane.xlu1 %375  ;;  %v552_v5 = vpop.xlane.xlu2 %551 }
 0x35b   :  { %v384_v12 = vsub.f32 %v359_v30, %v376_v24  ;;  %433 = vrot.lane.b32.xlu0 %v2869_v15, %s2693_s17  ;;  %v560_v16 = vsub.f32 %v536_v28, %v552_v5  ;;  %v556_v30 = vsub.f32 %v2921_v38, %v540_v56  ;;  %v568_v38 = vmul.f32 1.442695, %v559_v42 }
 0x35d   :  { %v394_v13 = vmul.f32 1.442695, %v384_v12  ;;  %v570_v17 = vmul.f32 1.442695, %v560_v16  ;;  %v562_v31 = vmul.f32 1.442695, %v556_v30 }
 0x35f   :  { %2506 = vpow2.f32 %v394_v13 }
 0x360   :  { %2508 = vpow2.f32 %v570_v17 }
 0x361   :  { %2510 = vpow2.f32 %v562_v31 }
 0x362   :  { %v555_v28 = vpop.xlane.xlu1 %554  ;;  %v379_v43 = vpop.xlane.xlu0 %378 }
 0x363   :  { %v561_v47 = vsub.f32 %v2990_v35, %v555_v28  ;;  %v432_v56 = vpop.permute.xlu2 %431 }
 0x365   :  { %v3022_v20 = vpop.eup %2506  ;;  %v572_v49 = vmul.f32 1.442695, %v561_v47 }
 0x366   :  { %v410_v23 = vsel %vm361_vm11, %v3022_v20, 0.0  ;;  %v3028_v26 = vpop.eup %2508 }
 0x367   :  { %411 = vadd.xlane.f32.xlu1 %v410_v23  ;;  %v586_v29 = vsel %vm361_vm11, %v3028_v26, 0.0  ;;  %v3038_v36 = vpop.eup %2510 }
 0x368   :  { %611 = vrot.lane.b32.xlu2 %v2877_v27, %s2700_s11  ;;  %v383_v27 = vsub.f32 %v2968_v19, %v373_v7  ;;  %v385_v19 = vsub.f32 %v2994_v41, %v379_v43 }
 0x36a   :  { %v392_v34 = vmul.f32 1.442695, %v383_v27  ;;  %v396_v45 = vmul.f32 1.442695, %v385_v19 }
 0x36c   :  { %2512 = vpow2.f32 %v392_v34 }
 0x36d   :  { %2514 = vpow2.f32 %v568_v38 }
 0x36e   :  { %2516 = vpow2.f32 %v396_v45 }
 0x36f   :  { %587 = vadd.xlane.f32.xlu1 %v586_v29  ;;  %2518 = vpow2.f32 %v566_v46 }
 0x370   :  { %609 = vrot.lane.b32.xlu2 %v2869_v15, %s2700_s11  ;;  %v574_v15 = vsel %vm361_vm11, %v3038_v36, 0.0  ;;  %2520 = vpow2.f32 %v572_v49 }
 0x378   :  { %607 = vrot.lane.b32.xlu2 %v2873_v21, %s2700_s11  ;;  %v3043_v21 = vpop.eup %2512 }
 0x379   :  { %v407_v44 = vsel %vm361_vm11, %v3043_v21, 0.0  ;;  %v3049_v14 = vpop.eup %2514 }
 0x37a   :  { %v436_v32 = vpop.permute.xlu1 %435  ;;  %v583_v48 = vsel %vm361_vm11, %v3049_v14, 0.0  ;;  %v3054_v41 = vpop.eup %2516 }
 0x37b   :  { %454 = vmatpush.bf16.msrb.mxu0 %v436_v32  ;;  %2451 = vmatpush.bf16.msrb.mxu1 %v436_v32  ;;  %v413_v52 = vsel %vm361_vm11, %v3054_v41, 0.0  ;;  %v3058_v8 = vpop.eup %2518 }
 0x37c   :  { %2452 = vmatpush.bf16.msra.mxu2 %v436_v32  ;;  %v580_v53 = vsel %vm361_vm11, %v3058_v8, 0.0  ;;  %v3062_v54 = vpop.eup %2520 }
 0x37d   :  { %v589_v35 = vsel %vm361_vm11, %v3062_v54, 0.0 }
 0x385   :  { %575 = vadd.xlane.f32.xlu0 %v574_v15 }
 0x38d   :  { %408 = vadd.xlane.f32.xlu0 %v407_v44 }
 0x395   :  { %584 = vadd.xlane.f32.xlu0 %v583_v48 }
 0x39d   :  { %414 = vadd.xlane.f32.xlu0 %v413_v52 }
 0x3a1   :  { %581 = vadd.xlane.f32.xlu2 %v580_v53 }
 0x3a5   :  { %590 = vadd.xlane.f32.xlu0 %v589_v35 }
 0x3ba   :  { %v400_v61 = vpop.xlane.xlu0 %399 }
 0x3c2   :  { %v579_v12 = vpop.xlane.xlu1 %578 }
 0x3c3   :  { %v403_v60 = vpop.xlane.xlu2 %402 }
 0x3c4   :  { %2522 = vrcp.f32 %v403_v60 }
 0x3c5   :  { %2524 = vrcp.f32 %v400_v61  ;;  %v2424_v61 = vld [vmem:[#allocation2 + $0x18] sm:$0xff] }
 0x3c6   :  { %2526 = vrcp.f32 %v579_v12 }
 0x3ca   :  { %v2523_v0 = vpop.eup %2522  ;;  %v406_v16 = vpop.xlane.xlu1 %405 }
 0x3cb   :  { %v612_v55 = vpop.permute.xlu2 %611  ;;  %v2525_v39 = vpop.eup %2524  ;;  %v423_v3 = vmul.f32 %v2523_v0, %v3010_v1 }
 0x3cc   :  { %v422_v7 = vmul.f32 %v2525_v39, %v3004_v51  ;;  %v2527_v1 = vpop.eup %2526 }
 0x3cd   :  { %v434_v62 = vpop.permute.xlu0 %433  ;;  %v599_v51 = vmul.f32 %v2527_v1, %v3008_v63 }
 0x3ce   :  { %455 = vmatpush.bf16.msrb.mxu0 %v434_v62  ;;  %2453 = vmatpush.bf16.msrb.mxu1 %v434_v62  ;;  %v428_v24 = vpack.c.bf16 %v423_v3, %v422_v7 }
 0x3cf   :  { %2454 = vmatpush.bf16.msra.mxu2 %v434_v62 }
 0x3d2   :  { %456 = vmatpush.bf16.msrb.mxu0 %v432_v56  ;;  %2455 = vmatpush.bf16.msrb.mxu1 %v432_v56 }
 0x3d3   :  { %2456 = vmatpush.bf16.msra.mxu2 %v432_v56  ;;  %v610_v37 = vpop.permute.xlu2 %609  ;;  %v2423_v56 = vld [vmem:[#allocation2 + $0x10] sm:$0xff] }
 0x3d5   :  { %2275 = vmatmul.msk.bf16.vlgmr.msrb.gmra.mxu0 %vm361_vm11, %v428_v24 }
 0x3d6   :  { %630 = vmatpush.bf16.msra.mxu0 %v612_v55  ;;  %715 = vmatpush.bf16.msra.mxu1 %v2423_v56 }
 0x3d7   :  { %676 = vmatpush.bf16.msrb.mxu2 %v2424_v61 }
 0x3da   :  { %631 = vmatpush.bf16.msra.mxu0 %v610_v37  ;;  %v412_v15 = vpop.xlane.xlu1 %411 }
 0x3db   :  { %v608_v5 = vpop.permute.xlu2 %607 }
 0x3de   :  { %632 = vmatpush.bf16.msra.mxu0 %v608_v5 }
 0x3e2   :  { %v588_v49 = vpop.xlane.xlu1 %587 }
 0x3f8   :  { %v576_v13 = vpop.xlane.xlu0 %575 }
 0x3f9   :  { %2528 = vrcp.f32 %v576_v13 }
 0x3fa   :  { %2530 = vrcp.f32 %v406_v16 }
 0x3ff   :  { %v2529_v17 = vpop.eup %2528 }
 0x400   :  { %v598_v23 = vmul.f32 %v2529_v17, %v3038_v36  ;;  %v409_v29 = vpop.xlane.xlu0 %408  ;;  %v2531_v30 = vpop.eup %2530 }
 0x401   :  { %2532 = vrcp.f32 %v409_v29  ;;  %v424_v32 = vmul.f32 %v2531_v30, %v3016_v40 }
 0x402   :  { %v604_v28 = vpack.c.bf16 %v599_v51, %v598_v23  ;;  %2534 = vrcp.f32 %v412_v15  ;;  %v2469_v51 = vld [vmem:[%s3686_s2 + $0x3] ss:$0 sm:$0xff] }
 0x404   :  { %2281 = vmatmul.msk.bf16.vlgmr.msra.gmra.mxu0 %vm361_vm11, %v604_v28 }
 0x407   :  { %v2533_v31 = vpop.eup %2532 }
 0x408   :  { %v425_v27 = vmul.f32 %v2533_v31, %v3043_v21  ;;  %v585_v34 = vpop.xlane.xlu0 %584  ;;  %v2535_v38 = vpop.eup %2534 }
 0x409   :  { %v426_v19 = vmul.f32 %v2535_v38, %v3022_v20 }
 0x40a   :  { %v429_v42 = vpack.c.bf16 %v425_v27, %v424_v32 }
 0x40c   :  { %2276 = vmatmul.msk.bf16.vlgmr.msrb.gmra.mxu1 %vm361_vm11, %v429_v42 }
 0x410   :  { %v415_v63 = vpop.xlane.xlu0 %414 }
 0x411   :  { %2536 = vrcp.f32 %v415_v63 }
 0x412   :  { %2538 = vrcp.f32 %v585_v34 }
 0x414   :  { %v582_v36 = vpop.xlane.xlu2 %581 }
 0x415   :  { %2540 = vrcp.f32 %v582_v36 }
 0x417   :  { %v2537_v43 = vpop.eup %2536 }
 0x418   :  { %v427_v44 = vmul.f32 %v2537_v43, %v3054_v41  ;;  %v2539_v40 = vpop.eup %2538  ;;  %v591_v47 = vpop.xlane.xlu0 %590 }
 0x419   :  { %v601_v46 = vmul.f32 %v2539_v40, %v3049_v14  ;;  %2542 = vrcp.f32 %v591_v47 }
 0x41a   :  { %v430_v25 = vpack.c.bf16 %v427_v44, %v426_v19  ;;  %2544 = vrcp.f32 %v588_v49 }
 0x41b   :  { %v2541_v21 = vpop.eup %2540 }
 0x41c   :  { %2277 = vmatmul.msk.bf16.vlgmr.msra.gmra.mxu2 %vm361_vm11, %v430_v25  ;;  %v600_v45 = vmul.f32 %v2541_v21, %v3058_v8 }
 0x41e   :  { %v605_v48 = vpack.c.bf16 %v601_v46, %v600_v45 }
 0x41f   :  { %v2543_v52 = vpop.eup %2542 }
 0x420   :  { %2282 = vmatmul.msk.bf16.gmra.mxu0 %vm361_vm11, %v605_v48  ;;  %v2545_v20 = vpop.eup %2544  ;;  %v603_v41 = vmul.f32 %v2543_v52, %v3062_v54 }
 0x421   :  { %v602_v53 = vmul.f32 %v2545_v20, %v3028_v26 }
 0x423   :  { %v606_v35 = vpack.c.bf16 %v603_v41, %v602_v53 }
 0x430   :  { %2283 = vmatmul.msk.bf16.gmra.mxu0 %vm361_vm11, %v606_v35 }
 0x452   :  { %v458_v8 = vpop.f32.mrf.mxu0 }
 0x45a   :  { %v460_v14 = vpop.f32.mrf.mxu0 }
 0x45b   :  { %v475_v60 = vpack.c.bf16 %v460_v14, %v458_v8 }
 0x45d   :  { %2295 = vmatmul.msk.bf16.vlgmr.msra.gmra.mxu1 %vm312_vm5, %v475_v60 }
 0x481   :  { %v634_v55 = vpop.f32.mrf.mxu0 }
 0x489   :  { %v463_v0 = vpop.f32.mrf.mxu1  ;;  %v636_v62 = vpop.f32.mrf.mxu0 }
 0x48a   :  { %v651_v39 = vpack.c.bf16 %v636_v62, %v634_v55 }
 0x48c   :  { %2288 = vmatmul.msk.bf16.vlgmr.msrb.gmra.mxu2 %vm312_vm5, %v651_v39 }
 0x491   :  { %v465_v54 = vpop.f32.mrf.mxu1 }
 0x492   :  { %v476_v26 = vpack.c.bf16 %v465_v54, %v463_v0 }
 0x494   :  { %2296 = vmatmul.msk.bf16.gmra.mxu1 %vm312_vm5, %v476_v26 }
 0x49d   :  { %v639_v3 = vpop.f32.mrf.mxu0 }
 0x49f   :  { %v468_v7 = vpop.f32.mrf.mxu2 }
 0x4a5   :  { %v641_v37 = vpop.f32.mrf.mxu0 }
 0x4a6   :  { %v652_v24 = vpack.c.bf16 %v641_v37, %v639_v3 }
 0x4a7   :  { %v470_v5 = vpop.f32.mrf.mxu2 }
 0x4a8   :  { %v477_v12 = vpack.c.bf16 %v470_v5, %v468_v7  ;;  %2289 = vmatmul.msk.bf16.gmra.mxu2 %vm312_vm5, %v652_v24 }
 0x4aa   :  { %2297 = vmatmul.msk.bf16.gmra.mxu1 %vm312_vm5, %v477_v12 }
 0x4ad   :  { %v644_v13 = vpop.f32.mrf.mxu0 }
 0x4b5   :  { %v646_v16 = vpop.f32.mrf.mxu0 }
 0x4b6   :  { %v653_v1 = vpack.c.bf16 %v646_v16, %v644_v13 }
 0x4b8   :  { %2290 = vmatmul.msk.bf16.gmra.mxu2 %vm312_vm5, %v653_v1 }
 0x4da   :  { %v717_v17 = vpop.f32.mrf.mxu1 }
 0x4e2   :  { %v719_v32 = vpop.f32.mrf.mxu1 }
 0x50f   :  { %v678_v23 = vpop.f32.mrf.mxu2 }
 0x510   :  { %v718_v29 = vadd.f32 %v717_v17, %v678_v23 }
 0x511   :  { %v722_v36 = vpop.f32.mrf.mxu1 }
 0x512   :  { %v734_v28 = vadd.f32 %v2469_v51, %v718_v29 }
 0x514   :  { %v740_v30 = vadd.f32 %v734_v28, %v2852_v4 }
 0x516   :  { %v748_v31 = vsel %vm39_vm0, %v740_v30, 0.0 }
 0x517   :  { %749 = vadd.xlane.f32.xlu1 %v748_v31  ;;  %v680_v27 = vpop.f32.mrf.mxu2 }
 0x518   :  { %v720_v34 = vadd.f32 %v719_v32, %v680_v27 }
 0x519   :  { %v724_v40 = vpop.f32.mrf.mxu1 }
 0x51a   :  { %v735_v42 = vadd.f32 %v2469_v51, %v720_v34 }
 0x51c   :  { %v741_v15 = vadd.f32 %v735_v42, %v2854_v6 }
 0x51e   :  { %v751_v63 = vsel %vm39_vm0, %v741_v15, 0.0 }
 0x51f   :  { %752 = vadd.xlane.f32.xlu2 %v751_v63 }
 0x527   :  { %v727_v47 = vpop.f32.mrf.mxu1 }
 0x52b   :  { %v683_v38 = vpop.f32.mrf.mxu2 }
 0x52c   :  { %v723_v43 = vadd.f32 %v722_v36, %v683_v38  ;;  %v2425_v38 = vld [vmem:[#allocation2 + $0x20] sm:$0xff] }
 0x52e   :  { %v736_v19 = vadd.f32 %v2469_v51, %v723_v43 }
 0x52f   :  { %v729_v41 = vpop.f32.mrf.mxu1 }
 0x530   :  { %v742_v44 = vadd.f32 %v736_v19, %v2837_v57 }
 0x532   :  { %v754_v4 = vsel %vm39_vm0, %v742_v44, 0.0 }
 0x533   :  { %755 = vadd.xlane.f32.xlu0 %v754_v4  ;;  %v685_v25 = vpop.f32.mrf.mxu2 }
 0x534   :  { %v725_v21 = vadd.f32 %v724_v40, %v685_v25 }
 0x536   :  { %v737_v45 = vadd.f32 %v2469_v51, %v725_v21 }
 0x538   :  { %v743_v46 = vadd.f32 %v737_v45, %v2839_v58 }
 0x53a   :  { %v757_v6 = vsel %vm39_vm0, %v743_v46, 0.0 }
 0x53b   :  { %758 = vadd.xlane.f32.xlu1 %v757_v6  ;;  %v688_v48 = vpop.f32.mrf.mxu2 }
 0x53c   :  { %v728_v49 = vadd.f32 %v727_v47, %v688_v48 }
 0x53e   :  { %v738_v52 = vadd.f32 %v2469_v51, %v728_v49 }
 0x540   :  { %v744_v20 = vadd.f32 %v738_v52, %v2861_v10 }
 0x542   :  { %v760_v57 = vsel %vm39_vm0, %v744_v20, 0.0 }
 0x543   :  { %761 = vadd.xlane.f32.xlu2 %v760_v57  ;;  %v690_v53 = vpop.f32.mrf.mxu2  ;;  %v3146_v57 = vld [vmem:[%s3686_s2 + $0x4] ss:$0 sm:$0xff] }
 0x544   :  { %v730_v35 = vadd.f32 %v729_v41, %v690_v53 }
 0x546   :  { %v739_v56 = vadd.f32 %v2469_v51, %v730_v35 }
 0x548   :  { %v745_v8 = vadd.f32 %v739_v56, %v2859_v9 }
 0x54a   :  { %v763_v58 = vsel %vm39_vm0, %v745_v8, 0.0 }
 0x54b   :  { %764 = vadd.xlane.f32.xlu0 %v763_v58  ;;  %v3153_v58 = vld [vmem:[%s3686_s2 + $0x5] ss:$0 sm:$0xff] }
 0x58a   :  { %v750_v14 = vpop.xlane.xlu1 %749 }
 0x58b   :  { %v766_v60 = vmul.f32 %v750_v14, %v2750_v18 }
 0x58d   :  { %v3106_v61 = vsub.f32 %v740_v30, %v766_v60 }
 0x58f   :  { %v778_v10 = vmul.f32 %v3106_v61, %v3106_v61 }
 0x591   :  { %v784_v55 = vsel %vm39_vm0, %v778_v10, 0.0 }
 0x592   :  { %785 = vadd.xlane.f32.xlu1 %v784_v55  ;;  %v753_v0 = vpop.xlane.xlu2 %752 }
 0x593   :  { %v767_v62 = vmul.f32 %v753_v0, %v2750_v18 }
 0x595   :  { %v3112_v39 = vsub.f32 %v741_v15, %v767_v62  ;;  %v2426_v15 = vld [vmem:[#allocation2 + $0x28] sm:$0xff] }
 0x596   :  { %930 = vmatpush.bf16.msra.mxu3 %v2426_v15 }
 0x597   :  { %v779_v9 = vmul.f32 %v3112_v39, %v3112_v39 }
 0x599   :  { %v787_v54 = vsel %vm39_vm0, %v779_v9, 0.0 }
 0x59a   :  { %788 = vadd.xlane.f32.xlu2 %v787_v54  ;;  %931 = vmatpush.bf16.msra.mxu3 %v2425_v38 }
 0x5a6   :  { %v756_v26 = vpop.xlane.xlu0 %755 }
 0x5a7   :  { %v768_v3 = vmul.f32 %v756_v26, %v2750_v18 }
 0x5a9   :  { %v3118_v7 = vsub.f32 %v742_v44, %v768_v3 }
 0x5ab   :  { %v780_v37 = vmul.f32 %v3118_v7, %v3118_v7 }
 0x5ad   :  { %v790_v24 = vsel %vm39_vm0, %v780_v37, 0.0 }
 0x5ae   :  { %v759_v5 = vpop.xlane.xlu1 %758  ;;  %791 = vadd.xlane.f32.xlu0 %v790_v24 }
 0x5af   :  { %v769_v12 = vmul.f32 %v759_v5, %v2750_v18 }
 0x5b1   :  { %v3124_v13 = vsub.f32 %v743_v46, %v769_v12 }
 0x5b3   :  { %v781_v16 = vmul.f32 %v3124_v13, %v3124_v13 }
 0x5b5   :  { %v793_v1 = vsel %vm39_vm0, %v781_v16, 0.0 }
 0x5b6   :  { %794 = vadd.xlane.f32.xlu1 %v793_v1  ;;  %v762_v17 = vpop.xlane.xlu2 %761 }
 0x5b7   :  { %v770_v51 = vmul.f32 %v762_v17, %v2750_v18 }
 0x5b9   :  { %v3130_v23 = vsub.f32 %v744_v20, %v770_v51 }
 0x5bb   :  { %v782_v29 = vmul.f32 %v3130_v23, %v3130_v23 }
 0x5bd   :  { %v796_v28 = vsel %vm39_vm0, %v782_v29, 0.0 }
 0x5be   :  { %v765_v30 = vpop.xlane.xlu0 %764  ;;  %797 = vadd.xlane.f32.xlu2 %v796_v28 }
 0x5bf   :  { %v771_v31 = vmul.f32 %v765_v30, %v2750_v18 }
 0x5c1   :  { %v3136_v32 = vsub.f32 %v745_v8, %v771_v31 }
 0x5c3   :  { %v783_v27 = vmul.f32 %v3136_v32, %v3136_v32 }
 0x5c5   :  { %v799_v34 = vsel %vm39_vm0, %v783_v27, 0.0 }
 0x5c6   :  { %800 = vadd.xlane.f32.xlu0 %v799_v34 }
 0x605   :  { %v786_v42 = vpop.xlane.xlu1 %785 }
 0x606   :  { %v802_v63 = vmul.f32 %v786_v42, %v2750_v18 }
 0x608   :  { %v808_v36 = vadd.f32 1e-05, %v802_v63 }
 0x60a   :  { %2546 = vrsqrt.f32 %v808_v36  ;;  %vm820_vm9 = vweird.f32 %v808_v36 }
 0x60d   :  { %v789_v43 = vpop.xlane.xlu2 %788 }
 0x60e   :  { %v803_v19 = vmul.f32 %v789_v43, %v2750_v18 }
 0x610   :  { %v2547_v44 = vpop.eup %2546  ;;  %v809_v40 = vadd.f32 1e-05, %v803_v19 }
 0x611   :  { %v815_v4 = vmul.f32 %v2547_v44, %v808_v36  ;;  %vm821_vm6 = vweird.f32 %v2547_v44 }
 0x612   :  { %2548 = vrsqrt.f32 %v809_v40  ;;  %vm822_vm12 = vmor %vm820_vm9, %vm821_vm6  ;;  %vm830_vm1 = vweird.f32 %v809_v40 }
 0x613   :  { %v816_v25 = vmul.f32 %v2547_v44, %v815_v4 }
 0x615   :  { %v817_v21 = vmul.f32 0.5, %v816_v25 }
 0x617   :  { %v818_v45 = vsub.f32 1.5, %v817_v21 }
 0x618   :  { %v2549_v46 = vpop.eup %2548 }
 0x619   :  { %v819_v47 = vmul.f32 %v2547_v44, %v818_v45  ;;  %v825_v6 = vmul.f32 %v2549_v46, %v809_v40  ;;  %vm831_vm14 = vweird.f32 %v2549_v46 }
 0x61a   :  { %vm832_vm3 = vmor %vm830_vm1, %vm831_vm14 }
 0x61b   :  { %v826_v48 = vmul.f32 %v2549_v46, %v825_v6  ;;  %v823_v49 = vsel %vm822_vm12, %v2547_v44, %v819_v47 }
 0x61c   :  { %v874_v41 = vmul.f32 %v823_v49, %v3106_v61 }
 0x61d   :  { %v827_v52 = vmul.f32 0.5, %v826_v48 }
 0x61e   :  { %v881_v14 = vmul.f32 %v3146_v57, %v874_v41 }
 0x61f   :  { %v828_v20 = vsub.f32 1.5, %v827_v52 }
 0x620   :  { %v3159_v61 = vadd.f32 %v3153_v58, %v881_v14 }
 0x621   :  { %v829_v53 = vmul.f32 %v2549_v46, %v828_v20  ;;  %v792_v35 = vpop.xlane.xlu0 %791 }
 0x622   :  { %v804_v56 = vmul.f32 %v792_v35, %v2750_v18 }
 0x623   :  { %v833_v8 = vsel %vm832_vm3, %v2549_v46, %v829_v53 }
 0x624   :  { %v875_v60 = vmul.f32 %v833_v8, %v3112_v39  ;;  %v810_v10 = vadd.f32 1e-05, %v804_v56 }
 0x626   :  { %v882_v55 = vmul.f32 %v3146_v57, %v875_v60  ;;  %2550 = vrsqrt.f32 %v810_v10  ;;  %vm840_vm6 = vweird.f32 %v810_v10 }
 0x628   :  { %v3162_v0 = vadd.f32 %v3153_v58, %v882_v55 }
 0x629   :  { %v795_v62 = vpop.xlane.xlu1 %794 }
 0x62a   :  { %v805_v9 = vmul.f32 %v795_v62, %v2750_v18  ;;  %v894_v54 = vpack.c.bf16 %v3162_v0, %v3159_v61 }
 0x62c   :  { %v2551_v26 = vpop.eup %2550  ;;  %v811_v3 = vadd.f32 1e-05, %v805_v9  ;;  %2306 = vmatmul.msk.bf16.vlgmr.msra.gmra.mxu3 %vm39_vm0, %v894_v54  ;;  %v2433_v9 = vld [vmem:[#allocation2 + $0x60] sm:$0xff]  ;;  %v2431_v54 = vld [vmem:[#allocation2 + $0x50] sm:$0xff] }
 0x62d   :  { %v835_v39 = vmul.f32 %v2551_v26, %v810_v10  ;;  %vm841_vm7 = vweird.f32 %v2551_v26 }
 0x62e   :  { %2552 = vrsqrt.f32 %v811_v3  ;;  %vm842_vm9 = vmor %vm840_vm6, %vm841_vm7  ;;  %vm850_vm14 = vweird.f32 %v811_v3 }
 0x62f   :  { %v836_v37 = vmul.f32 %v2551_v26, %v835_v39 }
 0x631   :  { %v837_v24 = vmul.f32 0.5, %v836_v37  ;;  %v798_v5 = vpop.xlane.xlu2 %797 }
 0x632   :  { %v806_v12 = vmul.f32 %v798_v5, %v2750_v18 }
 0x633   :  { %v838_v16 = vsub.f32 1.5, %v837_v24  ;;  %v2427_v24 = vld [vmem:[#allocation2 + $0x30] sm:$0xff] }
 0x634   :  { %v2553_v1 = vpop.eup %2552  ;;  %v812_v17 = vadd.f32 1e-05, %v806_v12 }
 0x635   :  { %v839_v51 = vmul.f32 %v2551_v26, %v838_v16  ;;  %v845_v29 = vmul.f32 %v2553_v1, %v811_v3  ;;  %vm851_vm12 = vweird.f32 %v2553_v1  ;;  %v2428_v3 = vld [vmem:[#allocation2 + $0x38] sm:$0xff] }
 0x636   :  { %2554 = vrsqrt.f32 %v812_v17  ;;  %vm852_vm1 = vmor %vm850_vm14, %vm851_vm12  ;;  %vm860_vm7 = vweird.f32 %v812_v17 }
 0x637   :  { %v846_v28 = vmul.f32 %v2553_v1, %v845_v29  ;;  %v843_v30 = vsel %vm842_vm9, %v2551_v26, %v839_v51  ;;  %v2429_v26 = vld [vmem:[#allocation2 + $0x40] sm:$0xff] }
 0x638   :  { %v876_v63 = vmul.f32 %v843_v30, %v3118_v7 }
 0x639   :  { %v847_v31 = vmul.f32 0.5, %v846_v28  ;;  %v801_v27 = vpop.xlane.xlu0 %800 }
 0x63a   :  { %v807_v34 = vmul.f32 %v801_v27, %v2750_v18  ;;  %v883_v4 = vmul.f32 %v3146_v57, %v876_v63 }
 0x63b   :  { %v848_v42 = vsub.f32 1.5, %v847_v31 }
 0x63c   :  { %v2555_v15 = vpop.eup %2554  ;;  %v813_v36 = vadd.f32 1e-05, %v807_v34  ;;  %v3175_v47 = vadd.f32 %v3153_v58, %v883_v4 }
 0x63d   :  { %v849_v38 = vmul.f32 %v2553_v1, %v848_v42  ;;  %v855_v43 = vmul.f32 %v2555_v15, %v812_v17  ;;  %vm861_vm3 = vweird.f32 %v2555_v15 }
 0x63e   :  { %2556 = vrsqrt.f32 %v813_v36  ;;  %vm862_vm6 = vmor %vm860_vm7, %vm861_vm3  ;;  %vm870_vm12 = vweird.f32 %v813_v36 }
 0x63f   :  { %v853_v19 = vsel %vm852_vm1, %v2553_v1, %v849_v38  ;;  %v856_v44 = vmul.f32 %v2555_v15, %v855_v43 }
 0x640   :  { %v877_v40 = vmul.f32 %v853_v19, %v3124_v13 }
 0x641   :  { %v857_v25 = vmul.f32 0.5, %v856_v44 }
 0x642   :  { %v884_v21 = vmul.f32 %v3146_v57, %v877_v40 }
 0x643   :  { %v858_v45 = vsub.f32 1.5, %v857_v25 }
 0x644   :  { %v2557_v46 = vpop.eup %2556  ;;  %v3178_v7 = vadd.f32 %v3153_v58, %v884_v21 }
 0x645   :  { %v859_v6 = vmul.f32 %v2555_v15, %v858_v45  ;;  %v865_v48 = vmul.f32 %v2557_v46, %v813_v36  ;;  %vm871_vm9 = vweird.f32 %v2557_v46 }
 0x646   :  { %v895_v49 = vpack.c.bf16 %v3178_v7, %v3175_v47  ;;  %vm872_vm14 = vmor %vm870_vm12, %vm871_vm9 }
 0x647   :  { %v866_v13 = vmul.f32 %v2557_v46, %v865_v48  ;;  %v863_v52 = vsel %vm862_vm6, %v2555_v15, %v859_v6 }
 0x648   :  { %2307 = vmatmul.msk.bf16.gmra.mxu3 %vm39_vm0, %v895_v49  ;;  %v878_v53 = vmul.f32 %v863_v52, %v3130_v23  ;;  %v2434_v23 = vld [vmem:[#allocation2 + $0x68] sm:$0xff] }
 0x649   :  { %v867_v20 = vmul.f32 0.5, %v866_v13  ;;  %1071 = vmatpush.bf16.msrb.mxu0 %v2434_v23 }
 0x64a   :  { %v885_v14 = vmul.f32 %v3146_v57, %v878_v53 }
 0x64b   :  { %v868_v41 = vsub.f32 1.5, %v867_v20 }
 0x64c   :  { %v3188_v10 = vadd.f32 %v3153_v58, %v885_v14 }
 0x64d   :  { %v869_v35 = vmul.f32 %v2557_v46, %v868_v41  ;;  %1072 = vmatpush.bf16.msrb.mxu0 %v2433_v9 }
 0x64f   :  { %v873_v56 = vsel %vm872_vm14, %v2557_v46, %v869_v35 }
 0x650   :  { %v879_v8 = vmul.f32 %v873_v56, %v3136_v32  ;;  %v2432_v32 = vld [vmem:[#allocation2 + $0x58] sm:$0xff] }
 0x651   :  { %1073 = vmatpush.bf16.msrb.mxu0 %v2432_v32 }
 0x652   :  { %v886_v60 = vmul.f32 %v3146_v57, %v879_v8  ;;  %v2430_v57 = vld [vmem:[#allocation2 + $0x48] sm:$0xff] }
 0x654   :  { %v3191_v55 = vadd.f32 %v3153_v58, %v886_v60  ;;  %v2472_v58 = vld [vmem:[%s3686_s2 + $0x6] ss:$0 sm:$0xff] }
 0x655   :  { %1074 = vmatpush.bf16.msrb.mxu0 %v2431_v54 }
 0x656   :  { %v896_v62 = vpack.c.bf16 %v3191_v55, %v3188_v10 }
 0x658   :  { %2308 = vmatmul.msk.bf16.gmra.mxu3 %vm39_vm0, %v896_v62 }
 0x659   :  { %1075 = vmatpush.bf16.msrb.mxu0 %v2430_v57 }
 0x65d   :  { %1076 = vmatpush.bf16.msrb.mxu0 %v2429_v26 }
 0x661   :  { %1077 = vmatpush.bf16.msrb.mxu0 %v2428_v3 }
 0x665   :  { %1078 = vmatpush.bf16.msrb.mxu0 %v2427_v24 }
 0x6af   :  { %v933_v39 = vpop.f32.mrf.mxu3 }
 0x6b0   :  { %v934_v37 = vadd.f32 %v2472_v58, %v933_v39 }
 0x6b2   :  { %v948_v5 = vmul.f32 %v934_v37, %v934_v37 }
 0x6b4   :  { %v954_v12 = vmul.f32 %v948_v5, %v934_v37 }
 0x6b6   :  { %v960_v16 = vmul.f32 0.044715, %v954_v12 }
 0x6b7   :  { %v935_v1 = vpop.f32.mrf.mxu3 }
 0x6b8   :  { %v966_v17 = vadd.f32 %v960_v16, %v934_v37  ;;  %v936_v51 = vadd.f32 %v2472_v58, %v935_v1 }
 0x6ba   :  { %v972_v29 = vmul.f32 0.7978846, %v966_v17  ;;  %v949_v28 = vmul.f32 %v936_v51, %v936_v51 }
 0x6bc   :  { %v955_v30 = vmul.f32 %v949_v28, %v936_v51  ;;  %2558 = vtanh.f32 %v972_v29 }
 0x6be   :  { %v961_v31 = vmul.f32 0.044715, %v955_v30 }
 0x6c0   :  { %v967_v27 = vadd.f32 %v961_v31, %v936_v51 }
 0x6c2   :  { %v973_v34 = vmul.f32 0.7978846, %v967_v27  ;;  %v2559_v42 = vpop.eup %2558 }
 0x6c3   :  { %v984_v15 = vadd.f32 1.0, %v2559_v42 }
 0x6c4   :  { %2560 = vtanh.f32 %v973_v34 }
 0x6c5   :  { %v990_v36 = vmul.f32 0.5, %v984_v15 }
 0x6c7   :  { %v996_v4 = vmul.f32 %v990_v36, %v934_v37 }
 0x6ca   :  { %v2561_v63 = vpop.eup %2560 }
 0x6cb   :  { %v985_v38 = vadd.f32 1.0, %v2561_v63  ;;  %v938_v43 = vpop.f32.mrf.mxu3 }
 0x6cc   :  { %v939_v19 = vadd.f32 %v2472_v58, %v938_v43 }
 0x6cd   :  { %v991_v44 = vmul.f32 0.5, %v985_v38  ;;  %v2473_v38 = vld [vmem:[%s3686_s2 + $0x7] ss:$0 sm:$0xff] }
 0x6ce   :  { %v950_v40 = vmul.f32 %v939_v19, %v939_v19 }
 0x6cf   :  { %v997_v25 = vmul.f32 %v991_v44, %v936_v51 }
 0x6d0   :  { %v956_v21 = vmul.f32 %v950_v40, %v939_v19 }
 0x6d1   :  { %v1002_v45 = vpack.c.bf16 %v997_v25, %v996_v4 }
 0x6d2   :  { %v962_v46 = vmul.f32 0.044715, %v956_v21 }
 0x6d3   :  { %v940_v6 = vpop.f32.mrf.mxu3  ;;  %1079 = vmatmul.bf16.vlgmr.msrb.gmra.mxu0 %v1002_v45 }
 0x6d4   :  { %v968_v48 = vadd.f32 %v962_v46, %v939_v19  ;;  %v941_v49 = vadd.f32 %v2472_v58, %v940_v6 }
 0x6d6   :  { %v951_v13 = vmul.f32 %v941_v49, %v941_v49  ;;  %v974_v52 = vmul.f32 0.7978846, %v968_v48 }
 0x6d8   :  { %v957_v20 = vmul.f32 %v951_v13, %v941_v49  ;;  %2562 = vtanh.f32 %v974_v52 }
 0x6da   :  { %v963_v41 = vmul.f32 0.044715, %v957_v20 }
 0x6db   :  { %v943_v53 = vpop.f32.mrf.mxu3 }
 0x6dc   :  { %v969_v35 = vadd.f32 %v963_v41, %v941_v49  ;;  %v944_v56 = vadd.f32 %v2472_v58, %v943_v53 }
 0x6de   :  { %v952_v8 = vmul.f32 %v944_v56, %v944_v56  ;;  %v975_v14 = vmul.f32 0.7978846, %v969_v35  ;;  %v2563_v60 = vpop.eup %2562 }
 0x6df   :  { %v986_v32 = vadd.f32 1.0, %v2563_v60 }
 0x6e0   :  { %v958_v62 = vmul.f32 %v952_v8, %v944_v56  ;;  %2564 = vtanh.f32 %v975_v14 }
 0x6e1   :  { %v992_v24 = vmul.f32 0.5, %v986_v32 }
 0x6e2   :  { %v964_v23 = vmul.f32 0.044715, %v958_v62 }
 0x6e3   :  { %v945_v9 = vpop.f32.mrf.mxu3  ;;  %v998_v1 = vmul.f32 %v992_v24, %v939_v19 }
 0x6e4   :  { %v970_v54 = vadd.f32 %v964_v23, %v944_v56  ;;  %v946_v57 = vadd.f32 %v2472_v58, %v945_v9 }
 0x6e6   :  { %v2565_v26 = vpop.eup %2564  ;;  %v953_v3 = vmul.f32 %v946_v57, %v946_v57  ;;  %v976_v39 = vmul.f32 0.7978846, %v970_v54 }
 0x6e7   :  { %v987_v37 = vadd.f32 1.0, %v2565_v26 }
 0x6e8   :  { %v959_v5 = vmul.f32 %v953_v3, %v946_v57  ;;  %2566 = vtanh.f32 %v976_v39 }
 0x6e9   :  { %v993_v12 = vmul.f32 0.5, %v987_v37 }
 0x6ea   :  { %v965_v16 = vmul.f32 0.044715, %v959_v5 }
 0x6eb   :  { %v999_v17 = vmul.f32 %v993_v12, %v941_v49 }
 0x6ec   :  { %v971_v51 = vadd.f32 %v965_v16, %v946_v57 }
 0x6ed   :  { %v1003_v29 = vpack.c.bf16 %v999_v17, %v998_v1 }
 0x6ee   :  { %v977_v28 = vmul.f32 0.7978846, %v971_v51  ;;  %v2567_v30 = vpop.eup %2566 }
 0x6ef   :  { %1084 = vmatmul.bf16.gmra.mxu0 %v1003_v29  ;;  %v988_v31 = vadd.f32 1.0, %v2567_v30 }
 0x6f0   :  { %2568 = vtanh.f32 %v977_v28 }
 0x6f1   :  { %v994_v34 = vmul.f32 0.5, %v988_v31 }
 0x6f3   :  { %v1000_v15 = vmul.f32 %v994_v34, %v944_v56 }
 0x6f6   :  { %v2569_v27 = vpop.eup %2568 }
 0x6f7   :  { %v989_v58 = vadd.f32 1.0, %v2569_v27 }
 0x6f9   :  { %v995_v42 = vmul.f32 0.5, %v989_v58 }
 0x6fb   :  { %v1001_v63 = vmul.f32 %v995_v42, %v946_v57 }
 0x6fd   :  { %v1004_v36 = vpack.c.bf16 %v1001_v63, %v1000_v15 }
 0x6ff   :  { %1089 = vmatmul.bf16.gmra.mxu0 %v1004_v36  ;;  %v2436_v36 = vld [vmem:[#allocation2 + $0x78] sm:$0xff] }
 0x700   :  { %1285 = vmatpush.bf16.msra.mxu2 %v2436_v36 }
 0x750   :  { %v1080_v43 = vpop.f32.mrf.mxu0 }
 0x751   :  { %v1081_v19 = vadd.f32 %v2473_v38, %v1080_v43 }
 0x753   :  { %v1095_v44 = vadd.f32 %v1081_v19, %v3159_v61  ;;  %v2435_v19 = vld [vmem:[#allocation2 + $0x70] sm:$0xff] }
 0x754   :  { %1286 = vmatpush.bf16.msra.mxu2 %v2435_v19 }
 0x755   :  { %v1103_v40 = vsel %vm39_vm0, %v1095_v44, 0.0 }
 0x756   :  { %1104 = vadd.xlane.f32.xlu1 %v1103_v40 }
 0x758   :  { %v1082_v4 = vpop.f32.mrf.mxu0 }
 0x759   :  { %v1083_v25 = vadd.f32 %v2473_v38, %v1082_v4 }
 0x75b   :  { %v1096_v21 = vadd.f32 %v1083_v25, %v3162_v0 }
 0x75d   :  { %v1106_v45 = vsel %vm39_vm0, %v1096_v21, 0.0 }
 0x75e   :  { %1107 = vadd.xlane.f32.xlu2 %v1106_v45 }
 0x76c   :  { %v1085_v46 = vpop.f32.mrf.mxu0 }
 0x76d   :  { %v1086_v6 = vadd.f32 %v2473_v38, %v1085_v46 }
 0x76f   :  { %v1097_v48 = vadd.f32 %v1086_v6, %v3175_v47 }
 0x771   :  { %v1109_v49 = vsel %vm39_vm0, %v1097_v48, 0.0 }
 0x772   :  { %1110 = vadd.xlane.f32.xlu0 %v1109_v49 }
 0x774   :  { %v1087_v13 = vpop.f32.mrf.mxu0 }
 0x775   :  { %v1088_v52 = vadd.f32 %v2473_v38, %v1087_v13 }
 0x777   :  { %v1098_v61 = vadd.f32 %v1088_v52, %v3178_v7 }
 0x779   :  { %v1112_v20 = vsel %vm39_vm0, %v1098_v61, 0.0 }
 0x77a   :  { %1113 = vadd.xlane.f32.xlu1 %v1112_v20 }
 0x77c   :  { %v1090_v41 = vpop.f32.mrf.mxu0 }
 0x77d   :  { %v1091_v53 = vadd.f32 %v2473_v38, %v1090_v41 }
 0x77f   :  { %v1099_v0 = vadd.f32 %v1091_v53, %v3188_v10  ;;  %v3255_v53 = vld [vmem:[%s3686_s2 + $0x8] ss:$0 sm:$0xff] }
 0x781   :  { %v1115_v35 = vsel %vm39_vm0, %v1099_v0, 0.0 }
 0x782   :  { %1116 = vadd.xlane.f32.xlu2 %v1115_v35 }
 0x784   :  { %v1092_v56 = vpop.f32.mrf.mxu0 }
 0x785   :  { %v1093_v8 = vadd.f32 %v2473_v38, %v1092_v56 }
 0x787   :  { %v1100_v47 = vadd.f32 %v1093_v8, %v3191_v55 }
 0x789   :  { %v1118_v14 = vsel %vm39_vm0, %v1100_v47, 0.0 }
 0x78a   :  { %1119 = vadd.xlane.f32.xlu0 %v1118_v14  ;;  %v3262_v14 = vld [vmem:[%s3686_s2 + $0x9] ss:$0 sm:$0xff] }
 0x7c9   :  { %v1105_v60 = vpop.xlane.xlu1 %1104 }
 0x7ca   :  { %v1121_v7 = vmul.f32 %v1105_v60, %v2750_v18 }
 0x7cc   :  { %v3215_v62 = vsub.f32 %v1095_v44, %v1121_v7 }
 0x7ce   :  { %v1133_v23 = vmul.f32 %v3215_v62, %v3215_v62 }
 0x7d0   :  { %v1139_v10 = vsel %vm39_vm0, %v1133_v23, 0.0 }
 0x7d1   :  { %1140 = vadd.xlane.f32.xlu1 %v1139_v10  ;;  %v1108_v9 = vpop.xlane.xlu2 %1107 }
 0x7d2   :  { %v1122_v32 = vmul.f32 %v1108_v9, %v2750_v18 }
 0x7d4   :  { %v3221_v54 = vsub.f32 %v1096_v21, %v1122_v32 }
 0x7d6   :  { %v1134_v55 = vmul.f32 %v3221_v54, %v3221_v54 }
 0x7d8   :  { %v1142_v57 = vsel %vm39_vm0, %v1134_v55, 0.0 }
 0x7d9   :  { %1143 = vadd.xlane.f32.xlu2 %v1142_v57 }
 0x7e5   :  { %v1111_v26 = vpop.xlane.xlu0 %1110 }
 0x7e6   :  { %v1123_v3 = vmul.f32 %v1111_v26, %v2750_v18 }
 0x7e8   :  { %v3227_v39 = vsub.f32 %v1097_v48, %v1123_v3 }
 0x7ea   :  { %v1135_v37 = vmul.f32 %v3227_v39, %v3227_v39 }
 0x7ec   :  { %v1145_v24 = vsel %vm39_vm0, %v1135_v37, 0.0 }
 0x7ed   :  { %v1114_v5 = vpop.xlane.xlu1 %1113  ;;  %1146 = vadd.xlane.f32.xlu0 %v1145_v24 }
 0x7ee   :  { %v1124_v12 = vmul.f32 %v1114_v5, %v2750_v18 }
 0x7f0   :  { %v3233_v16 = vsub.f32 %v1098_v61, %v1124_v12 }
 0x7f2   :  { %v1136_v1 = vmul.f32 %v3233_v16, %v3233_v16 }
 0x7f4   :  { %v1148_v17 = vsel %vm39_vm0, %v1136_v1, 0.0 }
 0x7f5   :  { %1149 = vadd.xlane.f32.xlu1 %v1148_v17  ;;  %v1117_v51 = vpop.xlane.xlu2 %1116 }
 0x7f6   :  { %v1125_v29 = vmul.f32 %v1117_v51, %v2750_v18 }
 0x7f8   :  { %v3239_v28 = vsub.f32 %v1099_v0, %v1125_v29 }
 0x7fa   :  { %v1137_v30 = vmul.f32 %v3239_v28, %v3239_v28 }
 0x7fc   :  { %v1151_v31 = vsel %vm39_vm0, %v1137_v30, 0.0 }
 0x7fd   :  { %v1120_v27 = vpop.xlane.xlu0 %1119  ;;  %1152 = vadd.xlane.f32.xlu2 %v1151_v31 }
 0x7fe   :  { %v1126_v58 = vmul.f32 %v1120_v27, %v2750_v18 }
 0x800   :  { %v3245_v34 = vsub.f32 %v1100_v47, %v1126_v58 }
 0x802   :  { %v1138_v42 = vmul.f32 %v3245_v34, %v3245_v34 }
 0x804   :  { %v1154_v15 = vsel %vm39_vm0, %v1138_v42, 0.0 }
 0x805   :  { %1155 = vadd.xlane.f32.xlu0 %v1154_v15 }
 0x844   :  { %v1141_v63 = vpop.xlane.xlu1 %1140 }
 0x845   :  { %v1157_v38 = vmul.f32 %v1141_v63, %v2750_v18 }
 0x847   :  { %v1163_v43 = vadd.f32 1e-05, %v1157_v38 }
 0x849   :  { %2570 = vrsqrt.f32 %v1163_v43  ;;  %vm1175_vm3 = vweird.f32 %v1163_v43 }
 0x84c   :  { %v1144_v44 = vpop.xlane.xlu2 %1143 }
 0x84d   :  { %v1158_v40 = vmul.f32 %v1144_v44, %v2750_v18 }
 0x84f   :  { %v2571_v4 = vpop.eup %2570  ;;  %v1164_v25 = vadd.f32 1e-05, %v1158_v40 }
 0x850   :  { %v1170_v21 = vmul.f32 %v2571_v4, %v1163_v43  ;;  %vm1176_vm1 = vweird.f32 %v2571_v4 }
 0x851   :  { %2572 = vrsqrt.f32 %v1164_v25  ;;  %vm1177_vm7 = vmor %vm1175_vm3, %vm1176_vm1  ;;  %vm1185_vm9 = vweird.f32 %v1164_v25 }
 0x852   :  { %v1171_v45 = vmul.f32 %v2571_v4, %v1170_v21 }
 0x854   :  { %v1172_v46 = vmul.f32 0.5, %v1171_v45 }
 0x856   :  { %v1173_v6 = vsub.f32 1.5, %v1172_v46 }
 0x857   :  { %v2573_v48 = vpop.eup %2572 }
 0x858   :  { %v1174_v49 = vmul.f32 %v2571_v4, %v1173_v6  ;;  %v1180_v13 = vmul.f32 %v2573_v48, %v1164_v25  ;;  %vm1186_vm6 = vweird.f32 %v2573_v48 }
 0x859   :  { %vm1187_vm12 = vmor %vm1185_vm9, %vm1186_vm6 }
 0x85a   :  { %v1181_v52 = vmul.f32 %v2573_v48, %v1180_v13  ;;  %v1178_v61 = vsel %vm1177_vm7, %v2571_v4, %v1174_v49 }
 0x85b   :  { %v1229_v0 = vmul.f32 %v1178_v61, %v3215_v62 }
 0x85c   :  { %v1182_v20 = vmul.f32 0.5, %v1181_v52 }
 0x85d   :  { %v1236_v60 = vmul.f32 %v3255_v53, %v1229_v0 }
 0x85e   :  { %v1183_v41 = vsub.f32 1.5, %v1182_v20 }
 0x85f   :  { %v3268_v62 = vadd.f32 %v3262_v14, %v1236_v60 }
 0x860   :  { %v1184_v35 = vmul.f32 %v2573_v48, %v1183_v41  ;;  %v1147_v56 = vpop.xlane.xlu0 %1146 }
 0x861   :  { %v1159_v8 = vmul.f32 %v1147_v56, %v2750_v18 }
 0x862   :  { %v1188_v47 = vsel %vm1187_vm12, %v2573_v48, %v1184_v35 }
 0x863   :  { %v1230_v7 = vmul.f32 %v1188_v47, %v3221_v54  ;;  %v1165_v23 = vadd.f32 1e-05, %v1159_v8 }
 0x865   :  { %v1237_v10 = vmul.f32 %v3255_v53, %v1230_v7  ;;  %2574 = vrsqrt.f32 %v1165_v23  ;;  %vm1195_vm1 = vweird.f32 %v1165_v23 }
 0x867   :  { %v3271_v9 = vadd.f32 %v3262_v14, %v1237_v10 }
 0x868   :  { %v1150_v32 = vpop.xlane.xlu1 %1149 }
 0x869   :  { %v1160_v55 = vmul.f32 %v1150_v32, %v2750_v18  ;;  %v1249_v57 = vpack.c.bf16 %v3271_v9, %v3268_v62 }
 0x86b   :  { %v2575_v26 = vpop.eup %2574  ;;  %v1166_v3 = vadd.f32 1e-05, %v1160_v55  ;;  %2349 = vmatmul.msk.bf16.vlgmr.msra.gmra.mxu2 %vm39_vm0, %v1249_v57 }
 0x86c   :  { %v1190_v54 = vmul.f32 %v2575_v26, %v1165_v23  ;;  %vm1196_vm14 = vweird.f32 %v2575_v26 }
 0x86d   :  { %2576 = vrsqrt.f32 %v1166_v3  ;;  %vm1197_vm3 = vmor %vm1195_vm1, %vm1196_vm14  ;;  %vm1205_vm6 = vweird.f32 %v1166_v3 }
 0x86e   :  { %v1191_v37 = vmul.f32 %v2575_v26, %v1190_v54 }
 0x870   :  { %v1192_v24 = vmul.f32 0.5, %v1191_v37  ;;  %v1153_v5 = vpop.xlane.xlu2 %1152 }
 0x871   :  { %v1161_v12 = vmul.f32 %v1153_v5, %v2750_v18 }
 0x872   :  { %v1193_v1 = vsub.f32 1.5, %v1192_v24 }
 0x873   :  { %v2577_v17 = vpop.eup %2576  ;;  %v1167_v51 = vadd.f32 1e-05, %v1161_v12 }
 0x874   :  { %v1194_v29 = vmul.f32 %v2575_v26, %v1193_v1  ;;  %v1200_v30 = vmul.f32 %v2577_v17, %v1166_v3  ;;  %vm1206_vm7 = vweird.f32 %v2577_v17 }
 0x875   :  { %2578 = vrsqrt.f32 %v1167_v51  ;;  %vm1207_vm9 = vmor %vm1205_vm6, %vm1206_vm7  ;;  %vm1215_vm14 = vweird.f32 %v1167_v51 }
 0x876   :  { %v1201_v31 = vmul.f32 %v2577_v17, %v1200_v30  ;;  %v1198_v27 = vsel %vm1197_vm3, %v2575_v26, %v1194_v29 }
 0x877   :  { %v1231_v38 = vmul.f32 %v1198_v27, %v3227_v39 }
 0x878   :  { %v1202_v58 = vmul.f32 0.5, %v1201_v31  ;;  %v1156_v42 = vpop.xlane.xlu0 %1155 }
 0x879   :  { %v1162_v15 = vmul.f32 %v1156_v42, %v2750_v18  ;;  %v1238_v21 = vmul.f32 %v3255_v53, %v1231_v38 }
 0x87a   :  { %v1203_v63 = vsub.f32 1.5, %v1202_v58 }
 0x87b   :  { %v2579_v36 = vpop.eup %2578  ;;  %v1168_v43 = vadd.f32 1e-05, %v1162_v15  ;;  %v3284_v49 = vadd.f32 %v3262_v14, %v1238_v21 }
 0x87c   :  { %v1204_v19 = vmul.f32 %v2577_v17, %v1203_v63  ;;  %v1210_v44 = vmul.f32 %v2579_v36, %v1167_v51  ;;  %vm1216_vm12 = vweird.f32 %v2579_v36 }
 0x87d   :  { %2580 = vrsqrt.f32 %v1168_v43  ;;  %vm1217_vm1 = vmor %vm1215_vm14, %vm1216_vm12  ;;  %vm1225_vm7 = vweird.f32 %v1168_v43 }
 0x87e   :  { %v1208_v40 = vsel %vm1207_vm9, %v2577_v17, %v1204_v19  ;;  %v1211_v4 = vmul.f32 %v2579_v36, %v1210_v44 }
 0x87f   :  { %v1232_v25 = vmul.f32 %v1208_v40, %v3233_v16 }
 0x880   :  { %v1212_v45 = vmul.f32 0.5, %v1211_v4 }
 0x881   :  { %v1239_v46 = vmul.f32 %v3255_v53, %v1232_v25 }
 0x882   :  { %v1213_v6 = vsub.f32 1.5, %v1212_v45 }
 0x883   :  { %v2581_v48 = vpop.eup %2580  ;;  %v3287_v39 = vadd.f32 %v3262_v14, %v1239_v46 }
 0x884   :  { %v1214_v13 = vmul.f32 %v2579_v36, %v1213_v6  ;;  %v1220_v52 = vmul.f32 %v2581_v48, %v1168_v43  ;;  %vm1226_vm3 = vweird.f32 %v2581_v48 }
 0x885   :  { %v1250_v61 = vpack.c.bf16 %v3287_v39, %v3284_v49  ;;  %vm1227_vm6 = vmor %vm1225_vm7, %vm1226_vm3 }
 0x886   :  { %v1221_v16 = vmul.f32 %v2581_v48, %v1220_v52  ;;  %v1218_v20 = vsel %vm1217_vm1, %v2579_v36, %v1214_v13 }
 0x887   :  { %2350 = vmatmul.msk.bf16.gmra.mxu2 %vm39_vm0, %v1250_v61  ;;  %v1233_v35 = vmul.f32 %v1218_v20, %v3239_v28 }
 0x888   :  { %v1222_v41 = vmul.f32 0.5, %v1221_v16 }
 0x889   :  { %v1240_v60 = vmul.f32 %v3255_v53, %v1233_v35 }
 0x88a   :  { %v1223_v0 = vsub.f32 1.5, %v1222_v41 }
 0x88b   :  { %v3297_v23 = vadd.f32 %v3262_v14, %v1240_v60 }
 0x88c   :  { %v1224_v56 = vmul.f32 %v2581_v48, %v1223_v0 }
 0x88e   :  { %v1228_v8 = vsel %vm1227_vm6, %v2581_v48, %v1224_v56 }
 0x88f   :  { %v1234_v47 = vmul.f32 %v1228_v8, %v3245_v34  ;;  %v2476_v34 = vld [vmem:[%s3686_s2 + $0xa] ss:$0 sm:$0xff] }
 0x891   :  { %v1241_v7 = vmul.f32 %v3255_v53, %v1234_v47 }
 0x893   :  { %v3300_v10 = vadd.f32 %v3262_v14, %v1241_v7 }
 0x895   :  { %v1251_v32 = vpack.c.bf16 %v3300_v10, %v3297_v23 }
 0x897   :  { %2351 = vmatmul.msk.bf16.gmra.mxu2 %vm39_vm0, %v1251_v32 }
 0x8ee   :  { %v1288_v28 = vpop.f32.mrf.mxu2 }
 0x8ef   :  { %v1289_v24 = vadd.f32 %v2476_v34, %v1288_v28 }
 0x8f6   :  { %v1290_v55 = vpop.f32.mrf.mxu2 }
 0x8f7   :  { %v1291_v14 = vadd.f32 %v2476_v34, %v1290_v55 }
 0x8f9   :  { %v3312_v5 = vpack.c.bf16 %v1291_v14, %v1289_v24 }
 0x90a   :  { %v1293_v57 = vpop.f32.mrf.mxu2 }
 0x90b   :  { %v1294_v53 = vadd.f32 %v2476_v34, %v1293_v57 }
 0x912   :  { %v1295_v26 = vpop.f32.mrf.mxu2 }
 0x913   :  { %v1296_v3 = vadd.f32 %v2476_v34, %v1295_v26 }
 0x915   :  { %v3308_v54 = vpack.c.bf16 %v1296_v3, %v1294_v53 }
 0x917   :  { %1311 = vrot.lane.b32.xlu0 %v3308_v54, %s2696_s8 }
 0x91a   :  { %v1298_v37 = vpop.f32.mrf.mxu2 }
 0x91b   :  { %v1299_v1 = vadd.f32 %v2476_v34, %v1298_v37 }
 0x91f   :  { %1309 = vrot.lane.b32.xlu0 %v3312_v5, %s2696_s8 }
 0x922   :  { %v1300_v12 = vpop.f32.mrf.mxu2 }
 0x923   :  { %v1301_v17 = vadd.f32 %v2476_v34, %v1300_v12 }
 0x925   :  { %v3316_v51 = vpack.c.bf16 %v1301_v17, %v1299_v1 }
 0x927   :  { %1481 = vrot.lane.b32.xlu0 %v3308_v54, %s2698_s10  ;;  %1489 = vrot.lane.b32.xlu2 %v3316_v51, %s2697_s9 }
 0x928   :  { %1313 = vrot.lane.b32.xlu1 %v3316_v51, %s2696_s8 }
 0x92f   :  { %1485 = vrot.lane.b32.xlu2 %v3312_v5, %s2697_s9 }
 0x930   :  { %1487 = vrot.lane.b32.xlu1 %v3308_v54, %s2697_s9 }
 0x937   :  { %1483 = vrot.lane.b32.xlu2 %v3316_v51, %s2698_s10 }
 0x938   :  { %1479 = vrot.lane.b32.xlu1 %v3312_v5, %s2698_s10 }
 0x93f   :  { %1436 = vrot.lane.b32.xlu2 %v3316_v51, %s2693_s17 }
 0x940   :  { %1434 = vrot.lane.b32.xlu1 %v3308_v54, %s2693_s17 }
 0x981   :  { %v1490_v29 = vpop.permute.xlu2 %1489 }
 0x982   :  { %v1507_v30 = vsel %vm312_vm5, %v1490_v29, 0 }
 0x983   :  { %1514 = vmatpush.bf16.xpose.msra.mxu0 %v1507_v30 }
 0x989   :  { %v1486_v31 = vpop.permute.xlu2 %1485  ;;  %v1312_v63 = vpop.permute.xlu0 %1311 }
 0x98a   :  { %v1328_v38 = vsel %vm312_vm5, %v1312_v63, 0  ;;  %v1501_v40 = vsel %vm312_vm5, %v1486_v31, 0 }
 0x991   :  { %v1484_v27 = vpop.permute.xlu2 %1483  ;;  %v1310_v19 = vpop.permute.xlu0 %1309 }
 0x992   :  { %v1325_v4 = vsel %vm312_vm5, %v1310_v19, 0 }
 0x999   :  { %v1437_v58 = vpop.permute.xlu2 %1436  ;;  %v1482_v21 = vpop.permute.xlu0 %1481 }
 0x99a   :  { %v1314_v42 = vpop.permute.xlu1 %1313  ;;  %1455 = vmatpush.bf16.msrb.mxu3 %v1437_v58 }
 0x99b   :  { %v1331_v15 = vsel %vm312_vm5, %v1314_v42, 0 }
 0x99c   :  { %1338 = vmatpush.bf16.xpose.msrb.mxu1 %v1331_v15 }
 0x9a2   :  { %v1488_v36 = vpop.permute.xlu1 %1487 }
 0x9a3   :  { %v1504_v43 = vsel %vm312_vm5, %v1488_v36, 0 }
 0x9a4   :  { %1339 = vmatpush.bf16.xpose.msrb.mxu1 %v1328_v38  ;;  %1515 = vmatpush.bf16.xpose.msra.mxu0 %v1504_v43 }
 0x9aa   :  { %v1480_v44 = vpop.permute.xlu1 %1479 }
 0x9ac   :  { %1340 = vmatpush.bf16.xpose.msrb.mxu1 %v1325_v4  ;;  %1516 = vmatpush.bf16.xpose.msra.mxu0 %v1501_v40 }
 0x9b2   :  { %v1435_v25 = vpop.permute.xlu1 %1434 }
 0x9b3   :  { %2352 = vmatmul.msk.bf16.vlgmr.msrb.gmra.mxu1 %vm312_vm5, %v3312_v5  ;;  %1456 = vmatpush.bf16.msrb.mxu3 %v1435_v25 }
 0x9b4   :  { %2358 = vmatmul.msk.bf16.vlgmr.msra.gmra.mxu0 %vm312_vm5, %v1480_v44 }
 0x9c3   :  { %2353 = vmatmul.msk.bf16.gmra.mxu1 %vm312_vm5, %v3308_v54 }
 0x9c4   :  { %2359 = vmatmul.msk.bf16.gmra.mxu0 %vm312_vm5, %v1482_v21 }
 0x9d3   :  { %2354 = vmatmul.msk.bf16.gmra.mxu1 %vm312_vm5, %v3316_v51 }
 0x9d4   :  { %2360 = vmatmul.msk.bf16.gmra.mxu0 %vm312_vm5, %v1484_v27 }
 0xa30   :  { %v1342_v45 = vpop.f32.mrf.mxu1 }
 0xa31   :  { %v1357_v46 = vsel %vm2915_vm10, %v1342_v45, -1e+30  ;;  %v1518_v6 = vpop.f32.mrf.mxu0 }
 0xa32   :  { %v1533_v48 = vsel %vm2915_vm10, %v1518_v6, -1e+30  ;;  %v1363_v13 = vsel %vm361_vm11, %v1357_v46, -inf }
 0xa33   :  { %1364 = vmax.xlane.f32.xlu1 %v1363_v13  ;;  %v1539_v52 = vsel %vm361_vm11, %v1533_v48, -inf }
 0xa34   :  { %1540 = vmax.xlane.f32.xlu2 %v1539_v52 }
 0xa38   :  { %v1344_v61 = vpop.f32.mrf.mxu1 }
 0xa39   :  { %v1358_v16 = vsel %vm2930_vm13, %v1344_v61, -1e+30  ;;  %v1520_v20 = vpop.f32.mrf.mxu0 }
 0xa3a   :  { %v1534_v41 = vsel %vm2930_vm13, %v1520_v20, -1e+30  ;;  %v1366_v0 = vsel %vm361_vm11, %v1358_v16, -inf }
 0xa3b   :  { %1367 = vmax.xlane.f32.xlu0 %v1366_v0  ;;  %v1542_v50 = vsel %vm361_vm11, %v1534_v41, -inf }
 0xa3c   :  { %1543 = vmax.xlane.f32.xlu1 %v1542_v50 }
 0xa40   :  { %v1347_v35 = vpop.f32.mrf.mxu1 }
 0xa41   :  { %v3365_v56 = vsel %vm2942_vm15, %v1347_v35, -1e+30  ;;  %v1523_v8 = vpop.f32.mrf.mxu0 }
 0xa42   :  { %v3369_v47 = vsel %vm2942_vm15, %v1523_v8, -1e+30  ;;  %v1369_v59 = vsel %vm361_vm11, %v3365_v56, -inf }
 0xa43   :  { %1370 = vmax.xlane.f32.xlu0 %v1369_v59  ;;  %v1545_v60 = vsel %vm361_vm11, %v3369_v47, -inf }
 0xa44   :  { %1546 = vmax.xlane.f32.xlu1 %v1545_v60 }
 0xa48   :  { %v1349_v7 = vpop.f32.mrf.mxu1 }
 0xa49   :  { %v1360_v32 = vsel %vm2956_vm2, %v1349_v7, -1e+30  ;;  %v1525_v28 = vpop.f32.mrf.mxu0 }
 0xa4a   :  { %v3379_v55 = vsel %vm2956_vm2, %v1525_v28, -1e+30  ;;  %v1372_v2 = vsel %vm361_vm11, %v1360_v32, -inf }
 0xa4b   :  { %1373 = vmax.xlane.f32.xlu2 %v1372_v2  ;;  %v1548_v57 = vsel %vm361_vm11, %v3379_v55, -inf }
 0xa4c   :  { %1549 = vmax.xlane.f32.xlu0 %v1548_v57 }
 0xa50   :  { %v1352_v34 = vpop.f32.mrf.mxu1 }
 0xa51   :  { %v1361_v26 = vsel %vm2973_vm4, %v1352_v34, -1e+30  ;;  %v1528_v53 = vpop.f32.mrf.mxu0 }
 0xa52   :  { %v3388_v3 = vsel %vm2973_vm4, %v1528_v53, -1e+30  ;;  %v1375_v11 = vsel %vm361_vm11, %v1361_v26, -inf }
 0xa53   :  { %1376 = vmax.xlane.f32.xlu2 %v1375_v11  ;;  %v1551_v14 = vsel %vm361_vm11, %v3388_v3, -inf }
 0xa54   :  { %1552 = vmax.xlane.f32.xlu0 %v1551_v14 }
 0xa58   :  { %v1354_v37 = vpop.f32.mrf.mxu1 }
 0xa59   :  { %v3395_v24 = vsel %vm2984_vm8, %v1354_v37, -1e+30  ;;  %v1530_v12 = vpop.f32.mrf.mxu0 }
 0xa5a   :  { %v1538_v1 = vsel %vm2984_vm8, %v1530_v12, -1e+30  ;;  %v1378_v22 = vsel %vm361_vm11, %v3395_v24, -inf }
 0xa5b   :  { %1379 = vmax.xlane.f32.xlu1 %v1378_v22  ;;  %v1554_v17 = vsel %vm361_vm11, %v1538_v1, -inf }
 0xa5c   :  { %1555 = vmax.xlane.f32.xlu2 %v1554_v17 }
 0xa74   :  { %1432 = vrot.lane.b32.xlu2 %v3312_v5, %s2693_s17 }
 0xa7c   :  { %1608 = vrot.lane.b32.xlu2 %v3312_v5, %s2700_s11 }
 0xaa6   :  { %v1365_v29 = vpop.xlane.xlu1 %1364 }
 0xaa7   :  { %v1541_v30 = vpop.xlane.xlu2 %1540  ;;  %v1381_v31 = vsub.f32 %v1357_v46, %v1365_v29 }
 0xaa8   :  { %v1557_v27 = vsub.f32 %v1533_v48, %v1541_v30 }
 0xaa9   :  { %v1387_v58 = vmul.f32 1.442695, %v1381_v31 }
 0xaaa   :  { %v1563_v33 = vmul.f32 1.442695, %v1557_v27 }
 0xaab   :  { %2582 = vpow2.f32 %v1387_v58 }
 0xaac   :  { %2584 = vpow2.f32 %v1563_v33 }
 0xaae   :  { %v1368_v42 = vpop.xlane.xlu0 %1367 }
 0xaaf   :  { %v1382_v15 = vsub.f32 %v1358_v16, %v1368_v42  ;;  %v1544_v63 = vpop.xlane.xlu1 %1543 }
 0xab0   :  { %v1558_v19 = vsub.f32 %v1534_v41, %v1544_v63 }
 0xab1   :  { %v3406_v36 = vpop.eup %2582  ;;  %v1389_v38 = vmul.f32 1.442695, %v1382_v15 }
 0xab2   :  { %v3408_v43 = vpop.eup %2584  ;;  %v1399_v5 = vsel %vm361_vm11, %v3406_v36, 0.0  ;;  %v1565_v40 = vmul.f32 1.442695, %v1558_v19 }
 0xab3   :  { %2586 = vpow2.f32 %v1389_v38  ;;  %v1575_v44 = vsel %vm361_vm11, %v3408_v43, 0.0  ;;  %1400 = vadd.xlane.f32.xlu1 %v1399_v5 }
 0xab4   :  { %1576 = vadd.xlane.f32.xlu0 %v1575_v44  ;;  %2588 = vpow2.f32 %v1565_v40 }
 0xab6   :  { %v1371_v7 = vpop.xlane.xlu0 %1370 }
 0xab7   :  { %v1547_v34 = vpop.xlane.xlu1 %1546 }
 0xab9   :  { %v3414_v4 = vpop.eup %2586 }
 0xaba   :  { %v1402_v25 = vsel %vm361_vm11, %v3414_v4, 0.0  ;;  %v3418_v46 = vpop.eup %2588 }
 0xabb   :  { %v1578_v48 = vsel %vm361_vm11, %v3418_v46, 0.0 }
 0xabc   :  { %1403 = vadd.xlane.f32.xlu0 %v1402_v25 }
 0xabe   :  { %v1374_v21 = vpop.xlane.xlu2 %1373 }
 0xabf   :  { %v1384_v45 = vsub.f32 %v1360_v32, %v1374_v21  ;;  %v1383_v32 = vsub.f32 %v3365_v56, %v1371_v7  ;;  %v1550_v28 = vpop.xlane.xlu0 %1549 }
 0xac0   :  { %v1560_v57 = vsub.f32 %v3379_v55, %v1550_v28 }
 0xac1   :  { %v1393_v6 = vmul.f32 1.442695, %v1384_v45  ;;  %v1391_v2 = vmul.f32 1.442695, %v1383_v32 }
 0xac2   :  { %v1569_v53 = vmul.f32 1.442695, %v1560_v57 }
 0xac3   :  { %2590 = vpow2.f32 %v1393_v6 }
 0xac4   :  { %1579 = vadd.xlane.f32.xlu0 %v1578_v48 }
 0xac6   :  { %v1377_v13 = vpop.xlane.xlu2 %1376 }
 0xac7   :  { %v1385_v52 = vsub.f32 %v1361_v26, %v1377_v13  ;;  %v1559_v26 = vsub.f32 %v3369_v47, %v1547_v34  ;;  %v1553_v11 = vpop.xlane.xlu0 %1552 }
 0xac8   :  { %v1561_v37 = vsub.f32 %v3388_v3, %v1553_v11 }
 0xac9   :  { %v3422_v61 = vpop.eup %2590  ;;  %v1395_v16 = vmul.f32 1.442695, %v1385_v52  ;;  %v1567_v14 = vmul.f32 1.442695, %v1559_v26 }
 0xaca   :  { %v1408_v20 = vsel %vm361_vm11, %v3422_v61, 0.0  ;;  %v1571_v56 = vmul.f32 1.442695, %v1561_v37 }
 0xacb   :  { %2592 = vpow2.f32 %v1395_v16  ;;  %1409 = vadd.xlane.f32.xlu2 %v1408_v20 }
 0xacc   :  { %1610 = vrot.lane.b32.xlu1 %v3308_v54, %s2700_s11 }
 0xace   :  { %v1380_v12 = vpop.xlane.xlu1 %1379 }
 0xacf   :  { %v1556_v41 = vpop.xlane.xlu2 %1555  ;;  %v1386_v22 = vsub.f32 %v3395_v24, %v1380_v12 }
 0xad0   :  { %v1562_v0 = vsub.f32 %v1538_v1, %v1556_v41 }
 0xad1   :  { %v3428_v50 = vpop.eup %2592  ;;  %v1397_v55 = vmul.f32 1.442695, %v1386_v22  ;;  %v2437_v22 = vld [vmem:[#allocation2 + $0x80] sm:$0xff] }
 0xad2   :  { %v1573_v35 = vmul.f32 1.442695, %v1562_v0  ;;  %v1411_v8 = vsel %vm361_vm11, %v3428_v50, 0.0 }
 0xad3   :  { %1412 = vadd.xlane.f32.xlu2 %v1411_v8 }
 0xad4   :  { %2594 = vpow2.f32 %v1573_v35 }
 0xad5   :  { %2596 = vpow2.f32 %v1391_v2 }
 0xad6   :  { %2598 = vpow2.f32 %v1569_v53 }
 0xad7   :  { %v1433_v59 = vpop.permute.xlu2 %1432  ;;  %2600 = vpow2.f32 %v1567_v14 }
 0xad8   :  { %1457 = vmatpush.bf16.msrb.mxu3 %v1433_v59  ;;  %1612 = vrot.lane.b32.xlu0 %v3316_v51, %s2700_s11  ;;  %2602 = vpow2.f32 %v1571_v56 }
 0xad9   :  { %2604 = vpow2.f32 %v1397_v55  ;;  %v2438_v55 = vld [vmem:[#allocation2 + $0x88] sm:$0xff] }
 0xada   :  { %v3434_v60 = vpop.eup %2594  ;;  %1677 = vmatpush.bf16.msra.mxu1 %v2438_v55 }
 0xadb   :  { %v1590_v54 = vsel %vm361_vm11, %v3434_v60, 0.0  ;;  %v2597_v51 = vpop.eup %2596 }
 0xadc   :  { %1591 = vadd.xlane.f32.xlu2 %v1590_v54  ;;  %v1405_v1 = vsel %vm361_vm11, %v2597_v51, 0.0  ;;  %v2599_v17 = vpop.eup %2598  ;;  %1716 = vmatpush.bf16.msra.mxu3 %v2437_v22 }
 0xadd   :  { %v1584_v47 = vsel %vm361_vm11, %v2599_v17, 0.0  ;;  %v2601_v29 = vpop.eup %2600 }
 0xade   :  { %v1581_v30 = vsel %vm361_vm11, %v2601_v29, 0.0  ;;  %v3446_v31 = vpop.eup %2602 }
 0xadf   :  { %v1587_v3 = vsel %vm361_vm11, %v3446_v31, 0.0  ;;  %v2605_v27 = vpop.eup %2604  ;;  %v1609_v48 = vpop.permute.xlu2 %1608 }
 0xae0   :  { %v1414_v24 = vsel %vm361_vm11, %v2605_v27, 0.0 }
 0xaf6   :  { %1406 = vadd.xlane.f32.xlu1 %v1405_v1 }
 0xafe   :  { %1585 = vadd.xlane.f32.xlu1 %v1584_v47 }
 0xb02   :  { %1582 = vadd.xlane.f32.xlu0 %v1581_v30 }
 0xb06   :  { %1588 = vadd.xlane.f32.xlu1 %v1587_v3 }
 0xb0a   :  { %1415 = vadd.xlane.f32.xlu0 %v1414_v24 }
 0xb26   :  { %v1401_v33 = vpop.xlane.xlu1 %1400 }
 0xb27   :  { %v1577_v58 = vpop.xlane.xlu0 %1576  ;;  %2606 = vrcp.f32 %v1401_v33 }
 0xb2d   :  { %v2607_v15 = vpop.eup %2606 }
 0xb2e   :  { %v1423_v38 = vmul.f32 %v2607_v15, %v3406_v36 }
 0xb2f   :  { %v1404_v42 = vpop.xlane.xlu0 %1403 }
 0xb30   :  { %2608 = vrcp.f32 %v1404_v42 }
 0xb36   :  { %v2609_v63 = vpop.eup %2608 }
 0xb37   :  { %v1424_v19 = vmul.f32 %v2609_v63, %v3414_v4  ;;  %v1580_v44 = vpop.xlane.xlu0 %1579 }
 0xb38   :  { %2610 = vrcp.f32 %v1580_v44 }
 0xb39   :  { %v1429_v5 = vpack.c.bf16 %v1424_v19, %v1423_v38  ;;  %2612 = vrcp.f32 %v1577_v58 }
 0xb3b   :  { %2355 = vmatmul.msk.bf16.vlgmr.msrb.gmra.mxu3 %vm361_vm11, %v1429_v5 }
 0xb3e   :  { %v2611_v25 = vpop.eup %2610  ;;  %v1611_v21 = vpop.permute.xlu1 %1610 }
 0xb3f   :  { %v2613_v45 = vpop.eup %2612  ;;  %v1600_v6 = vmul.f32 %v2611_v25, %v3418_v46  ;;  %v1410_v4 = vpop.xlane.xlu2 %1409 }
 0xb40   :  { %v1599_v13 = vmul.f32 %v2613_v45, %v3408_v43  ;;  %2614 = vrcp.f32 %v1410_v4 }
 0xb42   :  { %v1605_v36 = vpack.c.bf16 %v1600_v6, %v1599_v13 }
 0xb46   :  { %v2615_v16 = vpop.eup %2614 }
 0xb47   :  { %v1426_v35 = vmul.f32 %v2615_v16, %v3422_v61  ;;  %v1413_v43 = vpop.xlane.xlu2 %1412 }
 0xb4a   :  { %v1613_v40 = vpop.permute.xlu0 %1612 }
 0xb4b   :  { %1631 = vmatpush.bf16.msrb.mxu2 %v1613_v40  ;;  %v2477_v40 = vld [vmem:[%s3686_s2 + $0xb] ss:$0 sm:$0xff] }
 0xb4f   :  { %1632 = vmatpush.bf16.msrb.mxu2 %v1611_v21  ;;  %v1592_v34 = vpop.xlane.xlu2 %1591 }
 0xb53   :  { %1633 = vmatpush.bf16.msrb.mxu2 %v1609_v48 }
 0xb56   :  { %2361 = vmatmul.msk.bf16.vlgmr.msrb.gmra.mxu2 %vm361_vm11, %v1605_v36 }
 0xb69   :  { %v1407_v52 = vpop.xlane.xlu1 %1406 }
 0xb6a   :  { %2616 = vrcp.f32 %v1407_v52 }
 0xb70   :  { %v2617_v20 = vpop.eup %2616 }
 0xb71   :  { %v1586_v41 = vpop.xlane.xlu1 %1585  ;;  %v1425_v0 = vmul.f32 %v2617_v20, %v2597_v51 }
 0xb72   :  { %2618 = vrcp.f32 %v1586_v41 }
 0xb73   :  { %v1430_v8 = vpack.c.bf16 %v1426_v35, %v1425_v0 }
 0xb75   :  { %v1583_v46 = vpop.xlane.xlu0 %1582  ;;  %2356 = vmatmul.msk.bf16.gmra.mxu3 %vm361_vm11, %v1430_v8 }
 0xb76   :  { %2620 = vrcp.f32 %v1583_v46 }
 0xb77   :  { %2622 = vrcp.f32 %v1413_v43 }
 0xb78   :  { %v2619_v59 = vpop.eup %2618 }
 0xb79   :  { %v1602_v28 = vmul.f32 %v2619_v59, %v2599_v17  ;;  %v1589_v2 = vpop.xlane.xlu1 %1588 }
 0xb7c   :  { %v2621_v54 = vpop.eup %2620 }
 0xb7d   :  { %v1416_v7 = vpop.xlane.xlu0 %1415  ;;  %v1601_v32 = vmul.f32 %v2621_v54, %v2601_v29  ;;  %v2623_v61 = vpop.eup %2622 }
 0xb7e   :  { %2624 = vrcp.f32 %v1416_v7  ;;  %v1427_v53 = vmul.f32 %v2623_v61, %v3428_v50 }
 0xb7f   :  { %v1606_v57 = vpack.c.bf16 %v1602_v28, %v1601_v32  ;;  %2626 = vrcp.f32 %v1589_v2 }
 0xb80   :  { %2628 = vrcp.f32 %v1592_v34 }
 0xb81   :  { %2362 = vmatmul.msk.bf16.gmra.mxu2 %vm361_vm11, %v1606_v57 }
 0xb84   :  { %v2625_v26 = vpop.eup %2624 }
 0xb85   :  { %v1428_v11 = vmul.f32 %v2625_v26, %v2605_v27  ;;  %v2627_v14 = vpop.eup %2626 }
 0xb86   :  { %v2629_v37 = vpop.eup %2628  ;;  %v1603_v12 = vmul.f32 %v2627_v14, %v3446_v31 }
 0xb87   :  { %v1431_v51 = vpack.c.bf16 %v1428_v11, %v1427_v53  ;;  %v1604_v1 = vmul.f32 %v2629_v37, %v3434_v60 }
 0xb89   :  { %2357 = vmatmul.msk.bf16.gmra.mxu3 %vm361_vm11, %v1431_v51  ;;  %v1607_v56 = vpack.c.bf16 %v1604_v1, %v1603_v12 }
 0xb91   :  { %2363 = vmatmul.msk.bf16.gmra.mxu2 %vm361_vm11, %v1607_v56 }
 0xbbe   :  { %v1459_v17 = vpop.f32.mrf.mxu3 }
 0xbc6   :  { %v1461_v47 = vpop.f32.mrf.mxu3 }
 0xbc7   :  { %v1476_v50 = vpack.c.bf16 %v1461_v47, %v1459_v17 }
 0xbc9   :  { %2375 = vmatmul.msk.bf16.vlgmr.msra.gmra.mxu3 %vm312_vm5, %v1476_v50 }
 0xbd9   :  { %v1635_v29 = vpop.f32.mrf.mxu2 }
 0xbe1   :  { %v1637_v30 = vpop.f32.mrf.mxu2 }
 0xbe2   :  { %v1652_v3 = vpack.c.bf16 %v1637_v30, %v1635_v29 }
 0xbe4   :  { %2368 = vmatmul.msk.bf16.vlgmr.msra.gmra.mxu1 %vm312_vm5, %v1652_v3 }
 0xbf8   :  { %v1464_v31 = vpop.f32.mrf.mxu3 }
 0xc00   :  { %v1466_v27 = vpop.f32.mrf.mxu3 }
 0xc01   :  { %v1477_v60 = vpack.c.bf16 %v1466_v27, %v1464_v31 }
 0xc03   :  { %2376 = vmatmul.msk.bf16.gmra.mxu3 %vm312_vm5, %v1477_v60 }
 0xc04   :  { %v1640_v24 = vpop.f32.mrf.mxu2 }
 0xc0c   :  { %v1469_v58 = vpop.f32.mrf.mxu3  ;;  %v1642_v33 = vpop.f32.mrf.mxu2 }
 0xc0d   :  { %v1653_v42 = vpack.c.bf16 %v1642_v33, %v1640_v24 }
 0xc0f   :  { %2369 = vmatmul.msk.bf16.gmra.mxu1 %vm312_vm5, %v1653_v42 }
 0xc14   :  { %v1471_v15 = vpop.f32.mrf.mxu3  ;;  %v1645_v63 = vpop.f32.mrf.mxu2 }
 0xc15   :  { %v1478_v38 = vpack.c.bf16 %v1471_v15, %v1469_v58 }
 0xc17   :  { %2377 = vmatmul.msk.bf16.gmra.mxu3 %vm312_vm5, %v1478_v38 }
 0xc1c   :  { %v1647_v19 = vpop.f32.mrf.mxu2 }
 0xc1d   :  { %v1654_v5 = vpack.c.bf16 %v1647_v19, %v1645_v63 }
 0xc1f   :  { %2370 = vmatmul.msk.bf16.gmra.mxu1 %vm312_vm5, %v1654_v5 }
 0xc4c   :  { %v1718_v44 = vpop.f32.mrf.mxu3 }
 0xc54   :  { %v1720_v13 = vpop.f32.mrf.mxu3 }
 0xc61   :  { %v1679_v25 = vpop.f32.mrf.mxu1 }
 0xc62   :  { %v1719_v21 = vadd.f32 %v1718_v44, %v1679_v25 }
 0xc64   :  { %v1735_v45 = vadd.f32 %v2477_v40, %v1719_v21 }
 0xc66   :  { %v1741_v6 = vadd.f32 %v1735_v45, %v3268_v62  ;;  %v2440_v45 = vld [vmem:[#allocation2 + $0x98] sm:$0xff] }
 0xc67   :  { %1931 = vmatpush.bf16.msrb.mxu0 %v2440_v45 }
 0xc68   :  { %v1749_v48 = vsel %vm39_vm0, %v1741_v6, 0.0 }
 0xc69   :  { %v1681_v36 = vpop.f32.mrf.mxu1  ;;  %1750 = vadd.xlane.f32.xlu0 %v1749_v48 }
 0xc6a   :  { %v1721_v4 = vadd.f32 %v1720_v13, %v1681_v36  ;;  %v2439_v13 = vld [vmem:[#allocation2 + $0x90] sm:$0xff] }
 0xc6b   :  { %1932 = vmatpush.bf16.msrb.mxu0 %v2439_v13 }
 0xc6c   :  { %v1736_v52 = vadd.f32 %v2477_v40, %v1721_v4 }
 0xc6e   :  { %v1742_v16 = vadd.f32 %v1736_v52, %v3271_v9 }
 0xc70   :  { %v1752_v20 = vsel %vm39_vm0, %v1742_v16, 0.0 }
 0xc71   :  { %1753 = vadd.xlane.f32.xlu1 %v1752_v20 }
 0xc86   :  { %v1723_v41 = vpop.f32.mrf.mxu3 }
 0xc8c   :  { %v1684_v0 = vpop.f32.mrf.mxu1 }
 0xc8d   :  { %v1724_v35 = vadd.f32 %v1723_v41, %v1684_v0 }
 0xc8e   :  { %v1725_v43 = vpop.f32.mrf.mxu3 }
 0xc8f   :  { %v1737_v8 = vadd.f32 %v2477_v40, %v1724_v35 }
 0xc91   :  { %v1743_v46 = vadd.f32 %v1737_v8, %v3284_v49 }
 0xc93   :  { %v1755_v62 = vsel %vm39_vm0, %v1743_v46, 0.0 }
 0xc94   :  { %1756 = vadd.xlane.f32.xlu2 %v1755_v62  ;;  %v1686_v59 = vpop.f32.mrf.mxu1 }
 0xc95   :  { %v1726_v54 = vadd.f32 %v1725_v43, %v1686_v59 }
 0xc97   :  { %v1738_v7 = vadd.f32 %v2477_v40, %v1726_v54 }
 0xc99   :  { %v1744_v32 = vadd.f32 %v1738_v7, %v3287_v39 }
 0xc9a   :  { %v1728_v28 = vpop.f32.mrf.mxu3 }
 0xc9b   :  { %v1758_v9 = vsel %vm39_vm0, %v1744_v32, 0.0 }
 0xc9c   :  { %1759 = vadd.xlane.f32.xlu0 %v1758_v9  ;;  %v1689_v2 = vpop.f32.mrf.mxu1 }
 0xc9d   :  { %v1729_v57 = vadd.f32 %v1728_v28, %v1689_v2  ;;  %v3527_v28 = vld [vmem:[%s3686_s2 + $0xc] ss:$0 sm:$0xff] }
 0xc9f   :  { %v1739_v34 = vadd.f32 %v2477_v40, %v1729_v57 }
 0xca1   :  { %v1745_v61 = vadd.f32 %v1739_v34, %v3297_v23  ;;  %v3533_v34 = vld [vmem:[%s3686_s2 + $0xd] ss:$0 sm:$0xff] }
 0xca2   :  { %v1730_v26 = vpop.f32.mrf.mxu3 }
 0xca3   :  { %v1761_v49 = vsel %vm39_vm0, %v1745_v61, 0.0 }
 0xca4   :  { %1762 = vadd.xlane.f32.xlu1 %v1761_v49  ;;  %v1691_v53 = vpop.f32.mrf.mxu1 }
 0xca5   :  { %v1731_v11 = vadd.f32 %v1730_v26, %v1691_v53 }
 0xca7   :  { %v1740_v51 = vadd.f32 %v2477_v40, %v1731_v11 }
 0xca9   :  { %v1746_v14 = vadd.f32 %v1740_v51, %v3300_v10 }
 0xcab   :  { %v1764_v39 = vsel %vm39_vm0, %v1746_v14, 0.0 }
 0xcac   :  { %1765 = vadd.xlane.f32.xlu2 %v1764_v39 }
 0xcdc   :  { %v1751_v37 = vpop.xlane.xlu0 %1750 }
 0xcdd   :  { %v1767_v12 = vmul.f32 %v1751_v37, %v2750_v18 }
 0xcdf   :  { %v3487_v1 = vsub.f32 %v1741_v6, %v1767_v12 }
 0xce1   :  { %v1779_v23 = vmul.f32 %v3487_v1, %v3487_v1 }
 0xce3   :  { %v1785_v56 = vsel %vm39_vm0, %v1779_v23, 0.0 }
 0xce4   :  { %1786 = vadd.xlane.f32.xlu0 %v1785_v56  ;;  %v1754_v22 = vpop.xlane.xlu1 %1753 }
 0xce5   :  { %v1768_v17 = vmul.f32 %v1754_v22, %v2750_v18 }
 0xce7   :  { %v3493_v55 = vsub.f32 %v1742_v16, %v1768_v17 }
 0xce9   :  { %v1780_v10 = vmul.f32 %v3493_v55, %v3493_v55 }
 0xceb   :  { %v1788_v47 = vsel %vm39_vm0, %v1780_v10, 0.0 }
 0xcec   :  { %1789 = vadd.xlane.f32.xlu1 %v1788_v47 }
 0xd07   :  { %v1757_v50 = vpop.xlane.xlu2 %1756 }
 0xd08   :  { %v1769_v29 = vmul.f32 %v1757_v50, %v2750_v18 }
 0xd0a   :  { %v3499_v30 = vsub.f32 %v1743_v46, %v1769_v29 }
 0xd0c   :  { %v1781_v3 = vmul.f32 %v3499_v30, %v3499_v30 }
 0xd0e   :  { %v1791_v31 = vsel %vm39_vm0, %v1781_v3, 0.0 }
 0xd0f   :  { %v1760_v27 = vpop.xlane.xlu0 %1759  ;;  %1792 = vadd.xlane.f32.xlu2 %v1791_v31 }
 0xd10   :  { %v1770_v60 = vmul.f32 %v1760_v27, %v2750_v18 }
 0xd12   :  { %v3505_v24 = vsub.f32 %v1744_v32, %v1770_v60 }
 0xd14   :  { %v1782_v58 = vmul.f32 %v3505_v24, %v3505_v24 }
 0xd16   :  { %v1794_v33 = vsel %vm39_vm0, %v1782_v58, 0.0 }
 0xd17   :  { %1795 = vadd.xlane.f32.xlu0 %v1794_v33  ;;  %v1763_v42 = vpop.xlane.xlu1 %1762 }
 0xd18   :  { %v1771_v15 = vmul.f32 %v1763_v42, %v2750_v18 }
 0xd1a   :  { %v3511_v63 = vsub.f32 %v1745_v61, %v1771_v15 }
 0xd1c   :  { %v1783_v38 = vmul.f32 %v3511_v63, %v3511_v63 }
 0xd1e   :  { %v1797_v19 = vsel %vm39_vm0, %v1783_v38, 0.0 }
 0xd1f   :  { %v1766_v5 = vpop.xlane.xlu2 %1765  ;;  %1798 = vadd.xlane.f32.xlu1 %v1797_v19 }
 0xd20   :  { %v1772_v44 = vmul.f32 %v1766_v5, %v2750_v18 }
 0xd22   :  { %v3517_v40 = vsub.f32 %v1746_v14, %v1772_v44 }
 0xd24   :  { %v1784_v25 = vmul.f32 %v3517_v40, %v3517_v40 }
 0xd26   :  { %v1800_v21 = vsel %vm39_vm0, %v1784_v25, 0.0 }
 0xd27   :  { %1801 = vadd.xlane.f32.xlu2 %v1800_v21 }
 0xd57   :  { %v1787_v6 = vpop.xlane.xlu0 %1786 }
 0xd58   :  { %v1803_v48 = vmul.f32 %v1787_v6, %v2750_v18 }
 0xd5a   :  { %v1809_v36 = vadd.f32 1e-05, %v1803_v48 }
 0xd5c   :  { %2630 = vrsqrt.f32 %v1809_v36  ;;  %vm1821_vm10 = vweird.f32 %v1809_v36 }
 0xd5f   :  { %v1790_v4 = vpop.xlane.xlu1 %1789 }
 0xd60   :  { %v1804_v52 = vmul.f32 %v1790_v4, %v2750_v18 }
 0xd62   :  { %v2631_v16 = vpop.eup %2630  ;;  %v1810_v20 = vadd.f32 1e-05, %v1804_v52 }
 0xd63   :  { %v1816_v41 = vmul.f32 %v2631_v16, %v1809_v36  ;;  %vm1822_vm5 = vweird.f32 %v2631_v16 }
 0xd64   :  { %2632 = vrsqrt.f32 %v1810_v20  ;;  %vm1823_vm11 = vmor %vm1821_vm10, %vm1822_vm5  ;;  %vm1831_vm15 = vweird.f32 %v1810_v20 }
 0xd65   :  { %v1817_v0 = vmul.f32 %v2631_v16, %v1816_v41 }
 0xd67   :  { %v1818_v35 = vmul.f32 0.5, %v1817_v0 }
 0xd69   :  { %v1819_v8 = vsub.f32 1.5, %v1818_v35 }
 0xd6a   :  { %v2633_v46 = vpop.eup %2632 }
 0xd6b   :  { %v1820_v43 = vmul.f32 %v2631_v16, %v1819_v8  ;;  %v1826_v62 = vmul.f32 %v2633_v46, %v1810_v20  ;;  %vm1832_vm13 = vweird.f32 %v2633_v46 }
 0xd6c   :  { %vm1833_vm2 = vmor %vm1831_vm15, %vm1832_vm13 }
 0xd6d   :  { %v1827_v59 = vmul.f32 %v2633_v46, %v1826_v62  ;;  %v1824_v54 = vsel %vm1823_vm11, %v2631_v16, %v1820_v43 }
 0xd6e   :  { %v1875_v9 = vmul.f32 %v1824_v54, %v3487_v1 }
 0xd6f   :  { %v1828_v7 = vmul.f32 0.5, %v1827_v59 }
 0xd70   :  { %v1882_v61 = vmul.f32 %v3527_v28, %v1875_v9 }
 0xd71   :  { %v1829_v32 = vsub.f32 1.5, %v1828_v7 }
 0xd72   :  { %v3539_v53 = vadd.f32 %v3533_v34, %v1882_v61 }
 0xd73   :  { %v1830_v2 = vmul.f32 %v2633_v46, %v1829_v32 }
 0xd75   :  { %v1834_v57 = vsel %vm1833_vm2, %v2633_v46, %v1830_v2 }
 0xd76   :  { %v1876_v49 = vmul.f32 %v1834_v57, %v3493_v55 }
 0xd78   :  { %v1883_v26 = vmul.f32 %v3527_v28, %v1876_v49  ;;  %v2447_v49 = vld [vmem:[#allocation2 + $0xd0] sm:$0xff] }
 0xd7a   :  { %v3542_v11 = vadd.f32 %v3533_v34, %v1883_v26  ;;  %v2445_v26 = vld [vmem:[#allocation2 + $0xc0] sm:$0xff] }
 0xd7c   :  { %v1895_v51 = vpack.c.bf16 %v3542_v11, %v3539_v53 }
 0xd7e   :  { %2386 = vmatmul.msk.bf16.vlgmr.msrb.gmra.mxu0 %vm39_vm0, %v1895_v51  ;;  %v2443_v51 = vld [vmem:[#allocation2 + $0xb0] sm:$0xff] }
 0xd82   :  { %v1793_v14 = vpop.xlane.xlu2 %1792 }
 0xd83   :  { %v1805_v39 = vmul.f32 %v1793_v14, %v2750_v18  ;;  %v2442_v14 = vld [vmem:[#allocation2 + $0xa8] sm:$0xff] }
 0xd85   :  { %v1811_v37 = vadd.f32 1e-05, %v1805_v39  ;;  %v2441_v39 = vld [vmem:[#allocation2 + $0xa0] sm:$0xff] }
 0xd87   :  { %2634 = vrsqrt.f32 %v1811_v37  ;;  %vm1841_vm8 = vweird.f32 %v1811_v37 }
 0xd8a   :  { %v1796_v12 = vpop.xlane.xlu0 %1795 }
 0xd8b   :  { %v1806_v1 = vmul.f32 %v1796_v12, %v2750_v18 }
 0xd8d   :  { %v2635_v23 = vpop.eup %2634  ;;  %v1812_v56 = vadd.f32 1e-05, %v1806_v1 }
 0xd8e   :  { %v1836_v22 = vmul.f32 %v2635_v23, %v1811_v37  ;;  %vm1842_vm4 = vweird.f32 %v2635_v23 }
 0xd8f   :  { %2636 = vrsqrt.f32 %v1812_v56  ;;  %vm1843_vm9 = vmor %vm1841_vm8, %vm1842_vm4  ;;  %vm1851_vm14 = vweird.f32 %v1812_v56 }
 0xd90   :  { %v1837_v17 = vmul.f32 %v2635_v23, %v1836_v22 }
 0xd92   :  { %v1838_v55 = vmul.f32 0.5, %v1837_v17  ;;  %v1799_v10 = vpop.xlane.xlu1 %1798 }
 0xd93   :  { %v1807_v47 = vmul.f32 %v1799_v10, %v2750_v18 }
 0xd94   :  { %v1839_v50 = vsub.f32 1.5, %v1838_v55 }
 0xd95   :  { %v2637_v29 = vpop.eup %2636  ;;  %v1813_v3 = vadd.f32 1e-05, %v1807_v47 }
 0xd96   :  { %v1840_v31 = vmul.f32 %v2635_v23, %v1839_v50  ;;  %v1846_v27 = vmul.f32 %v2637_v29, %v1812_v56  ;;  %vm1852_vm12 = vweird.f32 %v2637_v29 }
 0xd97   :  { %2638 = vrsqrt.f32 %v1813_v3  ;;  %vm1853_vm1 = vmor %vm1851_vm14, %vm1852_vm12  ;;  %vm1861_vm7 = vweird.f32 %v1813_v3 }
 0xd98   :  { %v1847_v60 = vmul.f32 %v2637_v29, %v1846_v27  ;;  %v1844_v58 = vsel %vm1843_vm9, %v2635_v23, %v1840_v31 }
 0xd99   :  { %v1877_v5 = vmul.f32 %v1844_v58, %v3499_v30 }
 0xd9a   :  { %v1848_v33 = vmul.f32 0.5, %v1847_v60  ;;  %v1802_v42 = vpop.xlane.xlu2 %1801 }
 0xd9b   :  { %v1808_v15 = vmul.f32 %v1802_v42, %v2750_v18  ;;  %v1884_v13 = vmul.f32 %v3527_v28, %v1877_v5 }
 0xd9c   :  { %v1849_v38 = vsub.f32 1.5, %v1848_v33 }
 0xd9d   :  { %v2639_v19 = vpop.eup %2638  ;;  %v1814_v44 = vadd.f32 1e-05, %v1808_v15  ;;  %v3556_v20 = vadd.f32 %v3533_v34, %v1884_v13 }
 0xd9e   :  { %v1850_v25 = vmul.f32 %v2637_v29, %v1849_v38  ;;  %v1856_v21 = vmul.f32 %v2639_v19, %v1813_v3  ;;  %vm1862_vm3 = vweird.f32 %v2639_v19 }
 0xd9f   :  { %2640 = vrsqrt.f32 %v1814_v44  ;;  %vm1863_vm6 = vmor %vm1861_vm7, %vm1862_vm3  ;;  %vm1871_vm10 = vweird.f32 %v1814_v44 }
 0xda0   :  { %v1854_v45 = vsel %vm1853_vm1, %v2637_v29, %v1850_v25  ;;  %v1857_v6 = vmul.f32 %v2639_v19, %v1856_v21 }
 0xda1   :  { %v1878_v48 = vmul.f32 %v1854_v45, %v3505_v24 }
 0xda2   :  { %v1858_v36 = vmul.f32 0.5, %v1857_v6 }
 0xda3   :  { %v1885_v4 = vmul.f32 %v3527_v28, %v1878_v48 }
 0xda4   :  { %v1859_v52 = vsub.f32 1.5, %v1858_v36 }
 0xda5   :  { %v2641_v16 = vpop.eup %2640  ;;  %v3559_v30 = vadd.f32 %v3533_v34, %v1885_v4 }
 0xda6   :  { %v1860_v41 = vmul.f32 %v2639_v19, %v1859_v52  ;;  %v1866_v0 = vmul.f32 %v2641_v16, %v1814_v44  ;;  %vm1872_vm5 = vweird.f32 %v2641_v16 }
 0xda7   :  { %v1896_v35 = vpack.c.bf16 %v3559_v30, %v3556_v20  ;;  %vm1873_vm11 = vmor %vm1871_vm10, %vm1872_vm5 }
 0xda8   :  { %v1867_v24 = vmul.f32 %v2641_v16, %v1866_v0  ;;  %v1864_v8 = vsel %vm1863_vm6, %v2639_v19, %v1860_v41 }
 0xda9   :  { %2387 = vmatmul.msk.bf16.gmra.mxu0 %vm39_vm0, %v1896_v35  ;;  %v1879_v62 = vmul.f32 %v1864_v8, %v3511_v63  ;;  %v2448_v63 = vld [vmem:[#allocation2 + $0xd8] sm:$0xff] }
 0xdaa   :  { %v1868_v46 = vmul.f32 0.5, %v1867_v24  ;;  %2072 = vmatpush.bf16.msra.mxu2 %v2448_v63 }
 0xdab   :  { %v1886_v32 = vmul.f32 %v3527_v28, %v1879_v62 }
 0xdac   :  { %v1869_v43 = vsub.f32 1.5, %v1868_v46 }
 0xdad   :  { %v3569_v2 = vadd.f32 %v3533_v34, %v1886_v32 }
 0xdae   :  { %v1870_v59 = vmul.f32 %v2641_v16, %v1869_v43  ;;  %2073 = vmatpush.bf16.msra.mxu2 %v2447_v49 }
 0xdb0   :  { %v1874_v54 = vsel %vm1873_vm11, %v2641_v16, %v1870_v59 }
 0xdb1   :  { %v1880_v7 = vmul.f32 %v1874_v54, %v3517_v40  ;;  %v2446_v40 = vld [vmem:[#allocation2 + $0xc8] sm:$0xff] }
 0xdb2   :  { %2074 = vmatpush.bf16.msra.mxu2 %v2446_v40 }
 0xdb3   :  { %v1887_v9 = vmul.f32 %v3527_v28, %v1880_v7  ;;  %v2444_v28 = vld [vmem:[#allocation2 + $0xb8] sm:$0xff] }
 0xdb5   :  { %v3572_v57 = vadd.f32 %v3533_v34, %v1887_v9  ;;  %v2480_v34 = vld [vmem:[%s3686_s2 + $0xe] ss:$0 sm:$0xff] }
 0xdb6   :  { %2075 = vmatpush.bf16.msra.mxu2 %v2445_v26 }
 0xdb7   :  { %v1897_v61 = vpack.c.bf16 %v3572_v57, %v3569_v2 }
 0xdb9   :  { %2388 = vmatmul.msk.bf16.gmra.mxu0 %vm39_vm0, %v1897_v61 }
 0xdba   :  { %2076 = vmatpush.bf16.msra.mxu2 %v2444_v28 }
 0xdbe   :  { %2077 = vmatpush.bf16.msra.mxu2 %v2443_v51 }
 0xdc2   :  { %2078 = vmatpush.bf16.msra.mxu2 %v2442_v14 }
 0xdc6   :  { %2079 = vmatpush.bf16.msra.mxu2 %v2441_v39 }
 0xdfb   :  { %v1934_v37 = vpop.f32.mrf.mxu0 }
 0xdfc   :  { %v1935_v12 = vadd.f32 %v2480_v34, %v1934_v37 }
 0xdfe   :  { %v1949_v1 = vmul.f32 %v1935_v12, %v1935_v12 }
 0xe00   :  { %v1955_v23 = vmul.f32 %v1949_v1, %v1935_v12 }
 0xe02   :  { %v1961_v56 = vmul.f32 0.044715, %v1955_v23 }
 0xe03   :  { %v1936_v22 = vpop.f32.mrf.mxu0 }
 0xe04   :  { %v1967_v17 = vadd.f32 %v1961_v56, %v1935_v12  ;;  %v1937_v55 = vadd.f32 %v2480_v34, %v1936_v22 }
 0xe06   :  { %v1973_v10 = vmul.f32 0.7978846, %v1967_v17  ;;  %v1950_v47 = vmul.f32 %v1937_v55, %v1937_v55 }
 0xe08   :  { %v1956_v50 = vmul.f32 %v1950_v47, %v1937_v55  ;;  %2642 = vtanh.f32 %v1973_v10 }
 0xe0a   :  { %v1962_v29 = vmul.f32 0.044715, %v1956_v50 }
 0xe0c   :  { %v1968_v3 = vadd.f32 %v1962_v29, %v1937_v55 }
 0xe0e   :  { %v1974_v31 = vmul.f32 0.7978846, %v1968_v3  ;;  %v2643_v27 = vpop.eup %2642  ;;  %v2481_v3 = vld [vmem:[%s3686_s2 + $0xf] ss:$0 sm:$0xff] }
 0xe0f   :  { %v1985_v60 = vadd.f32 1.0, %v2643_v27 }
 0xe10   :  { %2644 = vtanh.f32 %v1974_v31 }
 0xe11   :  { %v1991_v33 = vmul.f32 0.5, %v1985_v60 }
 0xe13   :  { %v1997_v38 = vmul.f32 %v1991_v33, %v1935_v12 }
 0xe16   :  { %v2645_v58 = vpop.eup %2644 }
 0xe17   :  { %v1986_v42 = vadd.f32 1.0, %v2645_v58 }
 0xe19   :  { %v1992_v15 = vmul.f32 0.5, %v1986_v42 }
 0xe1b   :  { %v1998_v19 = vmul.f32 %v1992_v15, %v1937_v55 }
 0xe1d   :  { %v2003_v5 = vpack.c.bf16 %v1998_v19, %v1997_v38 }
 0xe1f   :  { %2080 = vmatmul.bf16.vlgmr.msra.gmra.mxu2 %v2003_v5 }
 0xe26   :  { %v1939_v44 = vpop.f32.mrf.mxu0 }
 0xe27   :  { %v1940_v25 = vadd.f32 %v2480_v34, %v1939_v44 }
 0xe29   :  { %v1951_v21 = vmul.f32 %v1940_v25, %v1940_v25 }
 0xe2b   :  { %v1957_v45 = vmul.f32 %v1951_v21, %v1940_v25 }
 0xe2d   :  { %v1963_v6 = vmul.f32 0.044715, %v1957_v45 }
 0xe2e   :  { %v1941_v48 = vpop.f32.mrf.mxu0 }
 0xe2f   :  { %v1969_v13 = vadd.f32 %v1963_v6, %v1940_v25  ;;  %v1942_v36 = vadd.f32 %v2480_v34, %v1941_v48 }
 0xe31   :  { %v1952_v4 = vmul.f32 %v1942_v36, %v1942_v36  ;;  %v1975_v52 = vmul.f32 0.7978846, %v1969_v13 }
 0xe33   :  { %v1958_v16 = vmul.f32 %v1952_v4, %v1942_v36  ;;  %2646 = vtanh.f32 %v1975_v52 }
 0xe35   :  { %v1964_v41 = vmul.f32 0.044715, %v1958_v16 }
 0xe36   :  { %v1944_v0 = vpop.f32.mrf.mxu0 }
 0xe37   :  { %v1970_v35 = vadd.f32 %v1964_v41, %v1942_v36  ;;  %v1945_v24 = vadd.f32 %v2480_v34, %v1944_v0 }
 0xe39   :  { %v1953_v8 = vmul.f32 %v1945_v24, %v1945_v24  ;;  %v1976_v46 = vmul.f32 0.7978846, %v1970_v35  ;;  %v2647_v43 = vpop.eup %2646 }
 0xe3a   :  { %v1987_v7 = vadd.f32 1.0, %v2647_v43 }
 0xe3b   :  { %v1959_v62 = vmul.f32 %v1953_v8, %v1945_v24  ;;  %2648 = vtanh.f32 %v1976_v46 }
 0xe3c   :  { %v1993_v26 = vmul.f32 0.5, %v1987_v7 }
 0xe3d   :  { %v1965_v59 = vmul.f32 0.044715, %v1959_v62 }
 0xe3e   :  { %v1946_v54 = vpop.f32.mrf.mxu0  ;;  %v1999_v39 = vmul.f32 %v1993_v26, %v1940_v25 }
 0xe3f   :  { %v1971_v32 = vadd.f32 %v1965_v59, %v1945_v24  ;;  %v1947_v9 = vadd.f32 %v2480_v34, %v1946_v54 }
 0xe41   :  { %v2649_v61 = vpop.eup %2648  ;;  %v1977_v63 = vmul.f32 0.7978846, %v1971_v32  ;;  %v1954_v49 = vmul.f32 %v1947_v9, %v1947_v9 }
 0xe42   :  { %v1988_v40 = vadd.f32 1.0, %v2649_v61 }
 0xe43   :  { %v1960_v28 = vmul.f32 %v1954_v49, %v1947_v9  ;;  %2650 = vtanh.f32 %v1977_v63 }
 0xe44   :  { %v1994_v51 = vmul.f32 0.5, %v1988_v40 }
 0xe45   :  { %v1966_v14 = vmul.f32 0.044715, %v1960_v28 }
 0xe46   :  { %v2000_v37 = vmul.f32 %v1994_v51, %v1942_v36 }
 0xe47   :  { %v1972_v12 = vadd.f32 %v1966_v14, %v1947_v9 }
 0xe48   :  { %v2004_v1 = vpack.c.bf16 %v2000_v37, %v1999_v39 }
 0xe49   :  { %v1978_v23 = vmul.f32 0.7978846, %v1972_v12  ;;  %v2651_v56 = vpop.eup %2650 }
 0xe4a   :  { %2085 = vmatmul.bf16.gmra.mxu2 %v2004_v1  ;;  %v1989_v22 = vadd.f32 1.0, %v2651_v56 }
 0xe4b   :  { %2652 = vtanh.f32 %v1978_v23 }
 0xe4c   :  { %v1995_v55 = vmul.f32 0.5, %v1989_v22 }
 0xe4e   :  { %v2001_v47 = vmul.f32 %v1995_v55, %v1945_v24 }
 0xe51   :  { %v2653_v17 = vpop.eup %2652 }
 0xe52   :  { %v1990_v34 = vadd.f32 1.0, %v2653_v17 }
 0xe54   :  { %v1996_v10 = vmul.f32 0.5, %v1990_v34 }
 0xe56   :  { %v2002_v50 = vmul.f32 %v1996_v10, %v1947_v9 }
 0xe58   :  { %v2005_v29 = vpack.c.bf16 %v2002_v50, %v2001_v47 }
 0xe5a   :  { %2090 = vmatmul.bf16.gmra.mxu2 %v2005_v29 }
 0xea2   :  { %v2081_v31 = vpop.f32.mrf.mxu2 }
 0xea3   :  { %v2082_v27 = vadd.f32 %v2481_v3, %v2081_v31 }
 0xea5   :  { %v2096_v60 = vadd.f32 %v2082_v27, %v3539_v53 }
 0xea7   :  { %v2104_v58 = vsel %vm39_vm0, %v2096_v60, 0.0 }
 0xea8   :  { %2105 = vadd.xlane.f32.xlu0 %v2104_v58 }
 0xeaa   :  { %v2083_v33 = vpop.f32.mrf.mxu2 }
 0xeab   :  { %v2084_v42 = vadd.f32 %v2481_v3, %v2083_v33 }
 0xead   :  { %v2097_v15 = vadd.f32 %v2084_v42, %v3542_v11  ;;  %v3632_v42 = vld [vmem:[%s3686_s2 + $0x10] ss:$0 sm:$0xff] }
 0xeaf   :  { %v2107_v38 = vsel %vm39_vm0, %v2097_v15, 0.0 }
 0xeb0   :  { %2108 = vadd.xlane.f32.xlu1 %v2107_v38 }
 0xecd   :  { %v2086_v19 = vpop.f32.mrf.mxu2 }
 0xece   :  { %v2087_v5 = vadd.f32 %v2481_v3, %v2086_v19  ;;  %v3637_v19 = vld [vmem:[%s3686_s2 + $0x11] ss:$0 sm:$0xff] }
 0xed0   :  { %v2098_v44 = vadd.f32 %v2087_v5, %v3556_v20 }
 0xed2   :  { %v2110_v25 = vsel %vm39_vm0, %v2098_v44, 0.0 }
 0xed3   :  { %2111 = vadd.xlane.f32.xlu2 %v2110_v25 }
 0xed5   :  { %v2088_v21 = vpop.f32.mrf.mxu2 }
 0xed6   :  { %v2089_v45 = vadd.f32 %v2481_v3, %v2088_v21 }
 0xed8   :  { %v2099_v53 = vadd.f32 %v2089_v45, %v3559_v30 }
 0xeda   :  { %v2113_v6 = vsel %vm39_vm0, %v2099_v53, 0.0 }
 0xedb   :  { %2114 = vadd.xlane.f32.xlu0 %v2113_v6 }
 0xedd   :  { %v2091_v48 = vpop.f32.mrf.mxu2 }
 0xede   :  { %v2092_v13 = vadd.f32 %v2481_v3, %v2091_v48 }
 0xee0   :  { %v2100_v11 = vadd.f32 %v2092_v13, %v3569_v2 }
 0xee2   :  { %v2116_v36 = vsel %vm39_vm0, %v2100_v11, 0.0 }
 0xee3   :  { %2117 = vadd.xlane.f32.xlu1 %v2116_v36 }
 0xee5   :  { %v2093_v4 = vpop.f32.mrf.mxu2 }
 0xee6   :  { %v2094_v52 = vadd.f32 %v2481_v3, %v2093_v4 }
 0xee8   :  { %v2101_v20 = vadd.f32 %v2094_v52, %v3572_v57 }
 0xeea   :  { %v2119_v16 = vsel %vm39_vm0, %v2101_v20, 0.0 }
 0xeeb   :  { %2120 = vadd.xlane.f32.xlu2 %v2119_v16 }
 0xf1b   :  { %v2106_v41 = vpop.xlane.xlu0 %2105 }
 0xf1c   :  { %v2122_v30 = vmul.f32 %v2106_v41, %v2750_v18 }
 0xf1e   :  { %v2128_v0 = vsub.f32 %v2096_v60, %v2122_v30 }
 0xf20   :  { %v2134_v35 = vmul.f32 %v2128_v0, %v2128_v0 }
 0xf22   :  { %v2140_v24 = vsel %vm39_vm0, %v2134_v35, 0.0 }
 0xf23   :  { %2141 = vadd.xlane.f32.xlu0 %v2140_v24  ;;  %v2109_v8 = vpop.xlane.xlu1 %2108 }
 0xf24   :  { %v2123_v2 = vmul.f32 %v2109_v8, %v2750_v18 }
 0xf26   :  { %v3598_v46 = vsub.f32 %v2097_v15, %v2123_v2 }
 0xf28   :  { %v2135_v43 = vmul.f32 %v3598_v46, %v3598_v46 }
 0xf2a   :  { %v2143_v57 = vsel %vm39_vm0, %v2135_v43, 0.0 }
 0xf2b   :  { %2144 = vadd.xlane.f32.xlu1 %v2143_v57 }
 0xf46   :  { %v2112_v62 = vpop.xlane.xlu2 %2111 }
 0xf47   :  { %v2124_v59 = vmul.f32 %v2112_v62, %v2750_v18 }
 0xf49   :  { %v3604_v54 = vsub.f32 %v2098_v44, %v2124_v59 }
 0xf4b   :  { %v2136_v7 = vmul.f32 %v3604_v54, %v3604_v54 }
 0xf4d   :  { %v2146_v32 = vsel %vm39_vm0, %v2136_v7, 0.0 }
 0xf4e   :  { %v2115_v9 = vpop.xlane.xlu0 %2114  ;;  %2147 = vadd.xlane.f32.xlu2 %v2146_v32 }
 0xf4f   :  { %v2125_v61 = vmul.f32 %v2115_v9, %v2750_v18 }
 0xf51   :  { %v3610_v63 = vsub.f32 %v2099_v53, %v2125_v61 }
 0xf53   :  { %v2137_v49 = vmul.f32 %v3610_v63, %v3610_v63 }
 0xf55   :  { %v2149_v40 = vsel %vm39_vm0, %v2137_v49, 0.0 }
 0xf56   :  { %2150 = vadd.xlane.f32.xlu0 %v2149_v40  ;;  %v2118_v26 = vpop.xlane.xlu1 %2117 }
 0xf57   :  { %v2126_v28 = vmul.f32 %v2118_v26, %v2750_v18 }
 0xf59   :  { %v3616_v51 = vsub.f32 %v2100_v11, %v2126_v28 }
 0xf5b   :  { %v2138_v14 = vmul.f32 %v3616_v51, %v3616_v51 }
 0xf5d   :  { %v2152_v39 = vsel %vm39_vm0, %v2138_v14, 0.0 }
 0xf5e   :  { %v2121_v37 = vpop.xlane.xlu2 %2120  ;;  %2153 = vadd.xlane.f32.xlu1 %v2152_v39 }
 0xf5f   :  { %v2127_v12 = vmul.f32 %v2121_v37, %v2750_v18 }
 0xf61   :  { %v3622_v1 = vsub.f32 %v2101_v20, %v2127_v12 }
 0xf63   :  { %v2139_v23 = vmul.f32 %v3622_v1, %v3622_v1 }
 0xf65   :  { %v2155_v56 = vsel %vm39_vm0, %v2139_v23, 0.0 }
 0xf66   :  { %2156 = vadd.xlane.f32.xlu2 %v2155_v56 }
 0xf96   :  { %v2142_v22 = vpop.xlane.xlu0 %2141 }
 0xf97   :  { %v2158_v17 = vmul.f32 %v2142_v22, %v2750_v18 }
 0xf99   :  { %v2164_v34 = vadd.f32 1e-05, %v2158_v17 }
 0xf9b   :  { %2654 = vrsqrt.f32 %v2164_v34  ;;  %vm2176_vm15 = vweird.f32 %v2164_v34 }
 0xf9e   :  { %v2145_v55 = vpop.xlane.xlu1 %2144 }
 0xf9f   :  { %v2159_v10 = vmul.f32 %v2145_v55, %v2750_v18 }
 0xfa1   :  { %v2655_v47 = vpop.eup %2654  ;;  %v2165_v50 = vadd.f32 1e-05, %v2159_v10 }
 0xfa2   :  { %v2171_v29 = vmul.f32 %v2655_v47, %v2164_v34  ;;  %vm2177_vm13 = vweird.f32 %v2655_v47 }
 0xfa3   :  { %2656 = vrsqrt.f32 %v2165_v50  ;;  %vm2178_vm2 = vmor %vm2176_vm15, %vm2177_vm13  ;;  %vm2186_vm8 = vweird.f32 %v2165_v50 }
 0xfa4   :  { %v2172_v3 = vmul.f32 %v2655_v47, %v2171_v29 }
 0xfa6   :  { %v2173_v31 = vmul.f32 0.5, %v2172_v3 }
 0xfa8   :  { %v2174_v27 = vsub.f32 1.5, %v2173_v31 }
 0xfa9   :  { %v2657_v60 = vpop.eup %2656 }
 0xfaa   :  { %v2175_v58 = vmul.f32 %v2655_v47, %v2174_v27  ;;  %v2181_v33 = vmul.f32 %v2657_v60, %v2165_v50  ;;  %vm2187_vm4 = vweird.f32 %v2657_v60 }
 0xfab   :  { %vm2188_vm9 = vmor %vm2186_vm8, %vm2187_vm4 }
 0xfac   :  { %v2179_v15 = vsel %vm2178_vm2, %v2655_v47, %v2175_v58  ;;  %v2182_v38 = vmul.f32 %v2657_v60, %v2181_v33 }
 0xfad   :  { %v2230_v5 = vmul.f32 %v2179_v15, %v2128_v0 }
 0xfae   :  { %v2183_v44 = vmul.f32 0.5, %v2182_v38 }
 0xfaf   :  { %v2237_v25 = vmul.f32 %v3632_v42, %v2230_v5 }
 0xfb0   :  { %v2184_v21 = vsub.f32 1.5, %v2183_v44 }
 0xfb1   :  { %v2244_v45 = vadd.f32 %v3637_v19, %v2237_v25 }
 0xfb2   :  { %v2185_v53 = vmul.f32 %v2657_v60, %v2184_v21 }
 0xfb3   :  { %2250 = vst.msk [vmem:[%s3687_s3] sm:$0xff] %vm39_vm0, %v2244_v45 }
 0xfb4   :  { %v2189_v6 = vsel %vm2188_vm9, %v2657_v60, %v2185_v53 }
 0xfb5   :  { %v2231_v48 = vmul.f32 %v2189_v6, %v3598_v46 }
 0xfb7   :  { %v2238_v13 = vmul.f32 %v3632_v42, %v2231_v48 }
 0xfb9   :  { %v2245_v11 = vadd.f32 %v3637_v19, %v2238_v13 }
 0xfbb   :  { %2251 = vst.msk [vmem:[%s3687_s3 + $0x8] sm:$0xff] %vm39_vm0, %v2245_v11 }
 0xfc1   :  { %v2148_v36 = vpop.xlane.xlu2 %2147 }
 0xfc2   :  { %v2160_v4 = vmul.f32 %v2148_v36, %v2750_v18 }
 0xfc4   :  { %v2166_v52 = vadd.f32 1e-05, %v2160_v4 }
 0xfc6   :  { %2658 = vrsqrt.f32 %v2166_v52  ;;  %vm2196_vm14 = vweird.f32 %v2166_v52 }
 0xfc9   :  { %v2151_v20 = vpop.xlane.xlu0 %2150 }
 0xfca   :  { %v2161_v16 = vmul.f32 %v2151_v20, %v2750_v18 }
 0xfcc   :  { %v2659_v41 = vpop.eup %2658  ;;  %v2167_v30 = vadd.f32 1e-05, %v2161_v16 }
 0xfcd   :  { %v2191_v0 = vmul.f32 %v2659_v41, %v2166_v52  ;;  %vm2197_vm12 = vweird.f32 %v2659_v41 }
 0xfce   :  { %2660 = vrsqrt.f32 %v2167_v30  ;;  %vm2198_vm1 = vmor %vm2196_vm14, %vm2197_vm12  ;;  %vm2206_vm7 = vweird.f32 %v2167_v30 }
 0xfcf   :  { %v2192_v35 = vmul.f32 %v2659_v41, %v2191_v0 }
 0xfd1   :  { %v2193_v24 = vmul.f32 0.5, %v2192_v35  ;;  %v2154_v8 = vpop.xlane.xlu1 %2153 }
 0xfd2   :  { %v2162_v2 = vmul.f32 %v2154_v8, %v2750_v18 }
 0xfd3   :  { %v2194_v46 = vsub.f32 1.5, %v2193_v24 }
 0xfd4   :  { %v2661_v43 = vpop.eup %2660  ;;  %v2168_v57 = vadd.f32 1e-05, %v2162_v2 }
 0xfd5   :  { %v2195_v62 = vmul.f32 %v2659_v41, %v2194_v46  ;;  %v2201_v59 = vmul.f32 %v2661_v43, %v2167_v30  ;;  %vm2207_vm3 = vweird.f32 %v2661_v43 }
 0xfd6   :  { %2662 = vrsqrt.f32 %v2168_v57  ;;  %vm2208_vm6 = vmor %vm2206_vm7, %vm2207_vm3  ;;  %vm2216_vm10 = vweird.f32 %v2168_v57 }
 0xfd7   :  { %v2199_v7 = vsel %vm2198_vm1, %v2659_v41, %v2195_v62  ;;  %v2202_v32 = vmul.f32 %v2661_v43, %v2201_v59 }
 0xfd8   :  { %v2232_v9 = vmul.f32 %v2199_v7, %v3604_v54 }
 0xfd9   :  { %v2203_v61 = vmul.f32 0.5, %v2202_v32  ;;  %v2157_v49 = vpop.xlane.xlu2 %2156 }
 0xfda   :  { %v2239_v40 = vmul.f32 %v3632_v42, %v2232_v9  ;;  %v2163_v26 = vmul.f32 %v2157_v49, %v2750_v18 }
 0xfdb   :  { %v2204_v28 = vsub.f32 1.5, %v2203_v61 }
 0xfdc   :  { %v2663_v14 = vpop.eup %2662  ;;  %v2246_v39 = vadd.f32 %v3637_v19, %v2239_v40  ;;  %v2169_v37 = vadd.f32 1e-05, %v2163_v26 }
 0xfdd   :  { %v2205_v12 = vmul.f32 %v2661_v43, %v2204_v28  ;;  %v2211_v23 = vmul.f32 %v2663_v14, %v2168_v57  ;;  %vm2217_vm5 = vweird.f32 %v2663_v14 }
 0xfde   :  { %2252 = vst.msk [vmem:[%s3687_s3 + $0x10] sm:$0xff] %vm39_vm0, %v2246_v39  ;;  %2664 = vrsqrt.f32 %v2169_v37  ;;  %vm2218_vm11 = vmor %vm2216_vm10, %vm2217_vm5  ;;  %vm2226_vm15 = vweird.f32 %v2169_v37 }
 0xfdf   :  { %v2209_v54 = vsel %vm2208_vm6, %v2661_v43, %v2205_v12  ;;  %v2212_v56 = vmul.f32 %v2663_v14, %v2211_v23 }
 0xfe0   :  { %v2233_v18 = vmul.f32 %v2209_v54, %v3610_v63 }
 0xfe1   :  { %v2213_v22 = vmul.f32 0.5, %v2212_v56 }
 0xfe2   :  { %v2240_v17 = vmul.f32 %v3632_v42, %v2233_v18 }
 0xfe3   :  { %v2214_v34 = vsub.f32 1.5, %v2213_v22 }
 0xfe4   :  { %v2665_v55 = vpop.eup %2664  ;;  %v2247_v10 = vadd.f32 %v3637_v19, %v2240_v17 }
 0xfe5   :  { %v2215_v47 = vmul.f32 %v2663_v14, %v2214_v34  ;;  %v2221_v50 = vmul.f32 %v2665_v55, %v2169_v37  ;;  %vm2227_vm13 = vweird.f32 %v2665_v55 }
 0xfe6   :  { %2253 = vst.msk [vmem:[%s3687_s3 + $0x18] sm:$0xff] %vm39_vm0, %v2247_v10  ;;  %vm2228_vm2 = vmor %vm2226_vm15, %vm2227_vm13 }
 0xfe7   :  { %v2219_v29 = vsel %vm2218_vm11, %v2663_v14, %v2215_v47  ;;  %v2222_v3 = vmul.f32 %v2665_v55, %v2221_v50 }
 0xfe8   :  { %v2234_v63 = vmul.f32 %v2219_v29, %v3616_v51 }
 0xfe9   :  { %v2223_v31 = vmul.f32 0.5, %v2222_v3 }
 0xfea   :  { %v2241_v27 = vmul.f32 %v3632_v42, %v2234_v63 }
 0xfeb   :  { %v2224_v60 = vsub.f32 1.5, %v2223_v31 }
 0xfec   :  { %v2248_v58 = vadd.f32 %v3637_v19, %v2241_v27 }
 0xfed   :  { %v2225_v33 = vmul.f32 %v2665_v55, %v2224_v60 }
 0xfee   :  { %2254 = vst.msk [vmem:[%s3687_s3 + $0x20] sm:$0xff] %vm39_vm0, %v2248_v58 }
 0xfef   :  { %v2229_v15 = vsel %vm2228_vm2, %v2665_v55, %v2225_v33 }
 0xff0   :  { %v2235_v38 = vmul.f32 %v2229_v15, %v3622_v1 }
 0xff2   :  { %v2242_v51 = vmul.f32 %v3632_v42, %v2235_v38 }
 0xff4   :  { %v2249_v5 = vadd.f32 %v3637_v19, %v2242_v51 }
 0xff6   :  { %2255 = vst.msk [vmem:[%s3687_s3 + $0x28] sm:$0xff] %vm39_vm0, %v2249_v5 }
 0xff7   :  { %2260 = vsyncpa [#allocation3], 1 }

</bundles_post_ra>
